<compile_context>
chip_gen: v7x
topology: tpu7x:2x2x1
jax: 0.10.0
libtpu: 0.0.40
codegen_flags: <defaults>
</compile_context>

<pallas_src>
import functools

import jax
import jax.numpy as jnp
from jax import lax
from jax.experimental import pallas as pl
from jax.experimental.pallas import tpu as pltpu


PADW = 8   # left/right zero-pad columns in the scratch (keeps interior stores aligned)


# ----------------------------- Pallas kernel --------------------------------
def _conv3x3_kernel(x_ref, top_ref, bot_ref, w_ref, scale_ref, shift_ref, o_ref,
                    xpad_ref, *, TH, SH, W, act):
    """Fused 3x3 'same' conv + per-channel affine (bias / eval-BN) + activation.

    One grid step handles (batch b, row-tile t).  Block shapes:
      x_ref    : (1, TH, W, Cin)  bf16  rows [t*TH, t*TH + TH)
      top_ref  : (1, 1,  W, Cin)  bf16  row t*TH - 1 (clamped; zeroed at image top)
      bot_ref  : (1, 1,  W, Cin)  bf16  row t*TH + TH (clamped; zeroed at image bottom)
      w_ref    : (1, 9, Cin, Cout) bf16 3x3 taps as 9 (Cin, Cout) matmul weights
      scale_ref: (1, 1, Cout) f32
      shift_ref: (1, 1, Cout) f32
      o_ref    : (1, TH, W, Cout)
      xpad_ref : VMEM scratch (TH+2, W + 2*PADW, Cin) -- zero-padded, haloed tile

    The TH-row tile is processed in SH-row sub-blocks (inner fori_loop) so the f32
    accumulator (SH*W, Cout) stays register-resident.
    """
    Cin = x_ref.shape[-1]
    Cout = o_ref.shape[-1]
    t = pl.program_id(1)
    nT = pl.num_programs(1)

    # --- fused 'same' padding: assemble the haloed, zero-padded tile in VMEM -------
    zcols = jnp.zeros((TH + 2, PADW, Cin), xpad_ref.dtype)
    xpad_ref[:, 0:PADW, :] = zcols                             # left zero columns
    xpad_ref[:, PADW + W:PADW + W + PADW, :] = zcols           # right zero columns
    xpad_ref[1:TH + 1, PADW:PADW + W, :] = x_ref[0]            # interior rows

    # Halo rows: scalar-branch on the tile index (cheaper than an array mask select).
    zrow = jnp.zeros((1, W, Cin), xpad_ref.dtype)

    @pl.when(t == 0)
    def _():
        xpad_ref[0:1, PADW:PADW + W, :] = zrow                 # image top border

    @pl.when(t > 0)
    def _():
        xpad_ref[0:1, PADW:PADW + W, :] = top_ref[0]

    @pl.when(t == nT - 1)
    def _():
        xpad_ref[TH + 1:TH + 2, PADW:PADW + W, :] = zrow       # image bottom border

    @pl.when(t < nT - 1)
    def _():
        xpad_ref[TH + 1:TH + 2, PADW:PADW + W, :] = bot_ref[0]

    # --- epilogue constants hoisted out of the sub-block loop -----------------------
    scale_v = scale_ref[0]                                     # (1, Cout) f32
    shift_v = shift_ref[0]                                     # (1, Cout) f32

    # --- 3x3 conv over SH-row sub-blocks: 9 shifted windows -> 9 bf16 MXU matmuls ---
    def sub_block(s):
        r0 = pl.multiple_of(s * SH, SH)
        acc = jnp.zeros((SH * W, Cout), jnp.float32)
        for dy in range(3):                                    # unrolled taps
            for dx in range(3):
                patch = xpad_ref[pl.ds(r0 + dy, SH), pl.ds(PADW - 1 + dx, W), :]
                acc = acc + jnp.dot(patch.reshape(SH * W, Cin),
                                    w_ref[0, dy * 3 + dx],
                                    preferred_element_type=jnp.float32)
        # bias / inference-mode BatchNorm affine + activation (f32)
        y = acc * scale_v + shift_v
        if act == "relu":
            y = jnp.maximum(y, 0.0)
        elif act == "tanh":
            y = jnp.tanh(y)
        o_ref[0, pl.ds(r0, SH), :, :] = y.astype(o_ref.dtype).reshape(SH, W, Cout)

    n_sub = TH // SH
    if n_sub == 1:
        sub_block(0)
    else:
        def body(s, carry):
            sub_block(s)
            return carry
        lax.fori_loop(0, n_sub, body, 0)


def _pick_tiles(H, W, tile_h=None, sub_h=None, sub_pixels=256, tile_pixels=16384):
    """Pick (tile_h, sub_h): sub_h*W ~ 256 px register-resident accumulator blocks,
    tile_h*W ~ 16K px grid steps to amortize per-step overhead.  sub_h | tile_h | H."""
    if sub_h is None:
        sub_h = max(1, sub_pixels // max(W, 1))
    sub_h = max(1, min(int(sub_h), H))
    while H % sub_h:
        sub_h -= 1
    if tile_h is None:
        n_sub_total = H // sub_h
        n_sub = max(1, min(n_sub_total, tile_pixels // max(sub_h * W, 1)))
        while n_sub_total % n_sub:
            n_sub -= 1
        tile_h = sub_h * n_sub
    else:
        tile_h = max(1, min(int(tile_h), H))
        while H % tile_h:
            tile_h -= 1
        sub_h = min(sub_h, tile_h)
        while tile_h % sub_h:
            sub_h -= 1
    return tile_h, sub_h


def conv3x3_pallas(x, w9, scale, shift, act, out_dtype=jnp.bfloat16,
                   tile_h=None, sub_h=None):
    """x: (N,H,W,Cin) bf16; w9: (Nw,9,Cin,Cout) bf16; scale/shift: (Ns,1,Cout) f32."""
    N, H, W, Cin = x.shape
    Cout = w9.shape[-1]
    TH, SH = _pick_tiles(H, W, tile_h, sub_h)
    nT = H // TH

    wb = 0 if w9.shape[0] == 1 else 1          # shared vs per-sample weights
    sb = 0 if scale.shape[0] == 1 else 1
    tb = 0 if shift.shape[0] == 1 else 1

    kernel = functools.partial(_conv3x3_kernel, TH=TH, SH=SH, W=W, act=act)
    return pl.pallas_call(
        kernel,
        out_shape=jax.ShapeDtypeStruct((N, H, W, Cout), out_dtype),
        grid=(N, nT),
        in_specs=[
            # main row tile
            pl.BlockSpec((1, TH, W, Cin), lambda b, t: (b, t, 0, 0)),
            # halo row above (clamped into range; zeroed in-kernel at the top border)
            pl.BlockSpec((1, 1, W, Cin),
                         lambda b, t: (b, jnp.maximum(t * TH - 1, 0), 0, 0)),
            # halo row below (clamped; zeroed in-kernel at the bottom border)
            pl.BlockSpec((1, 1, W, Cin),
                         lambda b, t: (b, jnp.minimum(t * TH + TH, H - 1), 0, 0)),
            # weights: constant block index over row tiles -> stays resident in VMEM
            pl.BlockSpec((1, 9, Cin, Cout), lambda b, t: (b * wb, 0, 0, 0)),
            pl.BlockSpec((1, 1, Cout), lambda b, t: (b * sb, 0, 0)),
            pl.BlockSpec((1, 1, Cout), lambda b, t: (b * tb, 0, 0)),
        ],
        out_specs=pl.BlockSpec((1, TH, W, Cout), lambda b, t: (b, t, 0, 0)),
        scratch_shapes=[pltpu.VMEM((TH + 2, W + 2 * PADW, Cin), x.dtype)],
        compiler_params=pltpu.CompilerParams(
            dimension_semantics=("parallel", "parallel"),
            vmem_limit_bytes=32 * 1024 * 1024,
        ),
    )(x, x, x, w9, scale, shift)


# ------------------------- pure-JAX reference conv --------------------------
def conv3x3_ref(x, w9, scale, shift, act, out_dtype=jnp.bfloat16,
                tile_h=None, sub_h=None):
    del tile_h, sub_h
    N, H, W, Cin = x.shape
    Nw, Cout = w9.shape[0], w9.shape[-1]
    w_hwio = w9.reshape(Nw, 3, 3, Cin, Cout)
    dn = ("NHWC", "HWIO", "NHWC")

    def conv(xi, wi):
        return lax.conv_general_dilated(xi, wi, (1, 1), ((1, 1), (1, 1)),
                                        dimension_numbers=dn,
                                        preferred_element_type=jnp.float32)

    if Nw == 1:
        y = conv(x, w_hwio[0])
    else:
        y = jnp.concatenate([conv(x[n:n + 1], w_hwio[n]) for n in range(N)], axis=0)
    y = y * scale[:, None, :, :] + shift[:, None, :, :]
    if act == "relu":
        y = jnp.maximum(y, 0.0)
    elif act == "tanh":
        y = jnp.tanh(y)
    return y.astype(out_dtype)


# --------------------------------- model ------------------------------------
def _oihw_to_w9(w):
    # (B, Cout, Cin, 3, 3) -> (B, 9, Cin, Cout), taps in (dy, dx) row-major order
    B, Cout, Cin = w.shape[:3]
    return jnp.transpose(w, (0, 3, 4, 2, 1)).reshape(B, 9, Cin, Cout)


def _dynamic_agg(x_nhwc, lp):
    """Attention over K kernels + per-sample weight/bias aggregation (tiny JAX glue).

    Canonical Dynamic_conv2d (attention2d: GAP -> 1x1 conv -> ReLU -> 1x1 conv ->
    softmax(logits / temperature)), as used in the DRAN repo.
    """
    pooled = jnp.mean(x_nhwc.astype(jnp.float32), axis=(1, 2))      # (N, Cin)
    h = jnp.maximum(pooled @ lp["att_w1"].T, 0.0)                   # (N, hidden)
    logits = h @ lp["att_w2"].T + lp["att_b2"]                      # (N, K)
    att = jax.nn.softmax(logits / lp["temperature"], axis=-1)       # (N, K)
    K, Cout, Cin = lp["weight"].shape[:3]
    agg_w = (att @ lp["weight"].reshape(K, -1)).reshape(-1, Cout, Cin, 3, 3)
    agg_b = att @ lp["bias"]                                        # (N, Cout)
    return agg_w, agg_b


def forward(x_nchw, params, conv_fn, tile_h=None, sub_h=None):
    feats = params["w_first"].shape[-1]
    ch = params["w_last"].shape[-1]
    # NCHW -> NHWC; activations are carried in bf16 between the fused conv layers.
    x = jnp.transpose(x_nchw, (0, 2, 3, 1)).astype(jnp.bfloat16)

    one_f = jnp.ones((1, 1, feats), jnp.float32)
    zero_f = jnp.zeros((1, 1, feats), jnp.float32)
    # Conv2d(channels -> features, bias=False) + ReLU
    x = conv_fn(x, params["w_first"].astype(jnp.bfloat16), one_f, zero_f,
                "relu", jnp.bfloat16, tile_h, sub_h)

    # (num_of_layers - 2) x [Dynamic_conv2d + BatchNorm2d + ReLU], fused per layer.
    # TODO(synk): BatchNorm2d is evaluated in inference mode (fixed running stats);
    # training-mode batch statistics are not computed.
    for lp in params["dyn_layers"]:
        agg_w, agg_b = _dynamic_agg(x, lp)                 # per-sample weight & bias
        w9 = _oihw_to_w9(agg_w).astype(jnp.bfloat16)       # (N, 9, Cin, Cout)
        bn_scale = lp["bn_gamma"] / jnp.sqrt(lp["bn_var"] + 1e-5)   # (Cout,)
        scale = bn_scale[None, None, :]                    # (1, 1, Cout)
        shift = ((agg_b - lp["bn_mean"]) * bn_scale + lp["bn_beta"])[:, None, :]
        x = conv_fn(x, w9, scale, shift, "relu", jnp.bfloat16, tile_h, sub_h)

    one_c = jnp.ones((1, 1, ch), jnp.float32)
    zero_c = jnp.zeros((1, 1, ch), jnp.float32)
    # Conv2d(features -> channels, bias=False), then torch.tanh
    out = conv_fn(x, params["w_last"].astype(jnp.bfloat16), one_c, zero_c,
                  "tanh", jnp.float32, tile_h, sub_h)
    return jnp.transpose(out, (0, 3, 1, 2))                # NHWC -> NCHW


def init_params(key, channels, num_of_layers=17, features=64, K=4, ratio=0.25,
                temperature=34.0):
    n_dyn = num_of_layers - 2
    hidden = int(features * ratio) + 1
    keys = jax.random.split(key, 2 + 9 * n_dyn)
    ki = iter(range(len(keys)))

    def nrm(shape, std):
        return jax.random.normal(keys[next(ki)], shape, jnp.float32) * std

    w_first = nrm((features, channels, 3, 3), (2.0 / (9 * channels)) ** 0.5)
    w_last = nrm((channels, features, 3, 3), (2.0 / (9 * features)) ** 0.5)
    dyn_layers = []
    for _ in range(n_dyn):
        dyn_layers.append(dict(
            weight=nrm((K, features, features, 3, 3), (2.0 / (9 * features)) ** 0.5),
            bias=nrm((K, features), 0.05),
            att_w1=nrm((hidden, features), (2.0 / features) ** 0.5),
            att_w2=nrm((K, hidden), (2.0 / hidden) ** 0.5),
            att_b2=nrm((K,), 0.1),
            bn_gamma=1.0 + nrm((features,), 0.1),
            bn_beta=nrm((features,), 0.1),
            bn_mean=nrm((features,), 0.1),
            bn_var=1.0 + 0.1 * jnp.abs(nrm((features,), 1.0)),
            temperature=jnp.float32(temperature),
        ))
    return dict(
        w_first=_oihw_to_w9(w_first[None]),    # (1, 9, channels, features)
        w_last=_oihw_to_w9(w_last[None]),      # (1, 9, features, channels)
        dyn_layers=dyn_layers,
    )


if __name__ == "__main__":
    key = jax.random.PRNGKey(0)
    k_x, k_p = jax.random.split(key)
    batch, channels, H, W = 2, 4, 16, 16
    num_of_layers = 5   # small depth for the demo (module default is 17)
    tile_h = 8          # 2 row tiles per image  -> exercises the halo / border logic
    sub_h = 4           # 2 sub-blocks per tile  -> exercises the in-kernel loop

    x = jax.random.normal(k_x, (batch, channels, H, W), jnp.float32)
    params = init_params(k_p, channels, num_of_layers)

    fwd_pallas = jax.jit(functools.partial(forward, conv_fn=conv3x3_pallas,
                                           tile_h=tile_h, sub_h=sub_h))
    out = fwd_pallas(x, params)
    out = jax.block_until_ready(out)

    ref = forward(x, params, conv3x3_ref, tile_h=tile_h, sub_h=sub_h)
    assert out.shape == (batch, channels, H, W), out.shape
    err = float(jnp.max(jnp.abs(out - ref)))
    # bf16 matmul inputs on both paths -> tolerance loosened vs. an f32-only check.
    assert jnp.allclose(out, ref, atol=5e-2, rtol=5e-2), f"max abs err {err}"
    print("KERNEL_OK")
</pallas_src>

<mosaic_0001>
module attributes {stable_mosaic.version = 11 : i64} {
  func.func @_conv3x3_kernel(%arg0: i32, %arg1: i32, %arg2: memref<1x8x16x4xbf16, #tpu.memory_space<vmem>>, %arg3: memref<1x1x16x4xbf16, #tpu.memory_space<vmem>>, %arg4: memref<1x1x16x4xbf16, #tpu.memory_space<vmem>>, %arg5: memref<1x9x4x64xbf16, #tpu.memory_space<vmem>>, %arg6: memref<1x1x64xf32, #tpu.memory_space<vmem>>, %arg7: memref<1x1x64xf32, #tpu.memory_space<vmem>>, %arg8: memref<1x8x16x64xbf16, #tpu.memory_space<vmem>>, %arg9: memref<10x32x4xbf16, #tpu.memory_space<vmem>>) attributes {dimension_semantics = [#tpu.dimension_semantics<parallel>, #tpu.dimension_semantics<parallel>], iteration_bounds = array<i64: 2, 2>, scalar_prefetch = 0 : i64, scratch_operands = 1 : i64, tpu.core_type = #tpu.core_type<tc>, window_params = [{transform_indices = @transform_0, window_bounds = array<i64: 1, 8, 16, 4>}, {transform_indices = @transform_1, window_bounds = array<i64: 1, 1, 16, 4>}, {transform_indices = @transform_2, window_bounds = array<i64: 1, 1, 16, 4>}, {transform_indices = @transform_3, window_bounds = array<i64: 1, 9, 4, 64>}, {transform_indices = @transform_4, window_bounds = array<i64: 1, 1, 64>}, {transform_indices = @transform_5, window_bounds = array<i64: 1, 1, 64>}, {transform_indices = @transform_6, window_bounds = array<i64: 1, 8, 16, 64>}]} {
    %cst = arith.constant 0.000000e+00 : bf16
    %0 = vector.broadcast %cst : bf16 to vector<10x8x4xbf16>
    %c0 = arith.constant 0 : index
    %c0_0 = arith.constant 0 : index
    %c0_1 = arith.constant 0 : index
    %1 = vector.load %arg9[%c0, %c0_0, %c0_1] : memref<10x32x4xbf16, #tpu.memory_space<vmem>>, vector<10x8x4xbf16>
    tpu.vector_store %arg9[%c0, %c0_0, %c0_1], %0 {strides = array<i32>} : memref<10x32x4xbf16, #tpu.memory_space<vmem>>, vector<10x8x4xbf16>,
    %c0_2 = arith.constant 0 : index
    %c24 = arith.constant 24 : index
    %c0_3 = arith.constant 0 : index
    %2 = vector.load %arg9[%c0_2, %c24, %c0_3] : memref<10x32x4xbf16, #tpu.memory_space<vmem>>, vector<10x8x4xbf16>
    tpu.vector_store %arg9[%c0_2, %c24, %c0_3], %0 {strides = array<i32>} : memref<10x32x4xbf16, #tpu.memory_space<vmem>>, vector<10x8x4xbf16>,
    %c0_4 = arith.constant 0 : index
    %c0_5 = arith.constant 0 : index
    %c0_6 = arith.constant 0 : index
    %c0_7 = arith.constant 0 : index
    %3 = vector.load %arg2[%c0_4, %c0_5, %c0_6, %c0_7] : memref<1x8x16x4xbf16, #tpu.memory_space<vmem>>, vector<1x8x16x4xbf16>
    %4 = vector.shape_cast %3 : vector<1x8x16x4xbf16> to vector<8x16x4xbf16>
    %c1 = arith.constant 1 : index
    %c8 = arith.constant 8 : index
    %c0_8 = arith.constant 0 : index
    %5 = vector.load %arg9[%c1, %c8, %c0_8] : memref<10x32x4xbf16, #tpu.memory_space<vmem>>, vector<8x16x4xbf16>
    tpu.vector_store %arg9[%c1, %c8, %c0_8], %4 {strides = array<i32>} : memref<10x32x4xbf16, #tpu.memory_space<vmem>>, vector<8x16x4xbf16>,
    %cst_9 = arith.constant 0.000000e+00 : bf16
    %6 = vector.broadcast %cst_9 : bf16 to vector<1x16x4xbf16>
    %c0_i32 = arith.constant 0 : i32
    %7 = arith.cmpi eq, %arg1, %c0_i32 : i32
    %8 = arith.extui %7 : i1 to i32
    %c0_i32_10 = arith.constant 0 : i32
    %9 = arith.cmpi ne, %8, %c0_i32_10 : i32
    scf.if %9 {
      %c0_25 = arith.constant 0 : index
      %c8_26 = arith.constant 8 : index
      %c0_27 = arith.constant 0 : index
      %24 = vector.load %arg9[%c0_25, %c8_26, %c0_27] : memref<10x32x4xbf16, #tpu.memory_space<vmem>>, vector<1x16x4xbf16>
      tpu.vector_store %arg9[%c0_25, %c8_26, %c0_27], %6 {strides = array<i32>} : memref<10x32x4xbf16, #tpu.memory_space<vmem>>, vector<1x16x4xbf16>,
    } else {
    }
    %c0_i32_11 = arith.constant 0 : i32
    %10 = arith.cmpi sgt, %arg1, %c0_i32_11 : i32
    %11 = arith.extui %10 : i1 to i32
    %c0_i32_12 = arith.constant 0 : i32
    %12 = arith.cmpi ne, %11, %c0_i32_12 : i32
    scf.if %12 {
      %c0_25 = arith.constant 0 : index
      %c0_26 = arith.constant 0 : index
      %c0_27 = arith.constant 0 : index
      %c0_28 = arith.constant 0 : index
      %24 = vector.load %arg3[%c0_25, %c0_26, %c0_27, %c0_28] : memref<1x1x16x4xbf16, #tpu.memory_space<vmem>>, vector<1x1x16x4xbf16>
      %25 = vector.shape_cast %24 : vector<1x1x16x4xbf16> to vector<1x16x4xbf16>
      %c0_29 = arith.constant 0 : index
      %c8_30 = arith.constant 8 : index
      %c0_31 = arith.constant 0 : index
      %26 = vector.load %arg9[%c0_29, %c8_30, %c0_31] : memref<10x32x4xbf16, #tpu.memory_space<vmem>>, vector<1x16x4xbf16>
      tpu.vector_store %arg9[%c0_29, %c8_30, %c0_31], %25 {strides = array<i32>} : memref<10x32x4xbf16, #tpu.memory_space<vmem>>, vector<1x16x4xbf16>,
    } else {
    }
    %c1_i32 = arith.constant 1 : i32
    %13 = arith.cmpi eq, %arg1, %c1_i32 : i32
    %14 = arith.extui %13 : i1 to i32
    %c0_i32_13 = arith.constant 0 : i32
    %15 = arith.cmpi ne, %14, %c0_i32_13 : i32
    scf.if %15 {
      %c9 = arith.constant 9 : index
      %c8_25 = arith.constant 8 : index
      %c0_26 = arith.constant 0 : index
      %24 = vector.load %arg9[%c9, %c8_25, %c0_26] : memref<10x32x4xbf16, #tpu.memory_space<vmem>>, vector<1x16x4xbf16>
      tpu.vector_store %arg9[%c9, %c8_25, %c0_26], %6 {strides = array<i32>} : memref<10x32x4xbf16, #tpu.memory_space<vmem>>, vector<1x16x4xbf16>,
    } else {
    }
    %c1_i32_14 = arith.constant 1 : i32
    %16 = arith.cmpi slt, %arg1, %c1_i32_14 : i32
    %17 = arith.extui %16 : i1 to i32
    %c0_i32_15 = arith.constant 0 : i32
    %18 = arith.cmpi ne, %17, %c0_i32_15 : i32
    scf.if %18 {
      %c0_25 = arith.constant 0 : index
      %c0_26 = arith.constant 0 : index
      %c0_27 = arith.constant 0 : index
      %c0_28 = arith.constant 0 : index
      %24 = vector.load %arg4[%c0_25, %c0_26, %c0_27, %c0_28] : memref<1x1x16x4xbf16, #tpu.memory_space<vmem>>, vector<1x1x16x4xbf16>
      %25 = vector.shape_cast %24 : vector<1x1x16x4xbf16> to vector<1x16x4xbf16>
      %c9 = arith.constant 9 : index
      %c8_29 = arith.constant 8 : index
      %c0_30 = arith.constant 0 : index
      %26 = vector.load %arg9[%c9, %c8_29, %c0_30] : memref<10x32x4xbf16, #tpu.memory_space<vmem>>, vector<1x16x4xbf16>
      tpu.vector_store %arg9[%c9, %c8_29, %c0_30], %25 {strides = array<i32>} : memref<10x32x4xbf16, #tpu.memory_space<vmem>>, vector<1x16x4xbf16>,
    } else {
    }
    %c0_16 = arith.constant 0 : index
    %c0_17 = arith.constant 0 : index
    %c0_18 = arith.constant 0 : index
    %19 = vector.load %arg6[%c0_16, %c0_17, %c0_18] : memref<1x1x64xf32, #tpu.memory_space<vmem>>, vector<1x1x64xf32>
    %20 = vector.shape_cast %19 : vector<1x1x64xf32> to vector<1x64xf32>
    %c0_19 = arith.constant 0 : index
    %c0_20 = arith.constant 0 : index
    %c0_21 = arith.constant 0 : index
    %21 = vector.load %arg7[%c0_19, %c0_20, %c0_21] : memref<1x1x64xf32, #tpu.memory_space<vmem>>, vector<1x1x64xf32>
    %22 = vector.shape_cast %21 : vector<1x1x64xf32> to vector<1x64xf32>
    %c0_i32_22 = arith.constant 0 : i32
    %c2_i32 = arith.constant 2 : i32
    %23 = arith.addi %c0_i32_22, %c2_i32 : i32
    %c1_i32_23 = arith.constant 1 : i32
    scf.for %arg10 = %c0_i32_22 to %23 step %c1_i32_23  : i32 {
      %c4_i32 = arith.constant 4 : i32
      %24 = arith.muli %arg10, %c4_i32 : i32
      %25 = tpu.assume_multiple %24, 4 : i32
      %cst_25 = arith.constant 0.000000e+00 : f32
      %26 = vector.broadcast %cst_25 : f32 to vector<64x64xf32>
      %c0_i32_26 = arith.constant 0 : i32
      %27 = arith.addi %25, %c0_i32_26 : i32
      %28 = arith.index_cast %27 : i32 to index
      %c7 = arith.constant 7 : index
      %c0_27 = arith.constant 0 : index
      %29 = vector.load %arg9[%28, %c7, %c0_27] : memref<10x32x4xbf16, #tpu.memory_space<vmem>>, vector<4x16x4xbf16>
      %30 = vector.shape_cast %29 : vector<4x16x4xbf16> to vector<64x4xbf16>
      %c0_28 = arith.constant 0 : index
      %c0_29 = arith.constant 0 : index
      %c0_30 = arith.constant 0 : index
      %c0_31 = arith.constant 0 : index
      %31 = vector.load %arg5[%c0_28, %c0_29, %c0_30, %c0_31] : memref<1x9x4x64xbf16, #tpu.memory_space<vmem>>, vector<1x1x4x64xbf16>
      %32 = vector.shape_cast %31 : vector<1x1x4x64xbf16> to vector<4x64xbf16>
      %cst_32 = arith.constant dense<0.000000e+00> : vector<64x64xf32>
      %33 = tpu.matmul %30, %32, %cst_32 {dimension_numbers = #tpu.dot_dimension_numbers<[1], [0], [0], [1], [0, 0, 1, 1], [], []>} : vector<64x4xbf16>, vector<4x64xbf16>, vector<64x64xf32> -> vector<64x64xf32>
      %34 = arith.addf %26, %33 : vector<64x64xf32>
      %c0_i32_33 = arith.constant 0 : i32
      %35 = arith.addi %25, %c0_i32_33 : i32
      %36 = arith.index_cast %35 : i32 to index
      %c8_34 = arith.constant 8 : index
      %c0_35 = arith.constant 0 : index
      %37 = vector.load %arg9[%36, %c8_34, %c0_35] : memref<10x32x4xbf16, #tpu.memory_space<vmem>>, vector<4x16x4xbf16>
      %38 = vector.shape_cast %37 : vector<4x16x4xbf16> to vector<64x4xbf16>
      %c0_36 = arith.constant 0 : index
      %c1_37 = arith.constant 1 : index
      %c0_38 = arith.constant 0 : index
      %c0_39 = arith.constant 0 : index
      %39 = vector.load %arg5[%c0_36, %c1_37, %c0_38, %c0_39] : memref<1x9x4x64xbf16, #tpu.memory_space<vmem>>, vector<1x1x4x64xbf16>
      %40 = vector.shape_cast %39 : vector<1x1x4x64xbf16> to vector<4x64xbf16>
      %cst_40 = arith.constant dense<0.000000e+00> : vector<64x64xf32>
      %41 = tpu.matmul %38, %40, %cst_40 {dimension_numbers = #tpu.dot_dimension_numbers<[1], [0], [0], [1], [0, 0, 1, 1], [], []>} : vector<64x4xbf16>, vector<4x64xbf16>, vector<64x64xf32> -> vector<64x64xf32>
      %42 = arith.addf %34, %41 : vector<64x64xf32>
      %c0_i32_41 = arith.constant 0 : i32
      %43 = arith.addi %25, %c0_i32_41 : i32
      %44 = arith.index_cast %43 : i32 to index
      %c9 = arith.constant 9 : index
      %c0_42 = arith.constant 0 : index
      %45 = vector.load %arg9[%44, %c9, %c0_42] : memref<10x32x4xbf16, #tpu.memory_space<vmem>>, vector<4x16x4xbf16>
      %46 = vector.shape_cast %45 : vector<4x16x4xbf16> to vector<64x4xbf16>
      %c0_43 = arith.constant 0 : index
      %c2 = arith.constant 2 : index
      %c0_44 = arith.constant 0 : index
      %c0_45 = arith.constant 0 : index
      %47 = vector.load %arg5[%c0_43, %c2, %c0_44, %c0_45] : memref<1x9x4x64xbf16, #tpu.memory_space<vmem>>, vector<1x1x4x64xbf16>
      %48 = vector.shape_cast %47 : vector<1x1x4x64xbf16> to vector<4x64xbf16>
      %cst_46 = arith.constant dense<0.000000e+00> : vector<64x64xf32>
      %49 = tpu.matmul %46, %48, %cst_46 {dimension_numbers = #tpu.dot_dimension_numbers<[1], [0], [0], [1], [0, 0, 1, 1], [], []>} : vector<64x4xbf16>, vector<4x64xbf16>, vector<64x64xf32> -> vector<64x64xf32>
      %50 = arith.addf %42, %49 : vector<64x64xf32>
      %c1_i32_47 = arith.constant 1 : i32
      %51 = arith.addi %25, %c1_i32_47 : i32
      %52 = arith.index_cast %51 : i32 to index
      %c7_48 = arith.constant 7 : index
      %c0_49 = arith.constant 0 : index
      %53 = vector.load %arg9[%52, %c7_48, %c0_49] : memref<10x32x4xbf16, #tpu.memory_space<vmem>>, vector<4x16x4xbf16>
      %54 = vector.shape_cast %53 : vector<4x16x4xbf16> to vector<64x4xbf16>
      %c0_50 = arith.constant 0 : index
      %c3 = arith.constant 3 : index
      %c0_51 = arith.constant 0 : index
      %c0_52 = arith.constant 0 : index
      %55 = vector.load %arg5[%c0_50, %c3, %c0_51, %c0_52] : memref<1x9x4x64xbf16, #tpu.memory_space<vmem>>, vector<1x1x4x64xbf16>
      %56 = vector.shape_cast %55 : vector<1x1x4x64xbf16> to vector<4x64xbf16>
      %cst_53 = arith.constant dense<0.000000e+00> : vector<64x64xf32>
      %57 = tpu.matmul %54, %56, %cst_53 {dimension_numbers = #tpu.dot_dimension_numbers<[1], [0], [0], [1], [0, 0, 1, 1], [], []>} : vector<64x4xbf16>, vector<4x64xbf16>, vector<64x64xf32> -> vector<64x64xf32>
      %58 = arith.addf %50, %57 : vector<64x64xf32>
      %c1_i32_54 = arith.constant 1 : i32
      %59 = arith.addi %25, %c1_i32_54 : i32
      %60 = arith.index_cast %59 : i32 to index
      %c8_55 = arith.constant 8 : index
      %c0_56 = arith.constant 0 : index
      %61 = vector.load %arg9[%60, %c8_55, %c0_56] : memref<10x32x4xbf16, #tpu.memory_space<vmem>>, vector<4x16x4xbf16>
      %62 = vector.shape_cast %61 : vector<4x16x4xbf16> to vector<64x4xbf16>
      %c0_57 = arith.constant 0 : index
      %c4 = arith.constant 4 : index
      %c0_58 = arith.constant 0 : index
      %c0_59 = arith.constant 0 : index
      %63 = vector.load %arg5[%c0_57, %c4, %c0_58, %c0_59] : memref<1x9x4x64xbf16, #tpu.memory_space<vmem>>, vector<1x1x4x64xbf16>
      %64 = vector.shape_cast %63 : vector<1x1x4x64xbf16> to vector<4x64xbf16>
      %cst_60 = arith.constant dense<0.000000e+00> : vector<64x64xf32>
      %65 = tpu.matmul %62, %64, %cst_60 {dimension_numbers = #tpu.dot_dimension_numbers<[1], [0], [0], [1], [0, 0, 1, 1], [], []>} : vector<64x4xbf16>, vector<4x64xbf16>, vector<64x64xf32> -> vector<64x64xf32>
      %66 = arith.addf %58, %65 : vector<64x64xf32>
      %c1_i32_61 = arith.constant 1 : i32
      %67 = arith.addi %25, %c1_i32_61 : i32
      %68 = arith.index_cast %67 : i32 to index
      %c9_62 = arith.constant 9 : index
      %c0_63 = arith.constant 0 : index
      %69 = vector.load %arg9[%68, %c9_62, %c0_63] : memref<10x32x4xbf16, #tpu.memory_space<vmem>>, vector<4x16x4xbf16>
      %70 = vector.shape_cast %69 : vector<4x16x4xbf16> to vector<64x4xbf16>
      %c0_64 = arith.constant 0 : index
      %c5 = arith.constant 5 : index
      %c0_65 = arith.constant 0 : index
      %c0_66 = arith.constant 0 : index
      %71 = vector.load %arg5[%c0_64, %c5, %c0_65, %c0_66] : memref<1x9x4x64xbf16, #tpu.memory_space<vmem>>, vector<1x1x4x64xbf16>
      %72 = vector.shape_cast %71 : vector<1x1x4x64xbf16> to vector<4x64xbf16>
      %cst_67 = arith.constant dense<0.000000e+00> : vector<64x64xf32>
      %73 = tpu.matmul %70, %72, %cst_67 {dimension_numbers = #tpu.dot_dimension_numbers<[1], [0], [0], [1], [0, 0, 1, 1], [], []>} : vector<64x4xbf16>, vector<4x64xbf16>, vector<64x64xf32> -> vector<64x64xf32>
      %74 = arith.addf %66, %73 : vector<64x64xf32>
      %c2_i32_68 = arith.constant 2 : i32
      %75 = arith.addi %25, %c2_i32_68 : i32
      %76 = arith.index_cast %75 : i32 to index
      %c7_69 = arith.constant 7 : index
      %c0_70 = arith.constant 0 : index
      %77 = vector.load %arg9[%76, %c7_69, %c0_70] : memref<10x32x4xbf16, #tpu.memory_space<vmem>>, vector<4x16x4xbf16>
      %78 = vector.shape_cast %77 : vector<4x16x4xbf16> to vector<64x4xbf16>
      %c0_71 = arith.constant 0 : index
      %c6 = arith.constant 6 : index
      %c0_72 = arith.constant 0 : index
      %c0_73 = arith.constant 0 : index
      %79 = vector.load %arg5[%c0_71, %c6, %c0_72, %c0_73] : memref<1x9x4x64xbf16, #tpu.memory_space<vmem>>, vector<1x1x4x64xbf16>
      %80 = vector.shape_cast %79 : vector<1x1x4x64xbf16> to vector<4x64xbf16>
      %cst_74 = arith.constant dense<0.000000e+00> : vector<64x64xf32>
      %81 = tpu.matmul %78, %80, %cst_74 {dimension_numbers = #tpu.dot_dimension_numbers<[1], [0], [0], [1], [0, 0, 1, 1], [], []>} : vector<64x4xbf16>, vector<4x64xbf16>, vector<64x64xf32> -> vector<64x64xf32>
      %82 = arith.addf %74, %81 : vector<64x64xf32>
      %c2_i32_75 = arith.constant 2 : i32
      %83 = arith.addi %25, %c2_i32_75 : i32
      %84 = arith.index_cast %83 : i32 to index
      %c8_76 = arith.constant 8 : index
      %c0_77 = arith.constant 0 : index
      %85 = vector.load %arg9[%84, %c8_76, %c0_77] : memref<10x32x4xbf16, #tpu.memory_space<vmem>>, vector<4x16x4xbf16>
      %86 = vector.shape_cast %85 : vector<4x16x4xbf16> to vector<64x4xbf16>
      %c0_78 = arith.constant 0 : index
      %c7_79 = arith.constant 7 : index
      %c0_80 = arith.constant 0 : index
      %c0_81 = arith.constant 0 : index
      %87 = vector.load %arg5[%c0_78, %c7_79, %c0_80, %c0_81] : memref<1x9x4x64xbf16, #tpu.memory_space<vmem>>, vector<1x1x4x64xbf16>
      %88 = vector.shape_cast %87 : vector<1x1x4x64xbf16> to vector<4x64xbf16>
      %cst_82 = arith.constant dense<0.000000e+00> : vector<64x64xf32>
      %89 = tpu.matmul %86, %88, %cst_82 {dimension_numbers = #tpu.dot_dimension_numbers<[1], [0], [0], [1], [0, 0, 1, 1], [], []>} : vector<64x4xbf16>, vector<4x64xbf16>, vector<64x64xf32> -> vector<64x64xf32>
      %90 = arith.addf %82, %89 : vector<64x64xf32>
      %c2_i32_83 = arith.constant 2 : i32
      %91 = arith.addi %25, %c2_i32_83 : i32
      %92 = arith.index_cast %91 : i32 to index
      %c9_84 = arith.constant 9 : index
      %c0_85 = arith.constant 0 : index
      %93 = vector.load %arg9[%92, %c9_84, %c0_85] : memref<10x32x4xbf16, #tpu.memory_space<vmem>>, vector<4x16x4xbf16>
      %94 = vector.shape_cast %93 : vector<4x16x4xbf16> to vector<64x4xbf16>
      %c0_86 = arith.constant 0 : index
      %c8_87 = arith.constant 8 : index
      %c0_88 = arith.constant 0 : index
      %c0_89 = arith.constant 0 : index
      %95 = vector.load %arg5[%c0_86, %c8_87, %c0_88, %c0_89] : memref<1x9x4x64xbf16, #tpu.memory_space<vmem>>, vector<1x1x4x64xbf16>
      %96 = vector.shape_cast %95 : vector<1x1x4x64xbf16> to vector<4x64xbf16>
      %cst_90 = arith.constant dense<0.000000e+00> : vector<64x64xf32>
      %97 = tpu.matmul %94, %96, %cst_90 {dimension_numbers = #tpu.dot_dimension_numbers<[1], [0], [0], [1], [0, 0, 1, 1], [], []>} : vector<64x4xbf16>, vector<4x64xbf16>, vector<64x64xf32> -> vector<64x64xf32>
      %98 = arith.addf %90, %97 : vector<64x64xf32>
      %99 = vector.broadcast %20 : vector<1x64xf32> to vector<64x64xf32>
      %100 = arith.mulf %98, %99 : vector<64x64xf32>
      %101 = vector.broadcast %22 : vector<1x64xf32> to vector<64x64xf32>
      %102 = arith.addf %100, %101 : vector<64x64xf32>
      %cst_91 = arith.constant 0.000000e+00 : f32
      %103 = vector.broadcast %cst_91 : f32 to vector<64x64xf32>
      %104 = arith.maximumf %102, %103 : vector<64x64xf32>
      %105 = arith.truncf %104 : vector<64x64xf32> to vector<64x64xbf16>
      %106 = vector.shape_cast %105 : vector<64x64xbf16> to vector<4x16x64xbf16>
      %c0_92 = arith.constant 0 : index
      %107 = arith.index_cast %25 : i32 to index
      %c0_93 = arith.constant 0 : index
      %c0_94 = arith.constant 0 : index
      %108 = vector.load %arg8[%c0_92, %107, %c0_93, %c0_94] : memref<1x8x16x64xbf16, #tpu.memory_space<vmem>>, vector<1x4x16x64xbf16>
      %109 = vector.shape_cast %108 : vector<1x4x16x64xbf16> to vector<4x16x64xbf16>
      %110 = vector.shape_cast %106 : vector<4x16x64xbf16> to vector<1x4x16x64xbf16>
      tpu.vector_store %arg8[%c0_92, %107, %c0_93, %c0_94], %110 {strides = array<i32>} : memref<1x8x16x64xbf16, #tpu.memory_space<vmem>>, vector<1x4x16x64xbf16>,
    }
    %c2_i32_24 = arith.constant 2 : i32
    return
  }
  func.func @transform_0(%arg0: i32, %arg1: i32) -> (i32, i32, i32, i32) {
    %c0_i32 = arith.constant 0 : i32
    %c0_i32_0 = arith.constant 0 : i32
    %c0_i32_1 = arith.constant 0 : i32
    return %arg0, %arg1, %c0_i32, %c0_i32_0 : i32, i32, i32, i32
  }
  func.func @transform_1(%arg0: i32, %arg1: i32) -> (i32, i32, i32, i32) {
    %c8_i32 = arith.constant 8 : i32
    %0 = arith.muli %arg1, %c8_i32 : i32
    %c1_i32 = arith.constant 1 : i32
    %1 = arith.subi %0, %c1_i32 : i32
    %c0_i32 = arith.constant 0 : i32
    %2 = arith.maxsi %1, %c0_i32 : i32
    %c0_i32_0 = arith.constant 0 : i32
    %c0_i32_1 = arith.constant 0 : i32
    %c0_i32_2 = arith.constant 0 : i32
    return %arg0, %2, %c0_i32_0, %c0_i32_1 : i32, i32, i32, i32
  }
  func.func @transform_2(%arg0: i32, %arg1: i32) -> (i32, i32, i32, i32) {
    %c8_i32 = arith.constant 8 : i32
    %0 = arith.muli %arg1, %c8_i32 : i32
    %c8_i32_0 = arith.constant 8 : i32
    %1 = arith.addi %0, %c8_i32_0 : i32
    %c15_i32 = arith.constant 15 : i32
    %2 = arith.minsi %1, %c15_i32 : i32
    %c0_i32 = arith.constant 0 : i32
    %c0_i32_1 = arith.constant 0 : i32
    %c0_i32_2 = arith.constant 0 : i32
    return %arg0, %2, %c0_i32, %c0_i32_1 : i32, i32, i32, i32
  }
  func.func @transform_3(%arg0: i32, %arg1: i32) -> (i32, i32, i32, i32) {
    %c0_i32 = arith.constant 0 : i32
    %0 = arith.muli %arg0, %c0_i32 : i32
    %c0_i32_0 = arith.constant 0 : i32
    %c0_i32_1 = arith.constant 0 : i32
    %c0_i32_2 = arith.constant 0 : i32
    %c0_i32_3 = arith.constant 0 : i32
    return %0, %c0_i32_0, %c0_i32_1, %c0_i32_2 : i32, i32, i32, i32
  }
  func.func @transform_4(%arg0: i32, %arg1: i32) -> (i32, i32, i32) {
    %c0_i32 = arith.constant 0 : i32
    %0 = arith.muli %arg0, %c0_i32 : i32
    %c0_i32_0 = arith.constant 0 : i32
    %c0_i32_1 = arith.constant 0 : i32
    %c0_i32_2 = arith.constant 0 : i32
    return %0, %c0_i32_0, %c0_i32_1 : i32, i32, i32
  }
  func.func @transform_5(%arg0: i32, %arg1: i32) -> (i32, i32, i32) {
    %c0_i32 = arith.constant 0 : i32
    %0 = arith.muli %arg0, %c0_i32 : i32
    %c0_i32_0 = arith.constant 0 : i32
    %c0_i32_1 = arith.constant 0 : i32
    %c0_i32_2 = arith.constant 0 : i32
    return %0, %c0_i32_0, %c0_i32_1 : i32, i32, i32
  }
  func.func @transform_6(%arg0: i32, %arg1: i32) -> (i32, i32, i32, i32) {
    %c0_i32 = arith.constant 0 : i32
    %c0_i32_0 = arith.constant 0 : i32
    %c0_i32_1 = arith.constant 0 : i32
    return %arg0, %arg1, %c0_i32, %c0_i32_0 : i32, i32, i32, i32
  }
}

module attributes {stable_mosaic.version = 11 : i64} {
  func.func @_conv3x3_kernel(%arg0: i32, %arg1: i32, %arg2: memref<1x8x16x64xbf16, #tpu.memory_space<vmem>>, %arg3: memref<1x1x16x64xbf16, #tpu.memory_space<vmem>>, %arg4: memref<1x1x16x64xbf16, #tpu.memory_space<vmem>>, %arg5: memref<1x9x64x64xbf16, #tpu.memory_space<vmem>>, %arg6: memref<1x1x64xf32, #tpu.memory_space<vmem>>, %arg7: memref<1x1x64xf32, #tpu.memory_space<vmem>>, %arg8: memref<1x8x16x64xbf16, #tpu.memory_space<vmem>>, %arg9: memref<10x32x64xbf16, #tpu.memory_space<vmem>>) attributes {dimension_semantics = [#tpu.dimension_semantics<parallel>, #tpu.dimension_semantics<parallel>], iteration_bounds = array<i64: 2, 2>, scalar_prefetch = 0 : i64, scratch_operands = 1 : i64, tpu.core_type = #tpu.core_type<tc>, window_params = [{transform_indices = @transform_0, window_bounds = array<i64: 1, 8, 16, 64>}, {transform_indices = @transform_1, window_bounds = array<i64: 1, 1, 16, 64>}, {transform_indices = @transform_2, window_bounds = array<i64: 1, 1, 16, 64>}, {transform_indices = @transform_3, window_bounds = array<i64: 1, 9, 64, 64>}, {transform_indices = @transform_4, window_bounds = array<i64: 1, 1, 64>}, {transform_indices = @transform_5, window_bounds = array<i64: 1, 1, 64>}, {transform_indices = @transform_6, window_bounds = array<i64: 1, 8, 16, 64>}]} {
    %cst = arith.constant 0.000000e+00 : bf16
    %0 = vector.broadcast %cst : bf16 to vector<10x8x64xbf16>
    %c0 = arith.constant 0 : index
    %c0_0 = arith.constant 0 : index
    %c0_1 = arith.constant 0 : index
    %1 = vector.load %arg9[%c0, %c0_0, %c0_1] : memref<10x32x64xbf16, #tpu.memory_space<vmem>>, vector<10x8x64xbf16>
    tpu.vector_store %arg9[%c0, %c0_0, %c0_1], %0 {strides = array<i32>} : memref<10x32x64xbf16, #tpu.memory_space<vmem>>, vector<10x8x64xbf16>,
    %c0_2 = arith.constant 0 : index
    %c24 = arith.constant 24 : index
    %c0_3 = arith.constant 0 : index
    %2 = vector.load %arg9[%c0_2, %c24, %c0_3] : memref<10x32x64xbf16, #tpu.memory_space<vmem>>, vector<10x8x64xbf16>
    tpu.vector_store %arg9[%c0_2, %c24, %c0_3], %0 {strides = array<i32>} : memref<10x32x64xbf16, #tpu.memory_space<vmem>>, vector<10x8x64xbf16>,
    %c0_4 = arith.constant 0 : index
    %c0_5 = arith.constant 0 : index
    %c0_6 = arith.constant 0 : index
    %c0_7 = arith.constant 0 : index
    %3 = vector.load %arg2[%c0_4, %c0_5, %c0_6, %c0_7] : memref<1x8x16x64xbf16, #tpu.memory_space<vmem>>, vector<1x8x16x64xbf16>
    %4 = vector.shape_cast %3 : vector<1x8x16x64xbf16> to vector<8x16x64xbf16>
    %c1 = arith.constant 1 : index
    %c8 = arith.constant 8 : index
    %c0_8 = arith.constant 0 : index
    %5 = vector.load %arg9[%c1, %c8, %c0_8] : memref<10x32x64xbf16, #tpu.memory_space<vmem>>, vector<8x16x64xbf16>
    tpu.vector_store %arg9[%c1, %c8, %c0_8], %4 {strides = array<i32>} : memref<10x32x64xbf16, #tpu.memory_space<vmem>>, vector<8x16x64xbf16>,
    %cst_9 = arith.constant 0.000000e+00 : bf16
    %6 = vector.broadcast %cst_9 : bf16 to vector<1x16x64xbf16>
    %c0_i32 = arith.constant 0 : i32
    %7 = arith.cmpi eq, %arg1, %c0_i32 : i32
    %8 = arith.extui %7 : i1 to i32
    %c0_i32_10 = arith.constant 0 : i32
    %9 = arith.cmpi ne, %8, %c0_i32_10 : i32
    scf.if %9 {
      %c0_25 = arith.constant 0 : index
      %c8_26 = arith.constant 8 : index
      %c0_27 = arith.constant 0 : index
      %24 = vector.load %arg9[%c0_25, %c8_26, %c0_27] : memref<10x32x64xbf16, #tpu.memory_space<vmem>>, vector<1x16x64xbf16>
      tpu.vector_store %arg9[%c0_25, %c8_26, %c0_27], %6 {strides = array<i32>} : memref<10x32x64xbf16, #tpu.memory_space<vmem>>, vector<1x16x64xbf16>,
    } else {
    }
    %c0_i32_11 = arith.constant 0 : i32
    %10 = arith.cmpi sgt, %arg1, %c0_i32_11 : i32
    %11 = arith.extui %10 : i1 to i32
    %c0_i32_12 = arith.constant 0 : i32
    %12 = arith.cmpi ne, %11, %c0_i32_12 : i32
    scf.if %12 {
      %c0_25 = arith.constant 0 : index
      %c0_26 = arith.constant 0 : index
      %c0_27 = arith.constant 0 : index
      %c0_28 = arith.constant 0 : index
      %24 = vector.load %arg3[%c0_25, %c0_26, %c0_27, %c0_28] : memref<1x1x16x64xbf16, #tpu.memory_space<vmem>>, vector<1x1x16x64xbf16>
      %25 = vector.shape_cast %24 : vector<1x1x16x64xbf16> to vector<1x16x64xbf16>
      %c0_29 = arith.constant 0 : index
      %c8_30 = arith.constant 8 : index
      %c0_31 = arith.constant 0 : index
      %26 = vector.load %arg9[%c0_29, %c8_30, %c0_31] : memref<10x32x64xbf16, #tpu.memory_space<vmem>>, vector<1x16x64xbf16>
      tpu.vector_store %arg9[%c0_29, %c8_30, %c0_31], %25 {strides = array<i32>} : memref<10x32x64xbf16, #tpu.memory_space<vmem>>, vector<1x16x64xbf16>,
    } else {
    }
    %c1_i32 = arith.constant 1 : i32
    %13 = arith.cmpi eq, %arg1, %c1_i32 : i32
    %14 = arith.extui %13 : i1 to i32
    %c0_i32_13 = arith.constant 0 : i32
    %15 = arith.cmpi ne, %14, %c0_i32_13 : i32
    scf.if %15 {
      %c9 = arith.constant 9 : index
      %c8_25 = arith.constant 8 : index
      %c0_26 = arith.constant 0 : index
      %24 = vector.load %arg9[%c9, %c8_25, %c0_26] : memref<10x32x64xbf16, #tpu.memory_space<vmem>>, vector<1x16x64xbf16>
      tpu.vector_store %arg9[%c9, %c8_25, %c0_26], %6 {strides = array<i32>} : memref<10x32x64xbf16, #tpu.memory_space<vmem>>, vector<1x16x64xbf16>,
    } else {
    }
    %c1_i32_14 = arith.constant 1 : i32
    %16 = arith.cmpi slt, %arg1, %c1_i32_14 : i32
    %17 = arith.extui %16 : i1 to i32
    %c0_i32_15 = arith.constant 0 : i32
    %18 = arith.cmpi ne, %17, %c0_i32_15 : i32
    scf.if %18 {
      %c0_25 = arith.constant 0 : index
      %c0_26 = arith.constant 0 : index
      %c0_27 = arith.constant 0 : index
      %c0_28 = arith.constant 0 : index
      %24 = vector.load %arg4[%c0_25, %c0_26, %c0_27, %c0_28] : memref<1x1x16x64xbf16, #tpu.memory_space<vmem>>, vector<1x1x16x64xbf16>
      %25 = vector.shape_cast %24 : vector<1x1x16x64xbf16> to vector<1x16x64xbf16>
      %c9 = arith.constant 9 : index
      %c8_29 = arith.constant 8 : index
      %c0_30 = arith.constant 0 : index
      %26 = vector.load %arg9[%c9, %c8_29, %c0_30] : memref<10x32x64xbf16, #tpu.memory_space<vmem>>, vector<1x16x64xbf16>
      tpu.vector_store %arg9[%c9, %c8_29, %c0_30], %25 {strides = array<i32>} : memref<10x32x64xbf16, #tpu.memory_space<vmem>>, vector<1x16x64xbf16>,
    } else {
    }
    %c0_16 = arith.constant 0 : index
    %c0_17 = arith.constant 0 : index
    %c0_18 = arith.constant 0 : index
    %19 = vector.load %arg6[%c0_16, %c0_17, %c0_18] : memref<1x1x64xf32, #tpu.memory_space<vmem>>, vector<1x1x64xf32>
    %20 = vector.shape_cast %19 : vector<1x1x64xf32> to vector<1x64xf32>
    %c0_19 = arith.constant 0 : index
    %c0_20 = arith.constant 0 : index
    %c0_21 = arith.constant 0 : index
    %21 = vector.load %arg7[%c0_19, %c0_20, %c0_21] : memref<1x1x64xf32, #tpu.memory_space<vmem>>, vector<1x1x64xf32>
    %22 = vector.shape_cast %21 : vector<1x1x64xf32> to vector<1x64xf32>
    %c0_i32_22 = arith.constant 0 : i32
    %c2_i32 = arith.constant 2 : i32
    %23 = arith.addi %c0_i32_22, %c2_i32 : i32
    %c1_i32_23 = arith.constant 1 : i32
    scf.for %arg10 = %c0_i32_22 to %23 step %c1_i32_23  : i32 {
      %c4_i32 = arith.constant 4 : i32
      %24 = arith.muli %arg10, %c4_i32 : i32
      %25 = tpu.assume_multiple %24, 4 : i32
      %cst_25 = arith.constant 0.000000e+00 : f32
      %26 = vector.broadcast %cst_25 : f32 to vector<64x64xf32>
      %c0_i32_26 = arith.constant 0 : i32
      %27 = arith.addi %25, %c0_i32_26 : i32
      %28 = arith.index_cast %27 : i32 to index
      %c7 = arith.constant 7 : index
      %c0_27 = arith.constant 0 : index
      %29 = vector.load %arg9[%28, %c7, %c0_27] : memref<10x32x64xbf16, #tpu.memory_space<vmem>>, vector<4x16x64xbf16>
      %30 = vector.shape_cast %29 : vector<4x16x64xbf16> to vector<64x64xbf16>
      %c0_28 = arith.constant 0 : index
      %c0_29 = arith.constant 0 : index
      %c0_30 = arith.constant 0 : index
      %c0_31 = arith.constant 0 : index
      %31 = vector.load %arg5[%c0_28, %c0_29, %c0_30, %c0_31] : memref<1x9x64x64xbf16, #tpu.memory_space<vmem>>, vector<1x1x64x64xbf16>
      %32 = vector.shape_cast %31 : vector<1x1x64x64xbf16> to vector<64x64xbf16>
      %cst_32 = arith.constant dense<0.000000e+00> : vector<64x64xf32>
      %33 = tpu.matmul %30, %32, %cst_32 {dimension_numbers = #tpu.dot_dimension_numbers<[1], [0], [0], [1], [0, 0, 1, 1], [], []>} : vector<64x64xbf16>, vector<64x64xbf16>, vector<64x64xf32> -> vector<64x64xf32>
      %34 = arith.addf %26, %33 : vector<64x64xf32>
      %c0_i32_33 = arith.constant 0 : i32
      %35 = arith.addi %25, %c0_i32_33 : i32
      %36 = arith.index_cast %35 : i32 to index
      %c8_34 = arith.constant 8 : index
      %c0_35 = arith.constant 0 : index
      %37 = vector.load %arg9[%36, %c8_34, %c0_35] : memref<10x32x64xbf16, #tpu.memory_space<vmem>>, vector<4x16x64xbf16>
      %38 = vector.shape_cast %37 : vector<4x16x64xbf16> to vector<64x64xbf16>
      %c0_36 = arith.constant 0 : index
      %c1_37 = arith.constant 1 : index
      %c0_38 = arith.constant 0 : index
      %c0_39 = arith.constant 0 : index
      %39 = vector.load %arg5[%c0_36, %c1_37, %c0_38, %c0_39] : memref<1x9x64x64xbf16, #tpu.memory_space<vmem>>, vector<1x1x64x64xbf16>
      %40 = vector.shape_cast %39 : vector<1x1x64x64xbf16> to vector<64x64xbf16>
      %cst_40 = arith.constant dense<0.000000e+00> : vector<64x64xf32>
      %41 = tpu.matmul %38, %40, %cst_40 {dimension_numbers = #tpu.dot_dimension_numbers<[1], [0], [0], [1], [0, 0, 1, 1], [], []>} : vector<64x64xbf16>, vector<64x64xbf16>, vector<64x64xf32> -> vector<64x64xf32>
      %42 = arith.addf %34, %41 : vector<64x64xf32>
      %c0_i32_41 = arith.constant 0 : i32
      %43 = arith.addi %25, %c0_i32_41 : i32
      %44 = arith.index_cast %43 : i32 to index
      %c9 = arith.constant 9 : index
      %c0_42 = arith.constant 0 : index
      %45 = vector.load %arg9[%44, %c9, %c0_42] : memref<10x32x64xbf16, #tpu.memory_space<vmem>>, vector<4x16x64xbf16>
      %46 = vector.shape_cast %45 : vector<4x16x64xbf16> to vector<64x64xbf16>
      %c0_43 = arith.constant 0 : index
      %c2 = arith.constant 2 : index
      %c0_44 = arith.constant 0 : index
      %c0_45 = arith.constant 0 : index
      %47 = vector.load %arg5[%c0_43, %c2, %c0_44, %c0_45] : memref<1x9x64x64xbf16, #tpu.memory_space<vmem>>, vector<1x1x64x64xbf16>
      %48 = vector.shape_cast %47 : vector<1x1x64x64xbf16> to vector<64x64xbf16>
      %cst_46 = arith.constant dense<0.000000e+00> : vector<64x64xf32>
      %49 = tpu.matmul %46, %48, %cst_46 {dimension_numbers = #tpu.dot_dimension_numbers<[1], [0], [0], [1], [0, 0, 1, 1], [], []>} : vector<64x64xbf16>, vector<64x64xbf16>, vector<64x64xf32> -> vector<64x64xf32>
      %50 = arith.addf %42, %49 : vector<64x64xf32>
      %c1_i32_47 = arith.constant 1 : i32
      %51 = arith.addi %25, %c1_i32_47 : i32
      %52 = arith.index_cast %51 : i32 to index
      %c7_48 = arith.constant 7 : index
      %c0_49 = arith.constant 0 : index
      %53 = vector.load %arg9[%52, %c7_48, %c0_49] : memref<10x32x64xbf16, #tpu.memory_space<vmem>>, vector<4x16x64xbf16>
      %54 = vector.shape_cast %53 : vector<4x16x64xbf16> to vector<64x64xbf16>
      %c0_50 = arith.constant 0 : index
      %c3 = arith.constant 3 : index
      %c0_51 = arith.constant 0 : index
      %c0_52 = arith.constant 0 : index
      %55 = vector.load %arg5[%c0_50, %c3, %c0_51, %c0_52] : memref<1x9x64x64xbf16, #tpu.memory_space<vmem>>, vector<1x1x64x64xbf16>
      %56 = vector.shape_cast %55 : vector<1x1x64x64xbf16> to vector<64x64xbf16>
      %cst_53 = arith.constant dense<0.000000e+00> : vector<64x64xf32>
      %57 = tpu.matmul %54, %56, %cst_53 {dimension_numbers = #tpu.dot_dimension_numbers<[1], [0], [0], [1], [0, 0, 1, 1], [], []>} : vector<64x64xbf16>, vector<64x64xbf16>, vector<64x64xf32> -> vector<64x64xf32>
      %58 = arith.addf %50, %57 : vector<64x64xf32>
      %c1_i32_54 = arith.constant 1 : i32
      %59 = arith.addi %25, %c1_i32_54 : i32
      %60 = arith.index_cast %59 : i32 to index
      %c8_55 = arith.constant 8 : index
      %c0_56 = arith.constant 0 : index
      %61 = vector.load %arg9[%60, %c8_55, %c0_56] : memref<10x32x64xbf16, #tpu.memory_space<vmem>>, vector<4x16x64xbf16>
      %62 = vector.shape_cast %61 : vector<4x16x64xbf16> to vector<64x64xbf16>
      %c0_57 = arith.constant 0 : index
      %c4 = arith.constant 4 : index
      %c0_58 = arith.constant 0 : index
      %c0_59 = arith.constant 0 : index
      %63 = vector.load %arg5[%c0_57, %c4, %c0_58, %c0_59] : memref<1x9x64x64xbf16, #tpu.memory_space<vmem>>, vector<1x1x64x64xbf16>
      %64 = vector.shape_cast %63 : vector<1x1x64x64xbf16> to vector<64x64xbf16>
      %cst_60 = arith.constant dense<0.000000e+00> : vector<64x64xf32>
      %65 = tpu.matmul %62, %64, %cst_60 {dimension_numbers = #tpu.dot_dimension_numbers<[1], [0], [0], [1], [0, 0, 1, 1], [], []>} : vector<64x64xbf16>, vector<64x64xbf16>, vector<64x64xf32> -> vector<64x64xf32>
      %66 = arith.addf %58, %65 : vector<64x64xf32>
      %c1_i32_61 = arith.constant 1 : i32
      %67 = arith.addi %25, %c1_i32_61 : i32
      %68 = arith.index_cast %67 : i32 to index
      %c9_62 = arith.constant 9 : index
      %c0_63 = arith.constant 0 : index
      %69 = vector.load %arg9[%68, %c9_62, %c0_63] : memref<10x32x64xbf16, #tpu.memory_space<vmem>>, vector<4x16x64xbf16>
      %70 = vector.shape_cast %69 : vector<4x16x64xbf16> to vector<64x64xbf16>
      %c0_64 = arith.constant 0 : index
      %c5 = arith.constant 5 : index
      %c0_65 = arith.constant 0 : index
      %c0_66 = arith.constant 0 : index
      %71 = vector.load %arg5[%c0_64, %c5, %c0_65, %c0_66] : memref<1x9x64x64xbf16, #tpu.memory_space<vmem>>, vector<1x1x64x64xbf16>
      %72 = vector.shape_cast %71 : vector<1x1x64x64xbf16> to vector<64x64xbf16>
      %cst_67 = arith.constant dense<0.000000e+00> : vector<64x64xf32>
      %73 = tpu.matmul %70, %72, %cst_67 {dimension_numbers = #tpu.dot_dimension_numbers<[1], [0], [0], [1], [0, 0, 1, 1], [], []>} : vector<64x64xbf16>, vector<64x64xbf16>, vector<64x64xf32> -> vector<64x64xf32>
      %74 = arith.addf %66, %73 : vector<64x64xf32>
      %c2_i32_68 = arith.constant 2 : i32
      %75 = arith.addi %25, %c2_i32_68 : i32
      %76 = arith.index_cast %75 : i32 to index
      %c7_69 = arith.constant 7 : index
      %c0_70 = arith.constant 0 : index
      %77 = vector.load %arg9[%76, %c7_69, %c0_70] : memref<10x32x64xbf16, #tpu.memory_space<vmem>>, vector<4x16x64xbf16>
      %78 = vector.shape_cast %77 : vector<4x16x64xbf16> to vector<64x64xbf16>
      %c0_71 = arith.constant 0 : index
      %c6 = arith.constant 6 : index
      %c0_72 = arith.constant 0 : index
      %c0_73 = arith.constant 0 : index
      %79 = vector.load %arg5[%c0_71, %c6, %c0_72, %c0_73] : memref<1x9x64x64xbf16, #tpu.memory_space<vmem>>, vector<1x1x64x64xbf16>
      %80 = vector.shape_cast %79 : vector<1x1x64x64xbf16> to vector<64x64xbf16>
      %cst_74 = arith.constant dense<0.000000e+00> : vector<64x64xf32>
      %81 = tpu.matmul %78, %80, %cst_74 {dimension_numbers = #tpu.dot_dimension_numbers<[1], [0], [0], [1], [0, 0, 1, 1], [], []>} : vector<64x64xbf16>, vector<64x64xbf16>, vector<64x64xf32> -> vector<64x64xf32>
      %82 = arith.addf %74, %81 : vector<64x64xf32>
      %c2_i32_75 = arith.constant 2 : i32
      %83 = arith.addi %25, %c2_i32_75 : i32
      %84 = arith.index_cast %83 : i32 to index
      %c8_76 = arith.constant 8 : index
      %c0_77 = arith.constant 0 : index
      %85 = vector.load %arg9[%84, %c8_76, %c0_77] : memref<10x32x64xbf16, #tpu.memory_space<vmem>>, vector<4x16x64xbf16>
      %86 = vector.shape_cast %85 : vector<4x16x64xbf16> to vector<64x64xbf16>
      %c0_78 = arith.constant 0 : index
      %c7_79 = arith.constant 7 : index
      %c0_80 = arith.constant 0 : index
      %c0_81 = arith.constant 0 : index
      %87 = vector.load %arg5[%c0_78, %c7_79, %c0_80, %c0_81] : memref<1x9x64x64xbf16, #tpu.memory_space<vmem>>, vector<1x1x64x64xbf16>
      %88 = vector.shape_cast %87 : vector<1x1x64x64xbf16> to vector<64x64xbf16>
      %cst_82 = arith.constant dense<0.000000e+00> : vector<64x64xf32>
      %89 = tpu.matmul %86, %88, %cst_82 {dimension_numbers = #tpu.dot_dimension_numbers<[1], [0], [0], [1], [0, 0, 1, 1], [], []>} : vector<64x64xbf16>, vector<64x64xbf16>, vector<64x64xf32> -> vector<64x64xf32>
      %90 = arith.addf %82, %89 : vector<64x64xf32>
      %c2_i32_83 = arith.constant 2 : i32
      %91 = arith.addi %25, %c2_i32_83 : i32
      %92 = arith.index_cast %91 : i32 to index
      %c9_84 = arith.constant 9 : index
      %c0_85 = arith.constant 0 : index
      %93 = vector.load %arg9[%92, %c9_84, %c0_85] : memref<10x32x64xbf16, #tpu.memory_space<vmem>>, vector<4x16x64xbf16>
      %94 = vector.shape_cast %93 : vector<4x16x64xbf16> to vector<64x64xbf16>
      %c0_86 = arith.constant 0 : index
      %c8_87 = arith.constant 8 : index
      %c0_88 = arith.constant 0 : index
      %c0_89 = arith.constant 0 : index
      %95 = vector.load %arg5[%c0_86, %c8_87, %c0_88, %c0_89] : memref<1x9x64x64xbf16, #tpu.memory_space<vmem>>, vector<1x1x64x64xbf16>
      %96 = vector.shape_cast %95 : vector<1x1x64x64xbf16> to vector<64x64xbf16>
      %cst_90 = arith.constant dense<0.000000e+00> : vector<64x64xf32>
      %97 = tpu.matmul %94, %96, %cst_90 {dimension_numbers = #tpu.dot_dimension_numbers<[1], [0], [0], [1], [0, 0, 1, 1], [], []>} : vector<64x64xbf16>, vector<64x64xbf16>, vector<64x64xf32> -> vector<64x64xf32>
      %98 = arith.addf %90, %97 : vector<64x64xf32>
      %99 = vector.broadcast %20 : vector<1x64xf32> to vector<64x64xf32>
      %100 = arith.mulf %98, %99 : vector<64x64xf32>
      %101 = vector.broadcast %22 : vector<1x64xf32> to vector<64x64xf32>
      %102 = arith.addf %100, %101 : vector<64x64xf32>
      %cst_91 = arith.constant 0.000000e+00 : f32
      %103 = vector.broadcast %cst_91 : f32 to vector<64x64xf32>
      %104 = arith.maximumf %102, %103 : vector<64x64xf32>
      %105 = arith.truncf %104 : vector<64x64xf32> to vector<64x64xbf16>
      %106 = vector.shape_cast %105 : vector<64x64xbf16> to vector<4x16x64xbf16>
      %c0_92 = arith.constant 0 : index
      %107 = arith.index_cast %25 : i32 to index
      %c0_93 = arith.constant 0 : index
      %c0_94 = arith.constant 0 : index
      %108 = vector.load %arg8[%c0_92, %107, %c0_93, %c0_94] : memref<1x8x16x64xbf16, #tpu.memory_space<vmem>>, vector<1x4x16x64xbf16>
      %109 = vector.shape_cast %108 : vector<1x4x16x64xbf16> to vector<4x16x64xbf16>
      %110 = vector.shape_cast %106 : vector<4x16x64xbf16> to vector<1x4x16x64xbf16>
      tpu.vector_store %arg8[%c0_92, %107, %c0_93, %c0_94], %110 {strides = array<i32>} : memref<1x8x16x64xbf16, #tpu.memory_space<vmem>>, vector<1x4x16x64xbf16>,
    }
    %c2_i32_24 = arith.constant 2 : i32
    return
  }
  func.func @transform_0(%arg0: i32, %arg1: i32) -> (i32, i32, i32, i32) {
    %c0_i32 = arith.constant 0 : i32
    %c0_i32_0 = arith.constant 0 : i32
    %c0_i32_1 = arith.constant 0 : i32
    return %arg0, %arg1, %c0_i32, %c0_i32_0 : i32, i32, i32, i32
  }
  func.func @transform_1(%arg0: i32, %arg1: i32) -> (i32, i32, i32, i32) {
    %c8_i32 = arith.constant 8 : i32
    %0 = arith.muli %arg1, %c8_i32 : i32
    %c1_i32 = arith.constant 1 : i32
    %1 = arith.subi %0, %c1_i32 : i32
    %c0_i32 = arith.constant 0 : i32
    %2 = arith.maxsi %1, %c0_i32 : i32
    %c0_i32_0 = arith.constant 0 : i32
    %c0_i32_1 = arith.constant 0 : i32
    %c0_i32_2 = arith.constant 0 : i32
    return %arg0, %2, %c0_i32_0, %c0_i32_1 : i32, i32, i32, i32
  }
  func.func @transform_2(%arg0: i32, %arg1: i32) -> (i32, i32, i32, i32) {
    %c8_i32 = arith.constant 8 : i32
    %0 = arith.muli %arg1, %c8_i32 : i32
    %c8_i32_0 = arith.constant 8 : i32
    %1 = arith.addi %0, %c8_i32_0 : i32
    %c15_i32 = arith.constant 15 : i32
    %2 = arith.minsi %1, %c15_i32 : i32
    %c0_i32 = arith.constant 0 : i32
    %c0_i32_1 = arith.constant 0 : i32
    %c0_i32_2 = arith.constant 0 : i32
    return %arg0, %2, %c0_i32, %c0_i32_1 : i32, i32, i32, i32
  }
  func.func @transform_3(%arg0: i32, %arg1: i32) -> (i32, i32, i32, i32) {
    %c1_i32 = arith.constant 1 : i32
    %0 = arith.muli %arg0, %c1_i32 : i32
    %c0_i32 = arith.constant 0 : i32
    %c0_i32_0 = arith.constant 0 : i32
    %c0_i32_1 = arith.constant 0 : i32
    %c0_i32_2 = arith.constant 0 : i32
    return %0, %c0_i32, %c0_i32_0, %c0_i32_1 : i32, i32, i32, i32
  }
  func.func @transform_4(%arg0: i32, %arg1: i32) -> (i32, i32, i32) {
    %c0_i32 = arith.constant 0 : i32
    %0 = arith.muli %arg0, %c0_i32 : i32
    %c0_i32_0 = arith.constant 0 : i32
    %c0_i32_1 = arith.constant 0 : i32
    %c0_i32_2 = arith.constant 0 : i32
    return %0, %c0_i32_0, %c0_i32_1 : i32, i32, i32
  }
  func.func @transform_5(%arg0: i32, %arg1: i32) -> (i32, i32, i32) {
    %c1_i32 = arith.constant 1 : i32
    %0 = arith.muli %arg0, %c1_i32 : i32
    %c0_i32 = arith.constant 0 : i32
    %c0_i32_0 = arith.constant 0 : i32
    %c0_i32_1 = arith.constant 0 : i32
    return %0, %c0_i32, %c0_i32_0 : i32, i32, i32
  }
  func.func @transform_6(%arg0: i32, %arg1: i32) -> (i32, i32, i32, i32) {
    %c0_i32 = arith.constant 0 : i32
    %c0_i32_0 = arith.constant 0 : i32
    %c0_i32_1 = arith.constant 0 : i32
    return %arg0, %arg1, %c0_i32, %c0_i32_0 : i32, i32, i32, i32
  }
}

module attributes {stable_mosaic.version = 11 : i64} {
  func.func @_conv3x3_kernel(%arg0: i32, %arg1: i32, %arg2: memref<1x8x16x64xbf16, #tpu.memory_space<vmem>>, %arg3: memref<1x1x16x64xbf16, #tpu.memory_space<vmem>>, %arg4: memref<1x1x16x64xbf16, #tpu.memory_space<vmem>>, %arg5: memref<1x9x64x4xbf16, #tpu.memory_space<vmem>>, %arg6: memref<1x1x4xf32, #tpu.memory_space<vmem>>, %arg7: memref<1x1x4xf32, #tpu.memory_space<vmem>>, %arg8: memref<1x8x16x4xf32, #tpu.memory_space<vmem>>, %arg9: memref<10x32x64xbf16, #tpu.memory_space<vmem>>) attributes {dimension_semantics = [#tpu.dimension_semantics<parallel>, #tpu.dimension_semantics<parallel>], iteration_bounds = array<i64: 2, 2>, scalar_prefetch = 0 : i64, scratch_operands = 1 : i64, tpu.core_type = #tpu.core_type<tc>, window_params = [{transform_indices = @transform_0, window_bounds = array<i64: 1, 8, 16, 64>}, {transform_indices = @transform_1, window_bounds = array<i64: 1, 1, 16, 64>}, {transform_indices = @transform_2, window_bounds = array<i64: 1, 1, 16, 64>}, {transform_indices = @transform_3, window_bounds = array<i64: 1, 9, 64, 4>}, {transform_indices = @transform_4, window_bounds = array<i64: 1, 1, 4>}, {transform_indices = @transform_5, window_bounds = array<i64: 1, 1, 4>}, {transform_indices = @transform_6, window_bounds = array<i64: 1, 8, 16, 4>}]} {
    %cst = arith.constant 0.000000e+00 : bf16
    %0 = vector.broadcast %cst : bf16 to vector<10x8x64xbf16>
    %c0 = arith.constant 0 : index
    %c0_0 = arith.constant 0 : index
    %c0_1 = arith.constant 0 : index
    %1 = vector.load %arg9[%c0, %c0_0, %c0_1] : memref<10x32x64xbf16, #tpu.memory_space<vmem>>, vector<10x8x64xbf16>
    tpu.vector_store %arg9[%c0, %c0_0, %c0_1], %0 {strides = array<i32>} : memref<10x32x64xbf16, #tpu.memory_space<vmem>>, vector<10x8x64xbf16>,
    %c0_2 = arith.constant 0 : index
    %c24 = arith.constant 24 : index
    %c0_3 = arith.constant 0 : index
    %2 = vector.load %arg9[%c0_2, %c24, %c0_3] : memref<10x32x64xbf16, #tpu.memory_space<vmem>>, vector<10x8x64xbf16>
    tpu.vector_store %arg9[%c0_2, %c24, %c0_3], %0 {strides = array<i32>} : memref<10x32x64xbf16, #tpu.memory_space<vmem>>, vector<10x8x64xbf16>,
    %c0_4 = arith.constant 0 : index
    %c0_5 = arith.constant 0 : index
    %c0_6 = arith.constant 0 : index
    %c0_7 = arith.constant 0 : index
    %3 = vector.load %arg2[%c0_4, %c0_5, %c0_6, %c0_7] : memref<1x8x16x64xbf16, #tpu.memory_space<vmem>>, vector<1x8x16x64xbf16>
    %4 = vector.shape_cast %3 : vector<1x8x16x64xbf16> to vector<8x16x64xbf16>
    %c1 = arith.constant 1 : index
    %c8 = arith.constant 8 : index
    %c0_8 = arith.constant 0 : index
    %5 = vector.load %arg9[%c1, %c8, %c0_8] : memref<10x32x64xbf16, #tpu.memory_space<vmem>>, vector<8x16x64xbf16>
    tpu.vector_store %arg9[%c1, %c8, %c0_8], %4 {strides = array<i32>} : memref<10x32x64xbf16, #tpu.memory_space<vmem>>, vector<8x16x64xbf16>,
    %cst_9 = arith.constant 0.000000e+00 : bf16
    %6 = vector.broadcast %cst_9 : bf16 to vector<1x16x64xbf16>
    %c0_i32 = arith.constant 0 : i32
    %7 = arith.cmpi eq, %arg1, %c0_i32 : i32
    %8 = arith.extui %7 : i1 to i32
    %c0_i32_10 = arith.constant 0 : i32
    %9 = arith.cmpi ne, %8, %c0_i32_10 : i32
    scf.if %9 {
      %c0_25 = arith.constant 0 : index
      %c8_26 = arith.constant 8 : index
      %c0_27 = arith.constant 0 : index
      %24 = vector.load %arg9[%c0_25, %c8_26, %c0_27] : memref<10x32x64xbf16, #tpu.memory_space<vmem>>, vector<1x16x64xbf16>
      tpu.vector_store %arg9[%c0_25, %c8_26, %c0_27], %6 {strides = array<i32>} : memref<10x32x64xbf16, #tpu.memory_space<vmem>>, vector<1x16x64xbf16>,
    } else {
    }
    %c0_i32_11 = arith.constant 0 : i32
    %10 = arith.cmpi sgt, %arg1, %c0_i32_11 : i32
    %11 = arith.extui %10 : i1 to i32
    %c0_i32_12 = arith.constant 0 : i32
    %12 = arith.cmpi ne, %11, %c0_i32_12 : i32
    scf.if %12 {
      %c0_25 = arith.constant 0 : index
      %c0_26 = arith.constant 0 : index
      %c0_27 = arith.constant 0 : index
      %c0_28 = arith.constant 0 : index
      %24 = vector.load %arg3[%c0_25, %c0_26, %c0_27, %c0_28] : memref<1x1x16x64xbf16, #tpu.memory_space<vmem>>, vector<1x1x16x64xbf16>
      %25 = vector.shape_cast %24 : vector<1x1x16x64xbf16> to vector<1x16x64xbf16>
      %c0_29 = arith.constant 0 : index
      %c8_30 = arith.constant 8 : index
      %c0_31 = arith.constant 0 : index
      %26 = vector.load %arg9[%c0_29, %c8_30, %c0_31] : memref<10x32x64xbf16, #tpu.memory_space<vmem>>, vector<1x16x64xbf16>
      tpu.vector_store %arg9[%c0_29, %c8_30, %c0_31], %25 {strides = array<i32>} : memref<10x32x64xbf16, #tpu.memory_space<vmem>>, vector<1x16x64xbf16>,
    } else {
    }
    %c1_i32 = arith.constant 1 : i32
    %13 = arith.cmpi eq, %arg1, %c1_i32 : i32
    %14 = arith.extui %13 : i1 to i32
    %c0_i32_13 = arith.constant 0 : i32
    %15 = arith.cmpi ne, %14, %c0_i32_13 : i32
    scf.if %15 {
      %c9 = arith.constant 9 : index
      %c8_25 = arith.constant 8 : index
      %c0_26 = arith.constant 0 : index
      %24 = vector.load %arg9[%c9, %c8_25, %c0_26] : memref<10x32x64xbf16, #tpu.memory_space<vmem>>, vector<1x16x64xbf16>
      tpu.vector_store %arg9[%c9, %c8_25, %c0_26], %6 {strides = array<i32>} : memref<10x32x64xbf16, #tpu.memory_space<vmem>>, vector<1x16x64xbf16>,
    } else {
    }
    %c1_i32_14 = arith.constant 1 : i32
    %16 = arith.cmpi slt, %arg1, %c1_i32_14 : i32
    %17 = arith.extui %16 : i1 to i32
    %c0_i32_15 = arith.constant 0 : i32
    %18 = arith.cmpi ne, %17, %c0_i32_15 : i32
    scf.if %18 {
      %c0_25 = arith.constant 0 : index
      %c0_26 = arith.constant 0 : index
      %c0_27 = arith.constant 0 : index
      %c0_28 = arith.constant 0 : index
      %24 = vector.load %arg4[%c0_25, %c0_26, %c0_27, %c0_28] : memref<1x1x16x64xbf16, #tpu.memory_space<vmem>>, vector<1x1x16x64xbf16>
      %25 = vector.shape_cast %24 : vector<1x1x16x64xbf16> to vector<1x16x64xbf16>
      %c9 = arith.constant 9 : index
      %c8_29 = arith.constant 8 : index
      %c0_30 = arith.constant 0 : index
      %26 = vector.load %arg9[%c9, %c8_29, %c0_30] : memref<10x32x64xbf16, #tpu.memory_space<vmem>>, vector<1x16x64xbf16>
      tpu.vector_store %arg9[%c9, %c8_29, %c0_30], %25 {strides = array<i32>} : memref<10x32x64xbf16, #tpu.memory_space<vmem>>, vector<1x16x64xbf16>,
    } else {
    }
    %c0_16 = arith.constant 0 : index
    %c0_17 = arith.constant 0 : index
    %c0_18 = arith.constant 0 : index
    %19 = vector.load %arg6[%c0_16, %c0_17, %c0_18] : memref<1x1x4xf32, #tpu.memory_space<vmem>>, vector<1x1x4xf32>
    %20 = vector.shape_cast %19 : vector<1x1x4xf32> to vector<1x4xf32>
    %c0_19 = arith.constant 0 : index
    %c0_20 = arith.constant 0 : index
    %c0_21 = arith.constant 0 : index
    %21 = vector.load %arg7[%c0_19, %c0_20, %c0_21] : memref<1x1x4xf32, #tpu.memory_space<vmem>>, vector<1x1x4xf32>
    %22 = vector.shape_cast %21 : vector<1x1x4xf32> to vector<1x4xf32>
    %c0_i32_22 = arith.constant 0 : i32
    %c2_i32 = arith.constant 2 : i32
    %23 = arith.addi %c0_i32_22, %c2_i32 : i32
    %c1_i32_23 = arith.constant 1 : i32
    scf.for %arg10 = %c0_i32_22 to %23 step %c1_i32_23  : i32 {
      %c4_i32 = arith.constant 4 : i32
      %24 = arith.muli %arg10, %c4_i32 : i32
      %25 = tpu.assume_multiple %24, 4 : i32
      %cst_25 = arith.constant 0.000000e+00 : f32
      %26 = vector.broadcast %cst_25 : f32 to vector<64x4xf32>
      %c0_i32_26 = arith.constant 0 : i32
      %27 = arith.addi %25, %c0_i32_26 : i32
      %28 = arith.index_cast %27 : i32 to index
      %c7 = arith.constant 7 : index
      %c0_27 = arith.constant 0 : index
      %29 = vector.load %arg9[%28, %c7, %c0_27] : memref<10x32x64xbf16, #tpu.memory_space<vmem>>, vector<4x16x64xbf16>
      %30 = vector.shape_cast %29 : vector<4x16x64xbf16> to vector<64x64xbf16>
      %c0_28 = arith.constant 0 : index
      %c0_29 = arith.constant 0 : index
      %c0_30 = arith.constant 0 : index
      %c0_31 = arith.constant 0 : index
      %31 = vector.load %arg5[%c0_28, %c0_29, %c0_30, %c0_31] : memref<1x9x64x4xbf16, #tpu.memory_space<vmem>>, vector<1x1x64x4xbf16>
      %32 = vector.shape_cast %31 : vector<1x1x64x4xbf16> to vector<64x4xbf16>
      %cst_32 = arith.constant dense<0.000000e+00> : vector<64x4xf32>
      %33 = tpu.matmul %30, %32, %cst_32 {dimension_numbers = #tpu.dot_dimension_numbers<[1], [0], [0], [1], [0, 0, 1, 1], [], []>} : vector<64x64xbf16>, vector<64x4xbf16>, vector<64x4xf32> -> vector<64x4xf32>
      %34 = arith.addf %26, %33 : vector<64x4xf32>
      %c0_i32_33 = arith.constant 0 : i32
      %35 = arith.addi %25, %c0_i32_33 : i32
      %36 = arith.index_cast %35 : i32 to index
      %c8_34 = arith.constant 8 : index
      %c0_35 = arith.constant 0 : index
      %37 = vector.load %arg9[%36, %c8_34, %c0_35] : memref<10x32x64xbf16, #tpu.memory_space<vmem>>, vector<4x16x64xbf16>
      %38 = vector.shape_cast %37 : vector<4x16x64xbf16> to vector<64x64xbf16>
      %c0_36 = arith.constant 0 : index
      %c1_37 = arith.constant 1 : index
      %c0_38 = arith.constant 0 : index
      %c0_39 = arith.constant 0 : index
      %39 = vector.load %arg5[%c0_36, %c1_37, %c0_38, %c0_39] : memref<1x9x64x4xbf16, #tpu.memory_space<vmem>>, vector<1x1x64x4xbf16>
      %40 = vector.shape_cast %39 : vector<1x1x64x4xbf16> to vector<64x4xbf16>
      %cst_40 = arith.constant dense<0.000000e+00> : vector<64x4xf32>
      %41 = tpu.matmul %38, %40, %cst_40 {dimension_numbers = #tpu.dot_dimension_numbers<[1], [0], [0], [1], [0, 0, 1, 1], [], []>} : vector<64x64xbf16>, vector<64x4xbf16>, vector<64x4xf32> -> vector<64x4xf32>
      %42 = arith.addf %34, %41 : vector<64x4xf32>
      %c0_i32_41 = arith.constant 0 : i32
      %43 = arith.addi %25, %c0_i32_41 : i32
      %44 = arith.index_cast %43 : i32 to index
      %c9 = arith.constant 9 : index
      %c0_42 = arith.constant 0 : index
      %45 = vector.load %arg9[%44, %c9, %c0_42] : memref<10x32x64xbf16, #tpu.memory_space<vmem>>, vector<4x16x64xbf16>
      %46 = vector.shape_cast %45 : vector<4x16x64xbf16> to vector<64x64xbf16>
      %c0_43 = arith.constant 0 : index
      %c2 = arith.constant 2 : index
      %c0_44 = arith.constant 0 : index
      %c0_45 = arith.constant 0 : index
      %47 = vector.load %arg5[%c0_43, %c2, %c0_44, %c0_45] : memref<1x9x64x4xbf16, #tpu.memory_space<vmem>>, vector<1x1x64x4xbf16>
      %48 = vector.shape_cast %47 : vector<1x1x64x4xbf16> to vector<64x4xbf16>
      %cst_46 = arith.constant dense<0.000000e+00> : vector<64x4xf32>
      %49 = tpu.matmul %46, %48, %cst_46 {dimension_numbers = #tpu.dot_dimension_numbers<[1], [0], [0], [1], [0, 0, 1, 1], [], []>} : vector<64x64xbf16>, vector<64x4xbf16>, vector<64x4xf32> -> vector<64x4xf32>
      %50 = arith.addf %42, %49 : vector<64x4xf32>
      %c1_i32_47 = arith.constant 1 : i32
      %51 = arith.addi %25, %c1_i32_47 : i32
      %52 = arith.index_cast %51 : i32 to index
      %c7_48 = arith.constant 7 : index
      %c0_49 = arith.constant 0 : index
      %53 = vector.load %arg9[%52, %c7_48, %c0_49] : memref<10x32x64xbf16, #tpu.memory_space<vmem>>, vector<4x16x64xbf16>
      %54 = vector.shape_cast %53 : vector<4x16x64xbf16> to vector<64x64xbf16>
      %c0_50 = arith.constant 0 : index
      %c3 = arith.constant 3 : index
      %c0_51 = arith.constant 0 : index
      %c0_52 = arith.constant 0 : index
      %55 = vector.load %arg5[%c0_50, %c3, %c0_51, %c0_52] : memref<1x9x64x4xbf16, #tpu.memory_space<vmem>>, vector<1x1x64x4xbf16>
      %56 = vector.shape_cast %55 : vector<1x1x64x4xbf16> to vector<64x4xbf16>
      %cst_53 = arith.constant dense<0.000000e+00> : vector<64x4xf32>
      %57 = tpu.matmul %54, %56, %cst_53 {dimension_numbers = #tpu.dot_dimension_numbers<[1], [0], [0], [1], [0, 0, 1, 1], [], []>} : vector<64x64xbf16>, vector<64x4xbf16>, vector<64x4xf32> -> vector<64x4xf32>
      %58 = arith.addf %50, %57 : vector<64x4xf32>
      %c1_i32_54 = arith.constant 1 : i32
      %59 = arith.addi %25, %c1_i32_54 : i32
      %60 = arith.index_cast %59 : i32 to index
      %c8_55 = arith.constant 8 : index
      %c0_56 = arith.constant 0 : index
      %61 = vector.load %arg9[%60, %c8_55, %c0_56] : memref<10x32x64xbf16, #tpu.memory_space<vmem>>, vector<4x16x64xbf16>
      %62 = vector.shape_cast %61 : vector<4x16x64xbf16> to vector<64x64xbf16>
      %c0_57 = arith.constant 0 : index
      %c4 = arith.constant 4 : index
      %c0_58 = arith.constant 0 : index
      %c0_59 = arith.constant 0 : index
      %63 = vector.load %arg5[%c0_57, %c4, %c0_58, %c0_59] : memref<1x9x64x4xbf16, #tpu.memory_space<vmem>>, vector<1x1x64x4xbf16>
      %64 = vector.shape_cast %63 : vector<1x1x64x4xbf16> to vector<64x4xbf16>
      %cst_60 = arith.constant dense<0.000000e+00> : vector<64x4xf32>
      %65 = tpu.matmul %62, %64, %cst_60 {dimension_numbers = #tpu.dot_dimension_numbers<[1], [0], [0], [1], [0, 0, 1, 1], [], []>} : vector<64x64xbf16>, vector<64x4xbf16>, vector<64x4xf32> -> vector<64x4xf32>
      %66 = arith.addf %58, %65 : vector<64x4xf32>
      %c1_i32_61 = arith.constant 1 : i32
      %67 = arith.addi %25, %c1_i32_61 : i32
      %68 = arith.index_cast %67 : i32 to index
      %c9_62 = arith.constant 9 : index
      %c0_63 = arith.constant 0 : index
      %69 = vector.load %arg9[%68, %c9_62, %c0_63] : memref<10x32x64xbf16, #tpu.memory_space<vmem>>, vector<4x16x64xbf16>
      %70 = vector.shape_cast %69 : vector<4x16x64xbf16> to vector<64x64xbf16>
      %c0_64 = arith.constant 0 : index
      %c5 = arith.constant 5 : index
      %c0_65 = arith.constant 0 : index
      %c0_66 = arith.constant 0 : index
      %71 = vector.load %arg5[%c0_64, %c5, %c0_65, %c0_66] : memref<1x9x64x4xbf16, #tpu.memory_space<vmem>>, vector<1x1x64x4xbf16>
      %72 = vector.shape_cast %71 : vector<1x1x64x4xbf16> to vector<64x4xbf16>
      %cst_67 = arith.constant dense<0.000000e+00> : vector<64x4xf32>
      %73 = tpu.matmul %70, %72, %cst_67 {dimension_numbers = #tpu.dot_dimension_numbers<[1], [0], [0], [1], [0, 0, 1, 1], [], []>} : vector<64x64xbf16>, vector<64x4xbf16>, vector<64x4xf32> -> vector<64x4xf32>
      %74 = arith.addf %66, %73 : vector<64x4xf32>
      %c2_i32_68 = arith.constant 2 : i32
      %75 = arith.addi %25, %c2_i32_68 : i32
      %76 = arith.index_cast %75 : i32 to index
      %c7_69 = arith.constant 7 : index
      %c0_70 = arith.constant 0 : index
      %77 = vector.load %arg9[%76, %c7_69, %c0_70] : memref<10x32x64xbf16, #tpu.memory_space<vmem>>, vector<4x16x64xbf16>
      %78 = vector.shape_cast %77 : vector<4x16x64xbf16> to vector<64x64xbf16>
      %c0_71 = arith.constant 0 : index
      %c6 = arith.constant 6 : index
      %c0_72 = arith.constant 0 : index
      %c0_73 = arith.constant 0 : index
      %79 = vector.load %arg5[%c0_71, %c6, %c0_72, %c0_73] : memref<1x9x64x4xbf16, #tpu.memory_space<vmem>>, vector<1x1x64x4xbf16>
      %80 = vector.shape_cast %79 : vector<1x1x64x4xbf16> to vector<64x4xbf16>
      %cst_74 = arith.constant dense<0.000000e+00> : vector<64x4xf32>
      %81 = tpu.matmul %78, %80, %cst_74 {dimension_numbers = #tpu.dot_dimension_numbers<[1], [0], [0], [1], [0, 0, 1, 1], [], []>} : vector<64x64xbf16>, vector<64x4xbf16>, vector<64x4xf32> -> vector<64x4xf32>
      %82 = arith.addf %74, %81 : vector<64x4xf32>
      %c2_i32_75 = arith.constant 2 : i32
      %83 = arith.addi %25, %c2_i32_75 : i32
      %84 = arith.index_cast %83 : i32 to index
      %c8_76 = arith.constant 8 : index
      %c0_77 = arith.constant 0 : index
      %85 = vector.load %arg9[%84, %c8_76, %c0_77] : memref<10x32x64xbf16, #tpu.memory_space<vmem>>, vector<4x16x64xbf16>
      %86 = vector.shape_cast %85 : vector<4x16x64xbf16> to vector<64x64xbf16>
      %c0_78 = arith.constant 0 : index
      %c7_79 = arith.constant 7 : index
      %c0_80 = arith.constant 0 : index
      %c0_81 = arith.constant 0 : index
      %87 = vector.load %arg5[%c0_78, %c7_79, %c0_80, %c0_81] : memref<1x9x64x4xbf16, #tpu.memory_space<vmem>>, vector<1x1x64x4xbf16>
      %88 = vector.shape_cast %87 : vector<1x1x64x4xbf16> to vector<64x4xbf16>
      %cst_82 = arith.constant dense<0.000000e+00> : vector<64x4xf32>
      %89 = tpu.matmul %86, %88, %cst_82 {dimension_numbers = #tpu.dot_dimension_numbers<[1], [0], [0], [1], [0, 0, 1, 1], [], []>} : vector<64x64xbf16>, vector<64x4xbf16>, vector<64x4xf32> -> vector<64x4xf32>
      %90 = arith.addf %82, %89 : vector<64x4xf32>
      %c2_i32_83 = arith.constant 2 : i32
      %91 = arith.addi %25, %c2_i32_83 : i32
      %92 = arith.index_cast %91 : i32 to index
      %c9_84 = arith.constant 9 : index
      %c0_85 = arith.constant 0 : index
      %93 = vector.load %arg9[%92, %c9_84, %c0_85] : memref<10x32x64xbf16, #tpu.memory_space<vmem>>, vector<4x16x64xbf16>
      %94 = vector.shape_cast %93 : vector<4x16x64xbf16> to vector<64x64xbf16>
      %c0_86 = arith.constant 0 : index
      %c8_87 = arith.constant 8 : index
      %c0_88 = arith.constant 0 : index
      %c0_89 = arith.constant 0 : index
      %95 = vector.load %arg5[%c0_86, %c8_87, %c0_88, %c0_89] : memref<1x9x64x4xbf16, #tpu.memory_space<vmem>>, vector<1x1x64x4xbf16>
      %96 = vector.shape_cast %95 : vector<1x1x64x4xbf16> to vector<64x4xbf16>
      %cst_90 = arith.constant dense<0.000000e+00> : vector<64x4xf32>
      %97 = tpu.matmul %94, %96, %cst_90 {dimension_numbers = #tpu.dot_dimension_numbers<[1], [0], [0], [1], [0, 0, 1, 1], [], []>} : vector<64x64xbf16>, vector<64x4xbf16>, vector<64x4xf32> -> vector<64x4xf32>
      %98 = arith.addf %90, %97 : vector<64x4xf32>
      %99 = vector.broadcast %20 : vector<1x4xf32> to vector<64x4xf32>
      %100 = arith.mulf %98, %99 : vector<64x4xf32>
      %101 = vector.broadcast %22 : vector<1x4xf32> to vector<64x4xf32>
      %102 = arith.addf %100, %101 : vector<64x4xf32>
      %103 = math.tanh %102 : vector<64x4xf32>
      %104 = vector.shape_cast %103 : vector<64x4xf32> to vector<4x16x4xf32>
      %c0_91 = arith.constant 0 : index
      %105 = arith.index_cast %25 : i32 to index
      %c0_92 = arith.constant 0 : index
      %c0_93 = arith.constant 0 : index
      %106 = vector.load %arg8[%c0_91, %105, %c0_92, %c0_93] : memref<1x8x16x4xf32, #tpu.memory_space<vmem>>, vector<1x4x16x4xf32>
      %107 = vector.shape_cast %106 : vector<1x4x16x4xf32> to vector<4x16x4xf32>
      %108 = vector.shape_cast %104 : vector<4x16x4xf32> to vector<1x4x16x4xf32>
      tpu.vector_store %arg8[%c0_91, %105, %c0_92, %c0_93], %108 {strides = array<i32>} : memref<1x8x16x4xf32, #tpu.memory_space<vmem>>, vector<1x4x16x4xf32>,
    }
    %c2_i32_24 = arith.constant 2 : i32
    return
  }
  func.func @transform_0(%arg0: i32, %arg1: i32) -> (i32, i32, i32, i32) {
    %c0_i32 = arith.constant 0 : i32
    %c0_i32_0 = arith.constant 0 : i32
    %c0_i32_1 = arith.constant 0 : i32
    return %arg0, %arg1, %c0_i32, %c0_i32_0 : i32, i32, i32, i32
  }
  func.func @transform_1(%arg0: i32, %arg1: i32) -> (i32, i32, i32, i32) {
    %c8_i32 = arith.constant 8 : i32
    %0 = arith.muli %arg1, %c8_i32 : i32
    %c1_i32 = arith.constant 1 : i32
    %1 = arith.subi %0, %c1_i32 : i32
    %c0_i32 = arith.constant 0 : i32
    %2 = arith.maxsi %1, %c0_i32 : i32
    %c0_i32_0 = arith.constant 0 : i32
    %c0_i32_1 = arith.constant 0 : i32
    %c0_i32_2 = arith.constant 0 : i32
    return %arg0, %2, %c0_i32_0, %c0_i32_1 : i32, i32, i32, i32
  }
  func.func @transform_2(%arg0: i32, %arg1: i32) -> (i32, i32, i32, i32) {
    %c8_i32 = arith.constant 8 : i32
    %0 = arith.muli %arg1, %c8_i32 : i32
    %c8_i32_0 = arith.constant 8 : i32
    %1 = arith.addi %0, %c8_i32_0 : i32
    %c15_i32 = arith.constant 15 : i32
    %2 = arith.minsi %1, %c15_i32 : i32
    %c0_i32 = arith.constant 0 : i32
    %c0_i32_1 = arith.constant 0 : i32
    %c0_i32_2 = arith.constant 0 : i32
    return %arg0, %2, %c0_i32, %c0_i32_1 : i32, i32, i32, i32
  }
  func.func @transform_3(%arg0: i32, %arg1: i32) -> (i32, i32, i32, i32) {
    %c0_i32 = arith.constant 0 : i32
    %0 = arith.muli %arg0, %c0_i32 : i32
    %c0_i32_0 = arith.constant 0 : i32
    %c0_i32_1 = arith.constant 0 : i32
    %c0_i32_2 = arith.constant 0 : i32
    %c0_i32_3 = arith.constant 0 : i32
    return %0, %c0_i32_0, %c0_i32_1, %c0_i32_2 : i32, i32, i32, i32
  }
  func.func @transform_4(%arg0: i32, %arg1: i32) -> (i32, i32, i32) {
    %c0_i32 = arith.constant 0 : i32
    %0 = arith.muli %arg0, %c0_i32 : i32
    %c0_i32_0 = arith.constant 0 : i32
    %c0_i32_1 = arith.constant 0 : i32
    %c0_i32_2 = arith.constant 0 : i32
    return %0, %c0_i32_0, %c0_i32_1 : i32, i32, i32
  }
  func.func @transform_5(%arg0: i32, %arg1: i32) -> (i32, i32, i32) {
    %c0_i32 = arith.constant 0 : i32
    %0 = arith.muli %arg0, %c0_i32 : i32
    %c0_i32_0 = arith.constant 0 : i32
    %c0_i32_1 = arith.constant 0 : i32
    %c0_i32_2 = arith.constant 0 : i32
    return %0, %c0_i32_0, %c0_i32_1 : i32, i32, i32
  }
  func.func @transform_6(%arg0: i32, %arg1: i32) -> (i32, i32, i32, i32) {
    %c0_i32 = arith.constant 0 : i32
    %c0_i32_0 = arith.constant 0 : i32
    %c0_i32_1 = arith.constant 0 : i32
    return %arg0, %arg1, %c0_i32, %c0_i32_0 : i32, i32, i32, i32
  }
}

</mosaic_0001>

<bundles_post_ra>
// kernel: forward.5
= control target key start
LH: loop header
LB: loop body
LE: loop exit
PB: predicated region body
PF: predicated region fallthrough
CT: control target
= control target key end

     0   :  { %s2696_s21 = smov 0   ;;  %s2698_s22 = smov 0   ;;  %s3229_s0 = inlined_call_operand.vmem [shape: bf16[2,16,16,4], index: 0, kind: input, shape index: {}, may-alias: {0,1,2}]   ;;  %s3230_s1 = inlined_call_operand.vmem [shape: bf16[2,16,16,4], index: 1, kind: input, shape index: {}, may-alias: {0,1,2}]   ;;  %s3231_s2 = inlined_call_operand.vmem [shape: bf16[2,16,16,4], index: 2, kind: input, shape index: {}, may-alias: {0,1,2}]   ;;  %s3232_s3 = inlined_call_operand.vmem [shape: bf16[1,9,4,64], index: 3, kind: input, shape index: {}]   ;;  %s3233_s4 = inlined_call_operand.vmem [shape: f32[1,1,64], index: 4, kind: input, shape index: {}]   ;;  %s3234_s5 = inlined_call_operand.vmem [shape: f32[1,1,64], index: 5, kind: input, shape index: {}]   ;;  %s3235_s6 = inlined_call_operand.vmem [shape: bf16[2,16,16,64], index: 6, kind: output, shape index: {}]  }
   0x1   :  { %s2700_s23 = smov 0   ;;  %s2702_s24 = smov 0  }
   0x2   :  { %s2704_s25 = smov 0  }
   0x3 LB: > { %s25_s26 = sadd.s32 1, %s2644_s23  ;;  %s28_s27 = sadd.s32 1, %s2648_s24  ;;  %s2652_s25 = sphi %s2704_s25, %s16_s25   ;;  %s2648_s24 = sphi %s2702_s24, %s3240_s24   ;;  %s2644_s23 = sphi %s2700_s23, %s3239_s23   ;;  %s2640_s22 = sphi %s2698_s22, %s3238_s22   ;;  %s2636_s21 = sphi %s2696_s21, %s3237_s21  }
   0x4   : > { %p26_p0 = scmp.ge.s32.totalorder %s25_s26, 2  ;;  %p2167_p1 = scmp.ge.s32.totalorder %s2652_s25, 1 }
   0x5   : > { %p298_p2 = scmp.lt.s32.totalorder %s2652_s25, 5 }
   0x6   : > { %s3242_s26 = smov (%p26_p0, %s25_s26), 0  ;;  %s3244_s27 = smov (!%p26_p0, %s28_s27), %s2648_s24 }
   0x7   : > { %p299_p3 = pnand %p2167_p1, %p298_p2  ;;  %p30_p4 = scmp.ge.s32.totalorder %s3244_s27, 2 }
   0x8   : > { %vm421_vm0 = vcmask (!%p299_p3), 27648   ;;  %vm432_vm1 = vcmask (!%p299_p3), 31748   ;;  %s2731_s28 = sshll.u32 (!%p299_p3), %s2636_s21, 3  ;;  %p365_p5 = scmp.lt.s32.totalorder (!%p299_p3), %s2640_s22, 1  ;;  %v2658_v0 = vmov (!%p299_p3), 0  }
   0x9   : > { %s3246_s27 = smov (%p30_p4, %s3244_s27), 0  ;;  %302 = sbr.rel (%p299_p3) target bundleno = 383 (0x17f), region = 44 }
   0xa   : > { %422 = vst.msk [vmem:[#allocation2] sm:$0xf] (!%p299_p3), %vm421_vm0, %v2658_v0  ;;  %423 = vst.msk [vmem:[#allocation2 + $0x10] sm:$0xf] (!%p299_p3), %vm421_vm0, %v2658_v0  ;;  %p367_p6 = scmp.lt.s32.totalorder (!%p299_p3), %s2731_s28, 15  ;;  %s2173_s29 = sadd.s32 (!%p299_p3), 4294967295, %s2731_s28 }
   0xb   : > { %424 = vst.msk [vmem:[#allocation2 + $0x20] sm:$0xf] (!%p299_p3), %vm421_vm0, %v2658_v0  ;;  %425 = vst.msk [vmem:[#allocation2 + $0x30] sm:$0xf] (!%p299_p3), %vm421_vm0, %v2658_v0  ;;  %p377_p7 = scmp.gt.s32.totalorder (!%p299_p3), %s2173_s29, 0  ;;  %p2174_p8 = scmp.lt.s32.totalorder (!%p299_p3), %s2173_s29, 15 }
   0xc   : > { %426 = vst.msk [vmem:[#allocation2 + $0x40] sm:$0xf] (!%p299_p3), %vm421_vm0, %v2658_v0  ;;  %427 = vst.msk [vmem:[#allocation2 + $0x50] sm:$0xf] (!%p299_p3), %vm421_vm0, %v2658_v0  ;;  %s393_s10 = sadd.s32 (!%p299_p3), 8, %s2731_s28  ;;  %p2209_p10 = scmp.ne.s32.totalorder (!%p299_p3), %s2636_s21, 0 }
   0xd   : > { %428 = vst.msk [vmem:[#allocation2 + $0x60] sm:$0xf] (!%p299_p3), %vm421_vm0, %v2658_v0  ;;  %429 = vst.msk [vmem:[#allocation2 + $0x70] sm:$0xf] (!%p299_p3), %vm421_vm0, %v2658_v0  ;;  %p2764_p9 = scmp.lt.s32.totalorder (!%p299_p3), %s393_s10, 15 }
   0xe   : > { %430 = vst.msk [vmem:[#allocation2 + $0x80] sm:$0xf] (!%p299_p3), %vm421_vm0, %v2658_v0  ;;  %431 = vst.msk [vmem:[#allocation2 + $0x90] sm:$0xf] (!%p299_p3), %vm421_vm0, %v2658_v0 }
   0xf   : > { %433 = vst.msk [vmem:[#allocation2 + $0x8] sm:$0xf0] (!%p299_p3), %vm432_vm1, %v2658_v0  ;;  %434 = vst.msk [vmem:[#allocation2 + $0x18] sm:$0xf0] (!%p299_p3), %vm432_vm1, %v2658_v0 }
  0x10   : > { %435 = vst.msk [vmem:[#allocation2 + $0x28] sm:$0xf0] %vm432_vm1, %v2658_v0  ;;  %436 = vst.msk [vmem:[#allocation2 + $0x38] sm:$0xf0] %vm432_vm1, %v2658_v0  ;;  %s3248_s22 = smov (!%p365_p5, %s2640_s22), 1  ;;  %s3250_s29 = smov (!%p377_p7, %s2173_s29), 0 }
  0x11   : > { %437 = vst.msk [vmem:[#allocation2 + $0x48] sm:$0xf0] %vm432_vm1, %v2658_v0  ;;  %438 = vst.msk [vmem:[#allocation2 + $0x58] sm:$0xf0] %vm432_vm1, %v2658_v0  ;;  %s368_s30 = scalar_select %p367_p6, %s2731_s28, 15 }
  0x12   : > { %439 = vst.msk [vmem:[#allocation2 + $0x68] sm:$0xf0] %vm432_vm1, %v2658_v0  ;;  %440 = vst.msk [vmem:[#allocation2 + $0x78] sm:$0xf0] %vm432_vm1, %v2658_v0  ;;  %s2760_s7 = sshll.u32 %s3248_s22, 5  ;;  %s3252_s10 = smov (!%p2764_p9, %s393_s10), 15 }
  0x13   : > { %441 = vst.msk [vmem:[#allocation2 + $0x88] sm:$0xf0] %vm432_vm1, %v2658_v0  ;;  %442 = vst.msk [vmem:[#allocation2 + $0x98] sm:$0xf0] %vm432_vm1, %v2658_v0  ;;  %s2169_s8 = sshll.u32 %s368_s30, 1  ;;  %s3254_s29 = smov (!%p2174_p8, %s3250_s29), 15 }
  0x14   : > { %s371_s9 = sadd.s32 %s2760_s7, %s2169_s8  ;;  %s3256_s10 = smov (!%p2764_p9, %s3252_s10), 15  ;;  %v2659_v17 = vmov (!%p2209_p10), 0  }
  0x15   : > { %s2171_s11 = sshll.u32 %s371_s9, 2  ;;  %s2179_s19 = sshll.u32 %s3254_s29, 1  ;;  %544 = vst.msk [vmem:[#allocation2] sm:$0xf0] (!%p2209_p10), %vm432_vm1, %v2659_v17 }
  0x16   : > { %s2771_s15 = scalar_lea.vmem %s3229_s0, %s2171_s11  ;;  %s2776_s18 = scalar_lea.vmem %s3235_s6, %s2171_s11  ;;  %545 = vst.msk [vmem:[#allocation2 + $0x8] sm:$0xf] (!%p2209_p10), %vm421_vm0, %v2659_v17 }
  0x17   : > { %v2590_v1 = vld [vmem:[%s2771_s15] ss:$0 sps:$4 sm:$0xff]   ;;  %v2591_v2 = vld [vmem:[%s2771_s15 + $0x4] ss:$0 sps:$4 sm:$0xff]   ;;  %v2592_v3 = vld [vmem:[%s2771_s15 + $0x8] ss:$0 sps:$4 sm:$0xff]   ;;  %s385_s20 = sadd.s32 %s2179_s19, %s2760_s7 }
  0x18   : > { %524 = vst.msk [vmem:[#allocation2 + $0x10] sm:$0xf0] %vm432_vm1, %v2590_v1  ;;  %v2593_v4 = vld [vmem:[%s2771_s15 + $0xc] ss:$0 sps:$4 sm:$0xff]   ;;  %526 = vst.msk [vmem:[#allocation2 + $0x20] sm:$0xf0] %vm432_vm1, %v2592_v3 }
  0x19   : > { %525 = vst.msk [vmem:[#allocation2 + $0x18] sm:$0xf] %vm421_vm0, %v2591_v2  ;;  %v2594_v5 = vld [vmem:[%s2771_s15 + $0x10] ss:$0 sps:$4 sm:$0xff]   ;;  %s2186_s22 = sshll.u32 %s3256_s10, 1  ;;  %s2181_s28 = sshll.u32 %s385_s20, 2 }
  0x1a   : > { %527 = vst.msk [vmem:[#allocation2 + $0x28] sm:$0xf] %vm421_vm0, %v2593_v4  ;;  %v2595_v6 = vld [vmem:[%s2771_s15 + $0x14] ss:$0 sps:$4 sm:$0xff]   ;;  %s402_s30 = sadd.s32 %s2186_s22, %s2760_s7  ;;  %v2596_v7 = vld [vmem:[%s2771_s15 + $0x18] ss:$0 sps:$4 sm:$0xff]   ;;  %s2799_s9 = scalar_lea.vmem %s3230_s1, %s2181_s28 }
  0x1b   : > { %528 = vst.msk [vmem:[#allocation2 + $0x30] sm:$0xf0] %vm432_vm1, %v2594_v5  ;;  %s2188_s11 = sshll.u32 %s402_s30, 2  ;;  %v2597_v8 = vld [vmem:[%s2771_s15 + $0x1c] ss:$0 sps:$4 sm:$0xff]  }
  0x1c   : > { %529 = vst.msk [vmem:[#allocation2 + $0x38] sm:$0xf] %vm421_vm0, %v2595_v6  ;;  %s2806_s13 = scalar_lea.vmem %s3231_s2, %s2188_s11  ;;  %v2598_v9 = vld [vmem:[%s2771_s15 + $0x20] ss:$0 sps:$4 sm:$0xff]   ;;  %531 = vst.msk [vmem:[#allocation2 + $0x48] sm:$0xf] %vm421_vm0, %v2597_v8 }
  0x1d   : > { %530 = vst.msk [vmem:[#allocation2 + $0x40] sm:$0xf0] %vm432_vm1, %v2596_v7  ;;  %v2599_v10 = vld [vmem:[%s2771_s15 + $0x24] ss:$0 sps:$4 sm:$0xff]   ;;  %v2600_v11 = vld [vmem:[%s2771_s15 + $0x28] ss:$0 sps:$4 sm:$0xff]  }
  0x1e   : > { %532 = vst.msk [vmem:[#allocation2 + $0x50] sm:$0xf0] %vm432_vm1, %v2598_v9  ;;  %v2601_v12 = vld [vmem:[%s2771_s15 + $0x2c] ss:$0 sps:$4 sm:$0xff]   ;;  %534 = vst.msk [vmem:[#allocation2 + $0x60] sm:$0xf0] %vm432_vm1, %v2600_v11 }
  0x1f   : > { %533 = vst.msk [vmem:[#allocation2 + $0x58] sm:$0xf] %vm421_vm0, %v2599_v10  ;;  %v2602_v13 = vld [vmem:[%s2771_s15 + $0x30] ss:$0 sps:$4 sm:$0xff]   ;;  %v2603_v14 = vld [vmem:[%s2771_s15 + $0x34] ss:$0 sps:$4 sm:$0xff]  }
  0x20   : > { %535 = vst.msk [vmem:[#allocation2 + $0x68] sm:$0xf] %vm421_vm0, %v2601_v12  ;;  %v2604_v15 = vld [vmem:[%s2771_s15 + $0x38] ss:$0 sps:$4 sm:$0xff]   ;;  %537 = vst.msk [vmem:[#allocation2 + $0x78] sm:$0xf] %vm421_vm0, %v2603_v14 }
  0x21   : > { %536 = vst.msk [vmem:[#allocation2 + $0x70] sm:$0xf0] %vm432_vm1, %v2602_v13  ;;  %v2605_v16 = vld [vmem:[%s2771_s15 + $0x3c] ss:$0 sps:$4 sm:$0xff]   ;;  %538 = vst.msk [vmem:[#allocation2 + $0x80] sm:$0xf0] %vm432_vm1, %v2604_v15 }
  0x22   : > { %539 = vst.msk [vmem:[#allocation2 + $0x88] sm:$0xf] %vm421_vm0, %v2605_v16  ;;  %543 = sbr.rel (%p2209_p10) target bundleno = 41 (0x29), region = 48 }
  0x29 PF: > { %p2210_p11 = scmp.le.s32.totalorder %s2636_s21, 0 }
  0x2a   : > { %v2606_v18 = vld [vmem:[%s2799_s9] ss:$0 sps:$4 sm:$0xff] (!%p2210_p11)   ;;  %v2607_v19 = vld [vmem:[%s2799_s9 + $0x4] ss:$0 sps:$4 sm:$0xff] (!%p2210_p11)  }
  0x2b   : > { %549 = sbr.rel (%p2210_p11) target bundleno = 50 (0x32), region = 52  ;;  %560 = vst.msk [vmem:[#allocation2] sm:$0xf0] (!%p2210_p11), %vm432_vm1, %v2606_v18 }
  0x2c   : > { %561 = vst.msk [vmem:[#allocation2 + $0x8] sm:$0xf] (!%p2210_p11), %vm421_vm0, %v2607_v19 }
  0x32 PF: > { %p2213_p12 = scmp.ne.s32.totalorder %s2636_s21, 1 }
  0x33   : > { %v2660_v20 = vmov (!%p2213_p12), 0  }
  0x34   : > { %565 = sbr.rel (%p2213_p12) target bundleno = 59 (0x3b), region = 56  ;;  %567 = vst.msk [vmem:[#allocation2 + $0x90] sm:$0xf0] (!%p2213_p12), %vm432_vm1, %v2660_v20 }
  0x35   : > { %568 = vst.msk [vmem:[#allocation2 + $0x98] sm:$0xf] (!%p2213_p12), %vm421_vm0, %v2660_v20 }
  0x3b PF: > { %p2214_p13 = scmp.ge.s32.totalorder %s2636_s21, 1 }
  0x3c   : > { %v2608_v21 = vld [vmem:[%s2806_s13] ss:$0 sps:$4 sm:$0xff] (!%p2214_p13)   ;;  %v2609_v22 = vld [vmem:[%s2806_s13 + $0x4] ss:$0 sps:$4 sm:$0xff] (!%p2214_p13)  }
  0x3d   : > { %572 = sbr.rel (%p2214_p13) target bundleno = 68 (0x44), region = 60  ;;  %584 = vst.msk [vmem:[#allocation2 + $0x90] sm:$0xf0] (!%p2214_p13), %vm432_vm1, %v2608_v21 }
  0x3e   : > { %585 = vst.msk [vmem:[#allocation2 + $0x98] sm:$0xf] (!%p2214_p13), %vm421_vm0, %v2609_v22 }
  0x44 PF: > { %v2845_v23 = vld [vmem:[%s3233_s4] ss:$0 sm:$0xff]  ;;  %s2852_s21 = smov 0  }
  0x45   : > { %v2850_v24 = vld [vmem:[%s3234_s5] ss:$0 sm:$0xff] }
  0x46 LB: >> { %v2220_v25 = vld [vmem:[%s3232_s3 + $0x2] sm:$0x3]  ;;  %vm716_vm2 = vcmask 1041408   ;;  %v2863_v26 = vld [vmem:[%s3232_s3 + $0x8] sm:$0x3]  ;;  %s2316_s8 = sshll.u32 %s2656_s21, 6  ;;  %s2656_s21 = sphi %s2852_s21, %s593_s21  }
  0x47   : >> { %2529 = vmatprep.subr.msk.bf16.mxu1 %vm716_vm2, %v2220_v25  ;;  %2533 = vmatprep.subr.msk.bf16.mxu0 %vm716_vm2, %v2863_v26  ;;  %v718_v27 = vsel %vm716_vm2, %v2220_v25, 0  ;;  %v2871_v28 = vsel %vm716_vm2, %v2863_v26, 0  ;;  %v675_v29 = vld [vmem:[%s3232_s3] sm:$0x3]  ;;  %v2262_v30 = vld [vmem:[%s3232_s3 + $0xa] sm:$0x3] }
  0x48   : >> { %2374 = vmatpush3.bf16.msra.mxu1 %v718_v27  ;;  %2414 = vmatpush3.bf16.msra.mxu0 %v2871_v28  ;;  %vm688_vm3 = vcmask 1043456   ;;  %vm703_vm4 = vcmask 31744   ;;  %v798_v31 = vsel %vm716_vm2, %v675_v29, 0  ;;  %v2885_v32 = vsel %vm716_vm2, %v2262_v30, 0  ;;  %s2887_s11 = scalar_lea.vmem [#allocation2], %s2316_s8  ;;  %s2327_s22 = sshll.u32 %s2656_s21, 5 }
  0x49   : >> { %2530 = vmatprep.subr.msk.bf16.mxu1 %vm716_vm2, %v675_v29  ;;  %2535 = vmatprep.subr.msk.bf16.mxu0 %vm716_vm2, %v2262_v30  ;;  %v2890_v33 = vld [vmem:[%s2887_s11 + $0x8] sm:$0xf]  ;;  %v2893_v34 = vld [vmem:[%s2887_s11] sm:$0xf0]  ;;  %v2896_v35 = vld [vmem:[%s2887_s11 + $0x18] sm:$0xf]  ;;  %s3184_s28 = scalar_lea.vmem %s2776_s18, %s2327_s22 }
  0x4a   : >> { %v616_v36 = vshrl.u32 %v2890_v33, 16  ;;  %v619_v37 = vshll.u32 %v2890_v33, 16  ;;  %v689_v38 = vrot.slane %v2893_v34, 4  ;;  %v690_v39 = vrot.slane %v2890_v33, 4  ;;  %v2249_v40 = vld [vmem:[%s2887_s11 + $0x10] sm:$0xf0] }
  0x4b   : >> { %v871_v41 = vshrl.u32 %v2893_v34, 16  ;;  %v874_v42 = vshll.u32 %v2893_v34, 16  ;;  %v1049_v43 = vshrl.u32 %v2896_v35, 16  ;;  %v1052_v44 = vshll.u32 %v2896_v35, 16  ;;  %v601_v45 = vld [vmem:[%s2887_s11 + $0x18] sm:$0xf] }
  0x4c   : >> { %v691_v46 = vsel %vm688_vm3, %v689_v38, %v690_v39  ;;  %v1210_v47 = vrot.slane %v2249_v40, 4  ;;  %v1211_v48 = vrot.slane %v2896_v35, 4  ;;  %v1317_v49 = vshrl.u32 %v2249_v40, 16  ;;  %v677_v50 = vld [vmem:[%s2887_s11 + $0x10] sm:$0xf0]  ;;  %s593_s21 = sadd.s32 1, %s2656_s21  }
  0x4d   : >> { %2375 = vmatprep.mubr.msk.bf16.mxu1 %vm703_vm4, %v691_v46  ;;  %v1320_v51 = vshll.u32 %v2249_v40, 16  ;;  %v633_v52 = vshrl.u32 %v601_v45, 16  ;;  %v636_v53 = vshll.u32 %v601_v45, 16  ;;  %v692_v54 = vrot.slane %v677_v50, 4  ;;  %v2239_v55 = vld [vmem:[%s2887_s11 + $0x28] sm:$0xf] }
  0x4e   : >> { %v1212_v56 = vsel %vm688_vm3, %v1210_v47, %v1211_v48  ;;  %v693_v57 = vrot.slane %v601_v45, 4  ;;  %v888_v58 = vshrl.u32 %v677_v50, 16  ;;  %v891_v59 = vshll.u32 %v677_v50, 16  ;;  %v2250_v60 = vld [vmem:[%s2887_s11 + $0x20] sm:$0xf0]  ;;  %p590_p0 = scmp.ge.s32.totalorder %s593_s21, 2  }
  0x4f   : >> { %2415 = vmatprep.mubr.msk.bf16.mxu0 %vm703_vm4, %v1212_v56  ;;  %v2916_v61 = vrot.slane %v633_v52, 3  ;;  %v2918_v62 = vrot.slane %v636_v53, 4  ;;  %v1066_v63 = vshrl.u32 %v2239_v55, 16  ;;  %v1069_v0 = vshll.u32 %v2239_v55, 16  ;;  %v2921_v1 = vld [vmem:[%s2887_s11 + $0x28] sm:$0xf] }
  0x50   : >> { %vm869_vm5 = vsmask.f32 3328  ;;  %v694_v2 = vsel %vm688_vm3, %v692_v54, %v693_v57  ;;  %v2924_v3 = vrot.slane %v888_v58, 4  ;;  %v2926_v4 = vrot.slane %v891_v59, 5  ;;  %v2929_v6 = vld [vmem:[%s2887_s11 + $0x20] sm:$0xf0] }
  0x51   : >> { %v1213_v5 = vrot.slane %v2250_v60, 4  ;;  %2376 = vmatmul.mubr.msk.bf16.vlgmr.msra.gmra.mrb[0].mxu1 %vm703_vm4, %v694_v2  ;;  %v2932_v7 = vrot.slane %v1066_v63, 3  ;;  %v2934_v8 = vrot.slane %v1069_v0, 4  ;;  %v1214_v9 = vrot.slane %v2239_v55, 4  ;;  %v2937_v11 = vld [vmem:[%s2887_s11 + $0x38] sm:$0xf] }
  0x52   : >> { %v1334_v10 = vshrl.u32 %v2250_v60, 16  ;;  %v2277_v12 = vld [vmem:[%s3232_s3 + $0xc] sm:$0x3]  ;;  %2384 = vmatpush3.bf16.msra.mxu1 %v798_v31  ;;  %v1337_v13 = vshll.u32 %v2250_v60, 16  ;;  %v695_v14 = vrot.slane %v2929_v6, 4  ;;  %v696_v15 = vrot.slane %v2921_v1, 4 }
  0x53   : >> { %v2945_v16 = vld [vmem:[%s2887_s11 + $0x30] sm:$0xf0]  ;;  %v699_v17 = vrot.slane %v2937_v11, 4  ;;  %vm606_vm6 = vsmask.f32 4352  ;;  %v1215_v18 = vsel %vm688_vm3, %v1213_v5, %v1214_v9  ;;  %v1319_v21 = vrot.slane %v1317_v49, 4 }
  0x54   : >> { %v698_v19 = vrot.slane %v2945_v16, 4  ;;  %v2258_v20 = vld [vmem:[%s2887_s11 + $0x18] sm:$0x1f]  ;;  %v1322_v22 = vrot.slane %v1320_v51, 5  ;;  %2416 = vmatmul.mubr.msk.bf16.vlgmr.msra.gmra.mrb[0].mxu0 %vm703_vm4, %v1215_v18  ;;  %v697_v25 = vsel %vm688_vm3, %v695_v14, %v696_v15  ;;  %v2259_v30 = vld [vmem:[%s2887_s11 + $0x28] sm:$0x1f] }
  0x55   : >> { %v1325_v27 = vshrl.u32 %v2258_v20, 16  ;;  %v1328_v29 = vshll.u32 %v2258_v20, 16  ;;  %v1336_v31 = vrot.slane %v1334_v10, 4  ;;  %2424 = vmatpush3.bf16.msra.mxu0 %v2885_v32  ;;  %2379 = vmatprep.mubr.msk.bf16.mxu1 %vm703_vm4, %v697_v25  ;;  %v1339_v40 = vrot.slane %v1337_v13, 5  ;;  %v598_v46 = vld [vmem:[%s2887_s11] sm:$0xf8] }
  0x56   : >> { %v700_v38 = vsel %vm688_vm3, %v698_v19, %v699_v17  ;;  %v1323_v39 = vor.u32 %v1322_v22, %v1319_v21  ;;  %v1342_v45 = vshrl.u32 %v2259_v30, 16  ;;  %v2229_v47 = vld [vmem:[%s3232_s3 + $0x4] sm:$0x3]  ;;  %2536 = vmatprep.subr.msk.bf16.mxu0 %vm716_vm2, %v2277_v12  ;;  %v1345_v50 = vshll.u32 %v2259_v30, 16  ;;  %v600_v51 = vld [vmem:[%s2887_s11 + $0x10] sm:$0xf8] }
  0x57   : >> { %v1327_v48 = vrot.slane %v1325_v27, 4  ;;  %v1330_v49 = vrot.slane %v1328_v29, 5  ;;  %v1569_v32 = vsel %vm716_vm2, %v2277_v12, 0  ;;  %2531 = vmatprep.subr.msk.bf16.mxu1 %vm716_vm2, %v2229_v47  ;;  %v1340_v52 = vor.u32 %v1339_v40, %v1336_v31  ;;  %v2970_v60 = vld [vmem:[%s2887_s11 + $0x30] sm:$0xf0] }
  0x58   : >> { %v1344_v53 = vrot.slane %v1342_v45, 4  ;;  %v608_v54 = vshrl.u32 %v598_v46, 16  ;;  %v611_v55 = vshll.u32 %v598_v46, 16  ;;  %v1347_v57 = vrot.slane %v1345_v50, 5  ;;  %v2260_v9 = vld [vmem:[%s2887_s11 + $0x38] sm:$0x1f] }
  0x59   : >> { %v1331_v56 = vor.u32 %v1330_v49, %v1327_v48  ;;  %v618_v58 = vrot.slane %v616_v36, 3  ;;  %v621_v59 = vrot.slane %v619_v37, 4  ;;  %2380 = vmatmul.mubr.msk.bf16.gmra.mrb[4].mxu1 %vm703_vm4, %v700_v38  ;;  %v625_v2 = vshrl.u32 %v600_v51, 16  ;;  %v2978_v33 = vld [vmem:[%s2887_s11 + $0x40] sm:$0xf0] }
  0x5a   : >> { %v610_v63 = vrot.slane %v608_v54, 3  ;;  %v613_v0 = vrot.slane %v611_v55, 4  ;;  %v628_v5 = vshll.u32 %v600_v51, 16  ;;  %v1348_v12 = vor.u32 %v1347_v57, %v1344_v53  ;;  %v2261_v22 = vld [vmem:[%s2887_s11 + $0x48] sm:$0x1f] }
  0x5b   : >> { %v1332_v10 = vsel %vm869_vm5, %v1323_v39, %v1331_v56  ;;  %v622_v13 = vor.u32 %v621_v59, %v618_v58  ;;  %v639_v36 = vor.u32 %v2918_v62, %v2916_v61  ;;  %v627_v14 = vrot.slane %v625_v2, 3  ;;  %v602_v29 = vld [vmem:[%s2887_s11 + $0x20] sm:$0xf8]  ;;  %v604_v40 = vld [vmem:[%s2887_s11 + $0x30] sm:$0xf8] }
  0x5c   : >> { %2425 = vmatprep.mubr.msk.bf16.mxu0 %vm703_vm4, %v1332_v10  ;;  %v614_v37 = vor.u32 %v613_v0, %v610_v63  ;;  %v630_v15 = vrot.slane %v628_v5, 4  ;;  %v953_v17 = vsel %vm716_vm2, %v2229_v47, 0  ;;  %v1349_v18 = vsel %vm869_vm5, %v1340_v52, %v1348_v12  ;;  %v2996_v49 = vld [vmem:[%s3232_s3 + $0xe] sm:$0x3]  ;;  %v3002_v54 = vld [vmem:[%s3232_s3 + $0x6] sm:$0x3] }
  0x5d   : >> { %v1351_v19 = vshrl.u32 %v2970_v60, 16  ;;  %v1354_v20 = vshll.u32 %v2970_v60, 16  ;;  %v1359_v21 = vshrl.u32 %v2260_v9, 16  ;;  %v1362_v25 = vshll.u32 %v2260_v9, 16  ;;  %v2269_v5 = vld [vmem:[%s2887_s11 + $0x20] sm:$0xf8] }
  0x5e   : >> { %v623_v61 = vsel %vm606_vm6, %v614_v37, %v622_v13  ;;  %v631_v62 = vor.u32 %v630_v15, %v627_v14  ;;  %v1368_v27 = vshrl.u32 %v2978_v33, 16  ;;  %v1371_v39 = vshll.u32 %v2978_v33, 16  ;;  %v3016_v14 = vld [vmem:[%s2887_s11 + $0x28] sm:$0xf] }
  0x5f   : >> { %2385 = vmatprep.mubr.msk.bf16.mxu1 %vm703_vm4, %v623_v61  ;;  %v1353_v30 = vrot.slane %v1351_v19, 4  ;;  %v1356_v31 = vrot.slane %v1354_v20, 5  ;;  %v1361_v38 = vrot.slane %v1359_v21, 4  ;;  %v1364_v46 = vrot.slane %v1362_v25, 5  ;;  %v2271_v20 = vld [vmem:[%s2887_s11 + $0x30] sm:$0xf8] }
  0x60   : >> { %v640_v45 = vsel %vm606_vm6, %v631_v62, %v639_v36  ;;  %v1370_v47 = vrot.slane %v1368_v27, 4  ;;  %v1376_v48 = vshrl.u32 %v2261_v22, 16  ;;  %2426 = vmatmul.mubr.msk.bf16.vlgmr.msra.gmra.mrb[0].mxu0 %vm703_vm4, %v1349_v18  ;;  %v1373_v51 = vrot.slane %v1371_v39, 5 }
  0x61   : >> { %v1357_v50 = vor.u32 %v1356_v31, %v1353_v30  ;;  %v1379_v52 = vshll.u32 %v2261_v22, 16  ;;  %v642_v53 = vshrl.u32 %v602_v29, 16  ;;  %2434 = vmatpush3.bf16.msra.mxu0 %v1569_v32  ;;  %2386 = vmatmul.mubr.msk.bf16.vlgmr.msra.gmra.mrb[0].mxu1 %vm703_vm4, %v640_v45  ;;  %v1365_v55 = vor.u32 %v1364_v46, %v1361_v38  ;;  %v3023_v31 = vld [vmem:[%s2887_s11 + $0x38] sm:$0xf] }
  0x62   : >> { %v1378_v56 = vrot.slane %v1376_v48, 4  ;;  %v645_v57 = vshll.u32 %v602_v29, 16  ;;  %v650_v58 = vshrl.u32 %v2921_v1, 16  ;;  %2394 = vmatpush3.bf16.msra.mxu1 %v953_v17  ;;  %v1374_v59 = vor.u32 %v1373_v51, %v1370_v47  ;;  %2537 = vmatprep.subr.msk.bf16.mxu0 %vm716_vm2, %v2996_v49 }
  0x63   : >> { %v1381_v63 = vrot.slane %v1379_v52, 5  ;;  %v644_v0 = vrot.slane %v642_v53, 3  ;;  %v653_v2 = vshll.u32 %v2921_v1, 16  ;;  %v1366_v32 = vsel %vm869_vm5, %v1357_v50, %v1365_v55  ;;  %2532 = vmatprep.subr.msk.bf16.mxu1 %vm716_vm2, %v3002_v54  ;;  %v865_v55 = vld [vmem:[%s2887_s11 + $0x8] sm:$0x1f] }
  0x64   : >> { %v647_v9 = vrot.slane %v645_v57, 4  ;;  %v652_v10 = vrot.slane %v650_v58, 3  ;;  %v659_v12 = vshrl.u32 %v604_v40, 16  ;;  %2429 = vmatprep.mubr.msk.bf16.mxu0 %vm703_vm4, %v1366_v32  ;;  %v662_v37 = vshll.u32 %v604_v40, 16 }
  0x65   : >> { %v1382_v13 = vor.u32 %v1381_v63, %v1378_v56  ;;  %v655_v36 = vrot.slane %v653_v2, 4  ;;  %v667_v1 = vshrl.u32 %v2937_v11, 16  ;;  %v670_v18 = vshll.u32 %v2937_v11, 16  ;;  %v866_v63 = vld [vmem:[%s2887_s11 + $0x18] sm:$0x1f] }
  0x66   : >> { %v648_v15 = vor.u32 %v647_v9, %v644_v0  ;;  %v661_v17 = vrot.slane %v659_v12, 3  ;;  %v1487_v19 = vshrl.u32 %v2269_v5, 16  ;;  %v664_v61 = vrot.slane %v662_v37, 4 }
  0x67   : >> { %v1383_v21 = vsel %vm869_vm5, %v1374_v59, %v1382_v13  ;;  %v656_v22 = vor.u32 %v655_v36, %v652_v10  ;;  %v669_v62 = vrot.slane %v667_v1, 3  ;;  %v672_v25 = vrot.slane %v670_v18, 4  ;;  %v2273_v36 = vld [vmem:[%s2887_s11 + $0x40] sm:$0xf8] }
  0x68   : >> { %v1489_v27 = vrot.slane %v1487_v19, 3  ;;  %v1490_v29 = vshll.u32 %v2269_v5, 16  ;;  %v1495_v30 = vshrl.u32 %v3016_v14, 16  ;;  %2430 = vmatmul.mubr.msk.bf16.gmra.mrb[4].mxu0 %vm703_vm4, %v1383_v21  ;;  %v665_v11 = vor.u32 %v664_v61, %v661_v17  ;;  %v3046_v17 = vld [vmem:[%s2887_s11 + $0x48] sm:$0xf] }
  0x69   : >> { %v657_v38 = vsel %vm606_vm6, %v648_v15, %v656_v22  ;;  %v1498_v39 = vshll.u32 %v3016_v14, 16  ;;  %v1504_v40 = vshrl.u32 %v2271_v20, 16  ;;  %v673_v45 = vor.u32 %v672_v25, %v669_v62 }
  0x6a   : >> { %2389 = vmatprep.mubr.msk.bf16.mxu1 %vm703_vm4, %v657_v38  ;;  %v1492_v46 = vrot.slane %v1490_v29, 4  ;;  %v1497_v47 = vrot.slane %v1495_v30, 3  ;;  %v1507_v48 = vshll.u32 %v2271_v20, 16  ;;  %v1512_v52 = vshrl.u32 %v3023_v31, 16  ;;  %v3061_v29 = vld [vmem:[%s2887_s11 + $0x58] sm:$0xf] }
  0x6b   : >> { %v1500_v50 = vrot.slane %v1498_v39, 4  ;;  %v1506_v51 = vrot.slane %v1504_v40, 3  ;;  %v1515_v53 = vshll.u32 %v3023_v31, 16  ;;  %v674_v56 = vsel %vm606_vm6, %v665_v11, %v673_v45 }
  0x6c   : >> { %v1493_v57 = vor.u32 %v1492_v46, %v1489_v27  ;;  %v1509_v58 = vrot.slane %v1507_v48, 4  ;;  %v1683_v59 = vsel %vm716_vm2, %v2996_v49, 0  ;;  %2390 = vmatmul.mubr.msk.bf16.gmra.mrb[4].mxu1 %vm703_vm4, %v674_v56  ;;  %v1514_v2 = vrot.slane %v1512_v52, 3  ;;  %v867_v52 = vld [vmem:[%s2887_s11 + $0x28] sm:$0x1f] }
  0x6d   : >> { %v1501_v0 = vor.u32 %v1500_v50, %v1497_v47  ;;  %v1517_v5 = vrot.slane %v1515_v53, 4  ;;  %v873_v32 = vrot.slane %v871_v41, 4  ;;  %v876_v10 = vrot.slane %v874_v42, 5  ;;  %v2275_v42 = vld [vmem:[%s2887_s11 + $0x50] sm:$0xf8] }
  0x6e   : >> { %v1510_v9 = vor.u32 %v1509_v58, %v1506_v51  ;;  %v879_v12 = vshrl.u32 %v865_v55, 16  ;;  %v882_v13 = vshll.u32 %v865_v55, 16  ;;  %v894_v1 = vor.u32 %v2926_v4, %v2924_v3  ;;  %v3056_v3 = vld [vmem:[%s3232_s3 + $0x10] sm:$0x3] }
  0x6f   : >> { %v1502_v49 = vsel %vm606_vm6, %v1493_v57, %v1501_v0  ;;  %v1518_v37 = vor.u32 %v1517_v5, %v1514_v2  ;;  %v896_v15 = vshrl.u32 %v866_v63, 16  ;;  %v877_v41 = vor.u32 %v876_v10, %v873_v32  ;;  %v868_v2 = vld [vmem:[%s2887_s11 + $0x38] sm:$0x1f] }
  0x70   : >> { %2435 = vmatprep.mubr.msk.bf16.mxu0 %vm703_vm4, %v1502_v49  ;;  %v881_v18 = vrot.slane %v879_v12, 4  ;;  %v884_v19 = vrot.slane %v882_v13, 5  ;;  %v899_v34 = vshll.u32 %v866_v63, 16  ;;  %v1123_v22 = vsel %vm716_vm2, %v3002_v54, 0 }
  0x71   : >> { %v1519_v20 = vsel %vm606_vm6, %v1510_v9, %v1518_v37  ;;  %v898_v21 = vrot.slane %v896_v15, 4  ;;  %v1521_v61 = vshrl.u32 %v2273_v36, 16  ;;  %v1524_v25 = vshll.u32 %v2273_v36, 16  ;;  %v3080_v37 = vld [vmem:[%s2887_s11 + $0x20] sm:$0xf0] }
  0x72   : >> { %2436 = vmatmul.mubr.msk.bf16.vlgmr.msra.gmra.mrb[0].mxu0 %vm703_vm4, %v1519_v20  ;;  %v885_v4 = vor.u32 %v884_v19, %v881_v18  ;;  %v901_v62 = vrot.slane %v899_v34, 5  ;;  %v1529_v27 = vshrl.u32 %v3046_v17, 16  ;;  %v1532_v54 = vshll.u32 %v3046_v17, 16  ;;  %v3086_v18 = vld [vmem:[%s2887_s11 + $0x30] sm:$0xf0] }
  0x73   : >> { %2444 = vmatpush3.bf16.msra.mxu0 %v1683_v59  ;;  %v1523_v30 = vrot.slane %v1521_v61, 3  ;;  %v1538_v38 = vshrl.u32 %v2275_v42, 16  ;;  %v1541_v11 = vshll.u32 %v2275_v42, 16  ;;  %v1526_v45 = vrot.slane %v1524_v25, 4 }
  0x74   : >> { %v886_v39 = vsel %vm869_vm5, %v877_v41, %v885_v4  ;;  %v902_v40 = vor.u32 %v901_v62, %v898_v21  ;;  %v1531_v46 = vrot.slane %v1529_v27, 3  ;;  %2538 = vmatprep.subr.msk.bf16.mxu0 %vm716_vm2, %v3056_v3  ;;  %v1534_v47 = vrot.slane %v1532_v54, 4  ;;  %v2236_v21 = vld [vmem:[%s2887_s11 + $0x10] sm:$0xf8] }
  0x75   : >> { %2395 = vmatprep.mubr.msk.bf16.mxu1 %vm703_vm4, %v886_v39  ;;  %v1540_v48 = vrot.slane %v1538_v38, 3  ;;  %v1543_v50 = vrot.slane %v1541_v11, 4  ;;  %v1546_v51 = vshrl.u32 %v3061_v29, 16  ;;  %v1527_v55 = vor.u32 %v1526_v45, %v1523_v30  ;;  %v2238_v30 = vld [vmem:[%s2887_s11 + $0x20] sm:$0xf8] }
  0x76   : >> { %v903_v53 = vsel %vm869_vm5, %v894_v1, %v902_v40  ;;  %v1549_v56 = vshll.u32 %v3061_v29, 16  ;;  %v905_v57 = vshrl.u32 %v2929_v6, 16  ;;  %v1535_v58 = vor.u32 %v1534_v47, %v1531_v46  ;;  %v3104_v47 = vld [vmem:[%s2887_s11 + $0x40] sm:$0xf0] }
  0x77   : >> { %2396 = vmatmul.mubr.msk.bf16.vlgmr.msra.gmra.mrb[0].mxu1 %vm703_vm4, %v903_v53  ;;  %v1544_v59 = vor.u32 %v1543_v50, %v1540_v48  ;;  %v1548_v63 = vrot.slane %v1546_v51, 3  ;;  %v908_v0 = vshll.u32 %v2929_v6, 16  ;;  %v913_v9 = vshrl.u32 %v867_v52, 16  ;;  %v3111_v51 = vld [vmem:[%s2887_s11 + $0x50] sm:$0xf0] }
  0x78   : >> { %2404 = vmatpush3.bf16.msra.mxu1 %v1123_v22  ;;  %v1551_v5 = vrot.slane %v1549_v56, 4  ;;  %v907_v32 = vrot.slane %v905_v57, 4  ;;  %v916_v10 = vshll.u32 %v867_v52, 16  ;;  %v1536_v12 = vsel %vm606_vm6, %v1527_v55, %v1535_v58  ;;  %v2240_v56 = vld [vmem:[%s2887_s11 + $0x30] sm:$0xf8] }
  0x79   : >> { %v910_v13 = vrot.slane %v908_v0, 5  ;;  %v922_v36 = vshrl.u32 %v2945_v16, 16  ;;  %v925_v49 = vshll.u32 %v2945_v16, 16  ;;  %2534 = vmatprep.subr.msk.bf16.mxu1 %vm716_vm2, %v2863_v26  ;;  %2439 = vmatprep.mubr.msk.bf16.mxu0 %vm703_vm4, %v1536_v12  ;;  %v915_v1 = vrot.slane %v913_v9, 4  ;;  %v3118_v57 = vld [vmem:[%s2887_s11 + $0x38] sm:$0xf] }
  0x7a   : >> { %v1552_v6 = vor.u32 %v1551_v5, %v1548_v63  ;;  %v918_v15 = vrot.slane %v916_v10, 5  ;;  %v930_v41 = vshrl.u32 %v868_v2, 16  ;;  %v933_v20 = vshll.u32 %v868_v2, 16  ;;  %v3129_v12 = vld [vmem:[%s2887_s11 + $0x48] sm:$0xf] }
  0x7b   : >> { %v911_v19 = vor.u32 %v910_v13, %v907_v32  ;;  %v924_v34 = vrot.slane %v922_v36, 4  ;;  %v927_v42 = vrot.slane %v925_v49, 5  ;;  %v1656_v26 = vrot.slane %v3080_v37, 4  ;;  %v2242_v32 = vld [vmem:[%s2887_s11 + $0x40] sm:$0xf8] }
  0x7c   : >> { %v1553_v16 = vsel %vm606_vm6, %v1544_v59, %v1552_v6  ;;  %v919_v22 = vor.u32 %v918_v15, %v915_v1  ;;  %v932_v61 = vrot.slane %v930_v41, 4  ;;  %v935_v62 = vrot.slane %v933_v20, 5  ;;  %v2291_v20 = vld [vmem:[%s2887_s11 + $0x28] sm:$0x1f] }
  0x7d   : >> { %2440 = vmatmul.mubr.msk.bf16.gmra.mrb[4].mxu0 %vm703_vm4, %v1553_v16  ;;  %v928_v4 = vor.u32 %v927_v42, %v924_v34  ;;  %v1657_v25 = vrot.slane %v3016_v14, 4  ;;  %v1659_v27 = vrot.slane %v3086_v18, 4  ;;  %v1660_v38 = vrot.slane %v3023_v31, 4 }
  0x7e   : >> { %v920_v54 = vsel %vm869_vm5, %v911_v19, %v919_v22  ;;  %v1845_v11 = vsel %vm716_vm2, %v3056_v3, 0  ;;  %v1041_v39 = vshrl.u32 %v2236_v21, 16  ;;  %v936_v40 = vor.u32 %v935_v62, %v932_v61 }
  0x7f   : >> { %2399 = vmatprep.mubr.msk.bf16.mxu1 %vm703_vm4, %v920_v54  ;;  %v1658_v45 = vsel %vm688_vm3, %v1656_v26, %v1657_v25  ;;  %v1044_v14 = vshll.u32 %v2236_v21, 16  ;;  %v1051_v46 = vrot.slane %v1049_v43, 3  ;;  %v1661_v31 = vsel %vm688_vm3, %v1659_v27, %v1660_v38 }
  0x80   : >> { %2445 = vmatprep.mubr.msk.bf16.mxu0 %vm703_vm4, %v1658_v45  ;;  %v1043_v48 = vrot.slane %v1041_v39, 3  ;;  %v1054_v3 = vrot.slane %v1052_v44, 4  ;;  %v1058_v50 = vshrl.u32 %v2238_v30, 16  ;;  %v937_v52 = vsel %vm869_vm5, %v928_v4, %v936_v40 }
  0x81   : >> { %v1046_v53 = vrot.slane %v1044_v14, 4  ;;  %v1061_v55 = vshll.u32 %v2238_v30, 16  ;;  %v1072_v43 = vor.u32 %v2934_v8, %v2932_v7  ;;  %2400 = vmatmul.mubr.msk.bf16.gmra.mrb[4].mxu1 %vm703_vm4, %v937_v52  ;;  %v1662_v44 = vrot.slane %v3104_v47, 4 }
  0x82   : >> { %v1055_v58 = vor.u32 %v1054_v3, %v1051_v46  ;;  %v1060_v35 = vrot.slane %v1058_v50, 3  ;;  %v1663_v59 = vrot.slane %v3046_v17, 4  ;;  %v1665_v2 = vrot.slane %v3111_v51, 4 }
  0x83   : >> { %v1047_v63 = vor.u32 %v1046_v53, %v1043_v48  ;;  %v1063_v0 = vrot.slane %v1061_v55, 4  ;;  %v1666_v5 = vrot.slane %v3061_v29, 4  ;;  %v1075_v8 = vshrl.u32 %v2240_v56, 16 }
  0x84   : >> { %v1664_v7 = vsel %vm688_vm3, %v1662_v44, %v1663_v59  ;;  %v1078_v9 = vshll.u32 %v2240_v56, 16  ;;  %v1083_v10 = vshrl.u32 %v3118_v57, 16  ;;  %v1086_v49 = vshll.u32 %v3118_v57, 16 }
  0x85   : >> { %2446 = vmatmul.mubr.msk.bf16.vlgmr.msra.gmra.mrb[0].mxu0 %vm703_vm4, %v1661_v31  ;;  %v1056_v17 = vsel %vm606_vm6, %v1047_v63, %v1055_v58  ;;  %v1064_v13 = vor.u32 %v1063_v0, %v1060_v35  ;;  %v1667_v36 = vsel %vm688_vm3, %v1665_v2, %v1666_v5  ;;  %v1077_v29 = vrot.slane %v1075_v8, 3 }
  0x86   : >> { %2454 = vmatpush3.bf16.msra.mxu0 %v1845_v11  ;;  %2405 = vmatprep.mubr.msk.bf16.mxu1 %vm703_vm4, %v1056_v17  ;;  %v1080_v6 = vrot.slane %v1078_v9, 4  ;;  %v1085_v1 = vrot.slane %v1083_v10, 3  ;;  %v1092_v15 = vshrl.u32 %v2242_v32, 16  ;;  %v1088_v19 = vrot.slane %v1086_v49, 4  ;;  %v2292_v11 = vld [vmem:[%s2887_s11 + $0x38] sm:$0x1f] }
  0x87   : >> { %v1073_v41 = vsel %vm606_vm6, %v1064_v13, %v1072_v43  ;;  %2449 = vmatprep.mubr.msk.bf16.mxu0 %vm703_vm4, %v1664_v7  ;;  %v1095_v34 = vshll.u32 %v2242_v32, 16  ;;  %v1100_v42 = vshrl.u32 %v3129_v12, 16  ;;  %v1103_v22 = vshll.u32 %v3129_v12, 16 }
  0x88   : >> { %v1081_v21 = vor.u32 %v1080_v6, %v1077_v29  ;;  %v1094_v16 = vrot.slane %v1092_v15, 3  ;;  %v1763_v61 = vshrl.u32 %v3080_v37, 16  ;;  %v1089_v26 = vor.u32 %v1088_v19, %v1085_v1 }
  0x89   : >> { %v1097_v4 = vrot.slane %v1095_v34, 4  ;;  %v1102_v62 = vrot.slane %v1100_v42, 3  ;;  %v1766_v25 = vshll.u32 %v3080_v37, 16  ;;  %2406 = vmatmul.mubr.msk.bf16.vlgmr.msra.gmra.mrb[0].mxu1 %vm703_vm4, %v1073_v41  ;;  %v1105_v27 = vrot.slane %v1103_v22, 4 }
  0x8a   : >> { %v1765_v30 = vrot.slane %v1763_v61, 4  ;;  %v1771_v54 = vshrl.u32 %v2291_v20, 16  ;;  %v1774_v38 = vshll.u32 %v2291_v20, 16  ;;  %2464 = vmatpush3.bf16.msra.mxu1 %v2871_v28  ;;  %v1090_v39 = vsel %vm606_vm6, %v1081_v21, %v1089_v26  ;;  %v2293_v28 = vld [vmem:[%s2887_s11 + $0x48] sm:$0x1f] }
  0x8b   : >> { %v1098_v40 = vor.u32 %v1097_v4, %v1094_v16  ;;  %v1768_v45 = vrot.slane %v1766_v25, 5  ;;  %v1780_v14 = vshrl.u32 %v3086_v18, 16  ;;  %2409 = vmatprep.mubr.msk.bf16.mxu1 %vm703_vm4, %v1090_v39  ;;  %v1106_v46 = vor.u32 %v1105_v27, %v1102_v62 }
  0x8c   : >> { %v1773_v37 = vrot.slane %v1771_v54, 4  ;;  %v1776_v31 = vrot.slane %v1774_v38, 5  ;;  %v1783_v48 = vshll.u32 %v3086_v18, 16  ;;  %v1788_v52 = vshrl.u32 %v2292_v11, 16 }
  0x8d   : >> { %2450 = vmatmul.mubr.msk.bf16.gmra.mrb[4].mxu0 %vm703_vm4, %v1667_v36  ;;  %v1769_v3 = vor.u32 %v1768_v45, %v1765_v30  ;;  %v1782_v50 = vrot.slane %v1780_v14, 4  ;;  %v1791_v53 = vshll.u32 %v2292_v11, 16  ;;  %v1107_v55 = vsel %vm606_vm6, %v1098_v40, %v1106_v46 }
  0x8e   : >> { %v1777_v43 = vor.u32 %v1776_v31, %v1773_v37  ;;  %v1785_v56 = vrot.slane %v1783_v48, 5  ;;  %v1216_v58 = vrot.slane %v2970_v60, 4  ;;  %v1790_v35 = vrot.slane %v1788_v52, 4  ;;  %v2294_v60 = vld [vmem:[%s2887_s11 + $0x58] sm:$0x1f] }
  0x8f   : >> { %v1793_v44 = vrot.slane %v1791_v53, 5  ;;  %v1217_v59 = vrot.slane %v3118_v57, 4  ;;  %v1797_v18 = vshrl.u32 %v3104_v47, 16  ;;  %v1800_v2 = vshll.u32 %v3104_v47, 16 }
  0x90   : >> { %v1778_v63 = vsel %vm869_vm5, %v1769_v3, %v1777_v43  ;;  %v1786_v0 = vor.u32 %v1785_v56, %v1782_v50  ;;  %v1805_v5 = vshrl.u32 %v2293_v28, 16  ;;  %v1808_v9 = vshll.u32 %v2293_v28, 16 }
  0x91   : >> { %2455 = vmatprep.mubr.msk.bf16.mxu0 %vm703_vm4, %v1778_v63  ;;  %v1794_v32 = vor.u32 %v1793_v44, %v1790_v35  ;;  %v1218_v7 = vsel %vm688_vm3, %v1216_v58, %v1217_v59  ;;  %v1799_v8 = vrot.slane %v1797_v18, 4  ;;  %2410 = vmatmul.mubr.msk.bf16.gmra.mrb[4].mxu1 %vm703_vm4, %v1107_v55  ;;  %v1802_v10 = vrot.slane %v1800_v2, 5 }
  0x92   : >> { %v1807_v57 = vrot.slane %v1805_v5, 4  ;;  %2419 = vmatprep.mubr.msk.bf16.mxu1 %vm703_vm4, %v1218_v7  ;;  %v1810_v13 = vrot.slane %v1808_v9, 5  ;;  %v1814_v47 = vshrl.u32 %v3111_v51, 16  ;;  %v1817_v36 = vshll.u32 %v3111_v51, 16 }
  0x93   : >> { %v1795_v17 = vsel %vm869_vm5, %v1786_v0, %v1794_v32  ;;  %v1803_v49 = vor.u32 %v1802_v10, %v1799_v8  ;;  %v1822_v29 = vshrl.u32 %v2294_v60, 16  ;;  %v1825_v6 = vshll.u32 %v2294_v60, 16 }
  0x94   : >> { %v1811_v1 = vor.u32 %v1810_v13, %v1807_v57  ;;  %v1816_v15 = vrot.slane %v1814_v47, 4  ;;  %v1819_v41 = vrot.slane %v1817_v36, 5  ;;  %v1219_v20 = vrot.slane %v2978_v33, 4 }
  0x95   : >> { %2456 = vmatmul.mubr.msk.bf16.vlgmr.msra.gmra.mrb[0].mxu0 %vm703_vm4, %v1795_v17  ;;  %v1824_v19 = vrot.slane %v1822_v29, 4  ;;  %v1827_v34 = vrot.slane %v1825_v6, 5  ;;  %v1220_v21 = vrot.slane %v3129_v12, 4  ;;  %vm1990_vm7 = vcmask 519168  }
  0x96   : >> { %v1812_v42 = vsel %vm869_vm5, %v1803_v49, %v1811_v1  ;;  %v1820_v16 = vor.u32 %v1819_v41, %v1816_v15 }
  0x97   : >> { %2459 = vmatprep.mubr.msk.bf16.mxu0 %vm703_vm4, %v1812_v42  ;;  %v1828_v51 = vor.u32 %v1827_v34, %v1824_v19  ;;  %v1221_v61 = vsel %vm688_vm3, %v1219_v20, %v1220_v21 }
  0x99   : >> { %v1829_v22 = vsel %vm869_vm5, %v1820_v16, %v1828_v51 }
  0x9d   : >> { %2460 = vmatmul.mubr.msk.bf16.gmra.mrb[4].mxu0 %vm703_vm4, %v1829_v22  ;;  %2420 = vmatmul.mubr.msk.bf16.vlgmr.msra.gmra.mrb[4].mxu1 %vm703_vm4, %v1221_v61 }
 0x15c   : >> { %v2407_v26 = vpop.f32.mrb[0].mxu1 }
 0x15d   : >> { %v1159_v4 = vpop.f32.mrb[1].mxu1 }
 0x15e   : >> { %v2408_v62 = vpop.f32.mrb[2].mxu1 }
 0x15f   : >> { %v1162_v25 = vpop.f32.mrb[3].mxu1 }
 0x168   : >> { %v2457_v33 = vpop.f32.mrb[0].mxu0 }
 0x169   : >> { %v2465_v27 = vadd.f32 %v2457_v33, %v2407_v26  ;;  %v1881_v12 = vpop.f32.mrb[1].mxu0 }
 0x16a   : >> { %v2466_v30 = vadd.f32 %v1881_v12, %v1159_v4  ;;  %v2458_v54 = vpop.f32.mrb[2].mxu0 }
 0x16b   : >> { %v1928_v38 = vmul.f32 %v2465_v27, %v2845_v23  ;;  %v2467_v11 = vadd.f32 %v2458_v54, %v2408_v62  ;;  %v1884_v39 = vpop.f32.mrb[3].mxu0 }
 0x16c   : >> { %v1926_v40 = vmul.f32 %v2466_v30, %v2845_v23  ;;  %v2468_v45 = vadd.f32 %v1884_v39, %v1162_v25 }
 0x16d   : >> { %v1942_v14 = vadd.f32 %v2850_v24, %v1928_v38  ;;  %v1929_v46 = vmul.f32 %v2467_v11, %v2845_v23 }
 0x16e   : >> { %v1940_v37 = vadd.f32 %v2850_v24, %v1926_v40  ;;  %v1927_v31 = vmul.f32 %v2468_v45, %v2845_v23 }
 0x16f   : >> { %v1950_v48 = vmax.f32 %v1942_v14, 0.0  ;;  %v1943_v3 = vadd.f32 %v2850_v24, %v1929_v46 }
 0x170   : >> { %v1948_v50 = vmax.f32 %v1940_v37, 0.0  ;;  %v1941_v52 = vadd.f32 %v2850_v24, %v1927_v31  ;;  %v2461_v53 = vpop.f32.mrb[4].mxu0  ;;  %v2421_v43 = vpop.f32.mrb[4].mxu1 }
 0x171   : >> { %v2321_v28 = vpack.c.bf16 %v1950_v48, %v1950_v48  ;;  %v1951_v55 = vmax.f32 %v1943_v3, 0.0  ;;  %v1897_v56 = vpop.f32.mrb[5].mxu0  ;;  %v2469_v44 = vadd.f32 %v2461_v53, %v2421_v43  ;;  %v1289_v59 = vpop.f32.mrb[5].mxu1 }
 0x172   : >> { %v2319_v58 = vpack.c.bf16 %v1948_v50, %v1948_v50  ;;  %v1949_v35 = vmax.f32 %v1941_v52, 0.0  ;;  %v2462_v18 = vpop.f32.mrb[6].mxu0  ;;  %v2470_v0 = vadd.f32 %v1897_v56, %v1289_v59  ;;  %v2422_v2 = vpop.f32.mrb[6].mxu1 }
 0x173   : >> { %1993 = vst.msk [vmem:[%s3184_s28 + $0x8] sm:$0xf] %vm1990_vm7, %v2321_v28  ;;  %v2322_v63 = vpack.c.bf16 %v1951_v55, %v1951_v55  ;;  %v1900_v5 = vpop.f32.mrb[7].mxu0  ;;  %v1932_v7 = vmul.f32 %v2469_v44, %v2845_v23  ;;  %v2471_v8 = vadd.f32 %v2462_v18, %v2422_v2  ;;  %v1292_v9 = vpop.f32.mrb[7].mxu1 }
 0x174   : >> { %1991 = vst.msk [vmem:[%s3184_s28] sm:$0xf] %vm1990_vm7, %v2319_v58  ;;  %v2320_v32 = vpack.c.bf16 %v1949_v35, %v1949_v35  ;;  %v1930_v60 = vmul.f32 %v2470_v0, %v2845_v23  ;;  %v2472_v10 = vadd.f32 %v1900_v5, %v1292_v9 }
 0x175   : >> { %1994 = vst.msk [vmem:[%s3184_s28 + $0xc] sm:$0xf] %vm1990_vm7, %v2322_v63  ;;  %v1946_v57 = vadd.f32 %v2850_v24, %v1932_v7  ;;  %v1933_v17 = vmul.f32 %v2471_v8, %v2845_v23 }
 0x176   : >> { %1992 = vst.msk [vmem:[%s3184_s28 + $0x4] sm:$0xf] %vm1990_vm7, %v2320_v32  ;;  %v1944_v13 = vadd.f32 %v2850_v24, %v1930_v60  ;;  %v1931_v47 = vmul.f32 %v2472_v10, %v2845_v23 }
 0x177   : >> { %v1954_v36 = vmax.f32 %v1946_v57, 0.0  ;;  %v1947_v49 = vadd.f32 %v2850_v24, %v1933_v17 }
 0x178   : >> { %v1952_v29 = vmax.f32 %v1944_v13, 0.0  ;;  %v1945_v6 = vadd.f32 %v2850_v24, %v1931_v47  ;;  %592 = sbr.rel (!%p590_p0) target bundleno = 70 (0x46), region = 118 }
 0x179   : >> { %v2325_v1 = vpack.c.bf16 %v1954_v36, %v1954_v36  ;;  %v1955_v15 = vmax.f32 %v1947_v49, 0.0 }
 0x17a   : >> { %v2323_v41 = vpack.c.bf16 %v1952_v29, %v1952_v29  ;;  %v1953_v19 = vmax.f32 %v1945_v6, 0.0 }
 0x17b   : >> { %1997 = vst.msk [vmem:[%s3184_s28 + $0x18] sm:$0xf] %vm1990_vm7, %v2325_v1  ;;  %v2326_v34 = vpack.c.bf16 %v1955_v15, %v1955_v15 }
 0x17c   : >> { %1995 = vst.msk [vmem:[%s3184_s28 + $0x10] sm:$0xf] %vm1990_vm7, %v2323_v41  ;;  %v2324_v42 = vpack.c.bf16 %v1953_v19, %v1953_v19 }
 0x17d   : >> { %1998 = vst.msk [vmem:[%s3184_s28 + $0x1c] sm:$0xf] %vm1990_vm7, %v2326_v34 }
 0x17e   : >> { %1996 = vst.msk [vmem:[%s3184_s28 + $0x14] sm:$0xf] %vm1990_vm7, %v2324_v42 }
 0x17f PF: > { %s16_s25 = sadd.s32 1, %s2652_s25   ;;  %s3237_s21 = smov %s2644_s23 }
 0x180   : > { %p13_p1 = scmp.ge.s32.totalorder %s16_s25, 6   ;;  %s3238_s22 = smov %s2648_s24 }
 0x181   : > { %s3239_s23 = smov %s3242_s26  ;;  %s3240_s24 = smov %s3246_s27 }
 0x182   :  { %15 = sbr.rel (!%p13_p1) target bundleno = 3 (0x3), region = 129 }

// kernel: forward.6
= control target key start
LH: loop header
LB: loop body
LE: loop exit
PB: predicated region body
PF: predicated region fallthrough
CT: control target
= control target key end

     0   :  { %s3208_s21 = smov 0   ;;  %s3210_s22 = smov 0   ;;  %s3752_s0 = inlined_call_operand.vmem [shape: bf16[2,16,16,64], index: 0, kind: input, shape index: {}, may-alias: {0,1,2}]   ;;  %s3753_s1 = inlined_call_operand.vmem [shape: bf16[2,16,16,64], index: 1, kind: input, shape index: {}, may-alias: {0,1,2}]   ;;  %s3754_s2 = inlined_call_operand.vmem [shape: bf16[2,16,16,64], index: 2, kind: input, shape index: {}, may-alias: {0,1,2}]   ;;  %s3755_s3 = inlined_call_operand.vmem [shape: bf16[2,9,64,64], index: 3, kind: input, shape index: {}]   ;;  %s3756_s4 = inlined_call_operand.vmem [shape: f32[1,1,64], index: 4, kind: input, shape index: {}]   ;;  %s3757_s5 = inlined_call_operand.vmem [shape: f32[2,1,64], index: 5, kind: input, shape index: {}]   ;;  %s3758_s6 = inlined_call_operand.vmem [shape: bf16[2,16,16,64], index: 6, kind: output, shape index: {}]  }
   0x1   :  { %s3212_s23 = smov 0   ;;  %s3214_s24 = smov 0  }
   0x2   :  { %s3216_s25 = smov 0  }
   0x3 LB: > { %s25_s26 = sadd.s32 1, %s3156_s23  ;;  %s28_s27 = sadd.s32 1, %s3160_s24  ;;  %s3164_s25 = sphi %s3216_s25, %s16_s25   ;;  %s3160_s24 = sphi %s3214_s24, %s3763_s24   ;;  %s3156_s23 = sphi %s3212_s23, %s3762_s23   ;;  %s3152_s22 = sphi %s3210_s22, %s3761_s22   ;;  %s3148_s21 = sphi %s3208_s21, %s3760_s21  }
   0x4   : > { %p26_p0 = scmp.ge.s32.totalorder %s25_s26, 2  ;;  %p2472_p1 = scmp.ge.s32.totalorder %s3164_s25, 1 }
   0x5   : > { %p316_p2 = scmp.lt.s32.totalorder %s3164_s25, 5 }
   0x6   : > { %s3765_s26 = smov (%p26_p0, %s25_s26), 0  ;;  %s3767_s27 = smov (!%p26_p0, %s28_s27), %s3160_s24 }
   0x7   : > { %p317_p3 = pnand %p2472_p1, %p316_p2  ;;  %p30_p4 = scmp.ge.s32.totalorder %s3767_s27, 2 }
   0x8   : > { %vm455_vm0 = vcmask (!%p317_p3), 519168   ;;  %vm466_vm1 = vcmask (!%p317_p3), 523268   ;;  %s3243_s28 = sshll.u32 (!%p317_p3), %s3148_s21, 3  ;;  %p391_p5 = scmp.lt.s32.totalorder (!%p317_p3), %s3152_s22, 1  ;;  %v3170_v0 = vmov (!%p317_p3), 0  }
   0x9   : > { %s3769_s27 = smov (%p30_p4, %s3767_s27), 0  ;;  %320 = sbr.rel (%p317_p3) target bundleno = 380 (0x17c), region = 44 }
   0xa   : > { %456 = vst.msk [vmem:[#allocation2] sm:$0xf] (!%p317_p3), %vm455_vm0, %v3170_v0  ;;  %457 = vst.msk [vmem:[#allocation2 + $0x10] sm:$0xf] (!%p317_p3), %vm455_vm0, %v3170_v0  ;;  %p393_p6 = scmp.lt.s32.totalorder (!%p317_p3), %s3243_s28, 15  ;;  %s2478_s29 = sadd.s32 (!%p317_p3), 4294967295, %s3243_s28 }
   0xb   : > { %458 = vst.msk [vmem:[#allocation2 + $0x20] sm:$0xf] (!%p317_p3), %vm455_vm0, %v3170_v0  ;;  %459 = vst.msk [vmem:[#allocation2 + $0x30] sm:$0xf] (!%p317_p3), %vm455_vm0, %v3170_v0  ;;  %p403_p7 = scmp.gt.s32.totalorder (!%p317_p3), %s2478_s29, 0  ;;  %p2479_p8 = scmp.lt.s32.totalorder (!%p317_p3), %s2478_s29, 15 }
   0xc   : > { %460 = vst.msk [vmem:[#allocation2 + $0x40] sm:$0xf] (!%p317_p3), %vm455_vm0, %v3170_v0  ;;  %461 = vst.msk [vmem:[#allocation2 + $0x50] sm:$0xf] (!%p317_p3), %vm455_vm0, %v3170_v0  ;;  %s419_s10 = sadd.s32 (!%p317_p3), 8, %s3243_s28  ;;  %p2515_p10 = scmp.ne.s32.totalorder (!%p317_p3), %s3148_s21, 0 }
   0xd   : > { %462 = vst.msk [vmem:[#allocation2 + $0x60] sm:$0xf] (!%p317_p3), %vm455_vm0, %v3170_v0  ;;  %463 = vst.msk [vmem:[#allocation2 + $0x70] sm:$0xf] (!%p317_p3), %vm455_vm0, %v3170_v0  ;;  %p3282_p9 = scmp.lt.s32.totalorder (!%p317_p3), %s419_s10, 15 }
   0xe   : > { %464 = vst.msk [vmem:[#allocation2 + $0x80] sm:$0xf] (!%p317_p3), %vm455_vm0, %v3170_v0  ;;  %465 = vst.msk [vmem:[#allocation2 + $0x90] sm:$0xf] (!%p317_p3), %vm455_vm0, %v3170_v0 }
   0xf   : > { %467 = vst.msk [vmem:[#allocation2 + $0x8] sm:$0xf0] (!%p317_p3), %vm466_vm1, %v3170_v0  ;;  %468 = vst.msk [vmem:[#allocation2 + $0x18] sm:$0xf0] (!%p317_p3), %vm466_vm1, %v3170_v0 }
  0x10   : > { %469 = vst.msk [vmem:[#allocation2 + $0x28] sm:$0xf0] %vm466_vm1, %v3170_v0  ;;  %470 = vst.msk [vmem:[#allocation2 + $0x38] sm:$0xf0] %vm466_vm1, %v3170_v0  ;;  %s3771_s22 = smov (!%p391_p5, %s3152_s22), 1  ;;  %s3773_s29 = smov (!%p403_p7, %s2478_s29), 0 }
  0x11   : > { %471 = vst.msk [vmem:[#allocation2 + $0x48] sm:$0xf0] %vm466_vm1, %v3170_v0  ;;  %472 = vst.msk [vmem:[#allocation2 + $0x58] sm:$0xf0] %vm466_vm1, %v3170_v0  ;;  %s394_s30 = scalar_select %p393_p6, %s3243_s28, 15 }
  0x12   : > { %473 = vst.msk [vmem:[#allocation2 + $0x68] sm:$0xf0] %vm466_vm1, %v3170_v0  ;;  %474 = vst.msk [vmem:[#allocation2 + $0x78] sm:$0xf0] %vm466_vm1, %v3170_v0  ;;  %s3275_s7 = sshll.u32 %s3771_s22, 5  ;;  %s3014_s16 = smul.u32 288, %s3771_s22 }
  0x13   : > { %475 = vst.msk [vmem:[#allocation2 + $0x88] sm:$0xf0] %vm466_vm1, %v3170_v0  ;;  %476 = vst.msk [vmem:[#allocation2 + $0x98] sm:$0xf0] %vm466_vm1, %v3170_v0  ;;  %s2474_s8 = sshll.u32 %s394_s30, 1  ;;  %s3775_s10 = smov (!%p3282_p9, %s419_s10), 15 }
  0x14   : > { %s3278_s9 = sadd.s32 %s3275_s7, %s2474_s8  ;;  %s3777_s29 = smov (!%p2479_p8, %s3773_s29), 15  ;;  %v3171_v17 = vmov (!%p2515_p10), 0  }
  0x15   : > { %s2476_s11 = sshll.u32 %s3278_s9, 2  ;;  %s3779_s10 = smov (!%p3282_p9, %s3775_s10), 15  ;;  %578 = vst.msk [vmem:[#allocation2] sm:$0xf0] (!%p2515_p10), %vm466_vm1, %v3171_v17 }
  0x16   : > { %s3291_s15 = scalar_lea.vmem %s3752_s0, %s2476_s11  ;;  %s2484_s17 = sshll.u32 %s3777_s29, 1  ;;  %579 = vst.msk [vmem:[#allocation2 + $0x8] sm:$0xf] (!%p2515_p10), %vm455_vm0, %v3171_v17 }
  0x17   : > { %v3066_v1 = vld [vmem:[%s3291_s15] ss:$0 sps:$4 sm:$0xff]   ;;  %v3067_v2 = vld [vmem:[%s3291_s15 + $0x4] ss:$0 sps:$4 sm:$0xff]   ;;  %v3068_v3 = vld [vmem:[%s3291_s15 + $0x8] ss:$0 sps:$4 sm:$0xff]   ;;  %s3307_s20 = scalar_lea.vmem %s3755_s3, %s3014_s16  ;;  %s411_s28 = sadd.s32 %s2484_s17, %s3275_s7 }
  0x18   : > { %558 = vst.msk [vmem:[#allocation2 + $0x10] sm:$0xf0] %vm466_vm1, %v3066_v1  ;;  %v3069_v4 = vld [vmem:[%s3291_s15 + $0xc] ss:$0 sps:$4 sm:$0xff]   ;;  %560 = vst.msk [vmem:[#allocation2 + $0x20] sm:$0xf0] %vm466_vm1, %v3068_v3 }
  0x19   : > { %559 = vst.msk [vmem:[#allocation2 + $0x18] sm:$0xf] %vm455_vm0, %v3067_v2  ;;  %v3070_v5 = vld [vmem:[%s3291_s15 + $0x10] ss:$0 sps:$4 sm:$0xff]   ;;  %s2491_s30 = sshll.u32 %s3779_s10, 1  ;;  %s2486_s8 = sshll.u32 %s411_s28, 2 }
  0x1a   : > { %561 = vst.msk [vmem:[#allocation2 + $0x28] sm:$0xf] %vm455_vm0, %v3069_v4  ;;  %v3071_v6 = vld [vmem:[%s3291_s15 + $0x14] ss:$0 sps:$4 sm:$0xff]   ;;  %s428_s29 = sadd.s32 %s2491_s30, %s3275_s7  ;;  %v3072_v7 = vld [vmem:[%s3291_s15 + $0x18] ss:$0 sps:$4 sm:$0xff]   ;;  %s3320_s14 = scalar_lea.vmem %s3753_s1, %s2486_s8 }
  0x1b   : > { %562 = vst.msk [vmem:[#allocation2 + $0x30] sm:$0xf0] %vm466_vm1, %v3070_v5  ;;  %s2493_s16 = sshll.u32 %s428_s29, 2  ;;  %v3073_v8 = vld [vmem:[%s3291_s15 + $0x1c] ss:$0 sps:$4 sm:$0xff]   ;;  %s442_s28 = scalar_lea.vmem %s3757_s5, %s3771_s22 }
  0x1c   : > { %563 = vst.msk [vmem:[#allocation2 + $0x38] sm:$0xf] %vm455_vm0, %v3071_v6  ;;  %s3327_s7 = scalar_lea.vmem %s3754_s2, %s2493_s16  ;;  %v3074_v9 = vld [vmem:[%s3291_s15 + $0x20] ss:$0 sps:$4 sm:$0xff]   ;;  %s3340_s29 = scalar_lea.vmem %s3758_s6, %s2476_s11  ;;  %565 = vst.msk [vmem:[#allocation2 + $0x48] sm:$0xf] %vm455_vm0, %v3073_v8 }
  0x1d   : > { %564 = vst.msk [vmem:[#allocation2 + $0x40] sm:$0xf0] %vm466_vm1, %v3072_v7  ;;  %v3075_v10 = vld [vmem:[%s3291_s15 + $0x24] ss:$0 sps:$4 sm:$0xff]   ;;  %v3076_v11 = vld [vmem:[%s3291_s15 + $0x28] ss:$0 sps:$4 sm:$0xff]  }
  0x1e   : > { %566 = vst.msk [vmem:[#allocation2 + $0x50] sm:$0xf0] %vm466_vm1, %v3074_v9  ;;  %v3077_v12 = vld [vmem:[%s3291_s15 + $0x2c] ss:$0 sps:$4 sm:$0xff]   ;;  %568 = vst.msk [vmem:[#allocation2 + $0x60] sm:$0xf0] %vm466_vm1, %v3076_v11 }
  0x1f   : > { %567 = vst.msk [vmem:[#allocation2 + $0x58] sm:$0xf] %vm455_vm0, %v3075_v10  ;;  %v3078_v13 = vld [vmem:[%s3291_s15 + $0x30] ss:$0 sps:$4 sm:$0xff]   ;;  %v3079_v14 = vld [vmem:[%s3291_s15 + $0x34] ss:$0 sps:$4 sm:$0xff]  }
  0x20   : > { %569 = vst.msk [vmem:[#allocation2 + $0x68] sm:$0xf] %vm455_vm0, %v3077_v12  ;;  %v3080_v15 = vld [vmem:[%s3291_s15 + $0x38] ss:$0 sps:$4 sm:$0xff]   ;;  %571 = vst.msk [vmem:[#allocation2 + $0x78] sm:$0xf] %vm455_vm0, %v3079_v14 }
  0x21   : > { %570 = vst.msk [vmem:[#allocation2 + $0x70] sm:$0xf0] %vm466_vm1, %v3078_v13  ;;  %v3081_v16 = vld [vmem:[%s3291_s15 + $0x3c] ss:$0 sps:$4 sm:$0xff]   ;;  %572 = vst.msk [vmem:[#allocation2 + $0x80] sm:$0xf0] %vm466_vm1, %v3080_v15 }
  0x22   : > { %573 = vst.msk [vmem:[#allocation2 + $0x88] sm:$0xf] %vm455_vm0, %v3081_v16  ;;  %577 = sbr.rel (%p2515_p10) target bundleno = 41 (0x29), region = 48 }
  0x29 PF: > { %p2516_p11 = scmp.le.s32.totalorder %s3148_s21, 0 }
  0x2a   : > { %v3082_v18 = vld [vmem:[%s3320_s14] ss:$0 sps:$4 sm:$0xff] (!%p2516_p11)   ;;  %v3083_v19 = vld [vmem:[%s3320_s14 + $0x4] ss:$0 sps:$4 sm:$0xff] (!%p2516_p11)  }
  0x2b   : > { %583 = sbr.rel (%p2516_p11) target bundleno = 50 (0x32), region = 52  ;;  %594 = vst.msk [vmem:[#allocation2] sm:$0xf0] (!%p2516_p11), %vm466_vm1, %v3082_v18 }
  0x2c   : > { %595 = vst.msk [vmem:[#allocation2 + $0x8] sm:$0xf] (!%p2516_p11), %vm455_vm0, %v3083_v19 }
  0x32 PF: > { %p2519_p12 = scmp.ne.s32.totalorder %s3148_s21, 1 }
  0x33   : > { %v3172_v20 = vmov (!%p2519_p12), 0  }
  0x34   : > { %599 = sbr.rel (%p2519_p12) target bundleno = 59 (0x3b), region = 56  ;;  %601 = vst.msk [vmem:[#allocation2 + $0x90] sm:$0xf0] (!%p2519_p12), %vm466_vm1, %v3172_v20 }
  0x35   : > { %602 = vst.msk [vmem:[#allocation2 + $0x98] sm:$0xf] (!%p2519_p12), %vm455_vm0, %v3172_v20 }
  0x3b PF: > { %p2520_p13 = scmp.ge.s32.totalorder %s3148_s21, 1 }
  0x3c   : > { %v3084_v21 = vld [vmem:[%s3327_s7] ss:$0 sps:$4 sm:$0xff] (!%p2520_p13)   ;;  %v3085_v22 = vld [vmem:[%s3327_s7 + $0x4] ss:$0 sps:$4 sm:$0xff] (!%p2520_p13)  }
  0x3d   : > { %606 = sbr.rel (%p2520_p13) target bundleno = 68 (0x44), region = 60  ;;  %618 = vst.msk [vmem:[#allocation2 + $0x90] sm:$0xf0] (!%p2520_p13), %vm466_vm1, %v3084_v21 }
  0x3e   : > { %619 = vst.msk [vmem:[#allocation2 + $0x98] sm:$0xf] (!%p2520_p13), %vm455_vm0, %v3085_v22 }
  0x44 PF: > { %v3377_v23 = vld [vmem:[%s3756_s4] ss:$0 sm:$0xff]  ;;  %s3386_s21 = smov 0  }
  0x45   : > { %v3384_v24 = vld [vmem:[%s442_s28] ss:$0 sm:$0xff] }
  0x46 LB: >> { %v3086_v25 = vld [vmem:[%s3307_s20 + $0x20] sm:$0xff]   ;;  %v3088_v27 = vld [vmem:[%s3307_s20 + $0x28] sm:$0xff]   ;;  %s2714_s22 = sshll.u32 %s3168_s21, 6  ;;  %v3090_v29 = vld [vmem:[%s3307_s20 + $0x30] sm:$0xff]   ;;  %vm729_vm2 = vcmask 1043456   ;;  %vm775_vm3 = vcmask 523264   ;;  %s3168_s21 = sphi %s3386_s21, %s627_s21  }
  0x47   : >> { %v3087_v26 = vld [vmem:[%s3307_s20 + $0x80] sm:$0xff]   ;;  %2798 = vmatprep.subr.bf16.mxu1 %v3086_v25  ;;  %v3089_v28 = vld [vmem:[%s3307_s20 + $0x88] sm:$0xff]   ;;  %v3091_v30 = vld [vmem:[%s3307_s20 + $0x90] sm:$0xff]   ;;  %s3400_s13 = scalar_lea.vmem [#allocation2], %s2714_s22  ;;  %vm640_vm4 = vsmask.f32 4352 }
  0x48   : >> { %2862 = vmatprep.subr.bf16.mxu0 %v3087_v26  ;;  %2799 = vmatpush3.bf16.msra.mxu1 %v3086_v25  ;;  %v3092_v31 = vld [vmem:[%s3307_s20 + $0x38] sm:$0xff]   ;;  %v3403_v33 = vld [vmem:[%s3400_s13 + $0x8] sm:$0xf]  ;;  %v3406_v34 = vld [vmem:[%s3400_s13] sm:$0xf0]  ;;  %s2725_s14 = sshll.u32 %s3168_s21, 5 }
  0x49   : >> { %2863 = vmatpush3.bf16.msra.mxu0 %v3087_v26  ;;  %2800 = vmatprep.subr.bf16.mxu1 %v3088_v27  ;;  %v3093_v32 = vld [vmem:[%s3307_s20 + $0x98] sm:$0xff]   ;;  %v650_v36 = vshrl.u32 %v3403_v33, 16  ;;  %v653_v37 = vshll.u32 %v3403_v33, 16  ;;  %v730_v38 = vrot.slane %v3406_v34, 4  ;;  %v731_v39 = vrot.slane %v3403_v33, 4  ;;  %v3094_v51 = vld [vmem:[%s3307_s20] sm:$0xff]   ;;  %s2274_s16 = scalar_lea.vmem %s3340_s29, %s2725_s14 }
  0x4a   : >> { %2864 = vmatprep.subr.bf16.mxu0 %v3089_v28  ;;  %v3409_v35 = vld [vmem:[%s3400_s13 + $0x18] sm:$0xf]  ;;  %v3416_v40 = vld [vmem:[%s3400_s13 + $0x10] sm:$0xf0]  ;;  %v960_v41 = vshrl.u32 %v3406_v34, 16  ;;  %v963_v42 = vshll.u32 %v3406_v34, 16 }
  0x4b   : >> { %v1166_v43 = vshrl.u32 %v3409_v35, 16  ;;  %v1169_v44 = vshll.u32 %v3409_v35, 16  ;;  %v635_v45 = vld [vmem:[%s3400_s13 + $0x18] sm:$0xf]  ;;  %v732_v46 = vsel %vm729_vm2, %v730_v38, %v731_v39  ;;  %v1355_v47 = vrot.slane %v3416_v40, 4  ;;  %v3095_v60 = vld [vmem:[%s3307_s20 + $0xa0] sm:$0xff]  }
  0x4c   : >> { %2801 = vmatpush3.bf16.msra.mxu1 %v3088_v27  ;;  %v1356_v48 = vrot.slane %v3409_v35, 4  ;;  %v1490_v49 = vshrl.u32 %v3416_v40, 16  ;;  %v718_v50 = vld [vmem:[%s3400_s13 + $0x10] sm:$0xf0]  ;;  %v1493_v52 = vshll.u32 %v3416_v40, 16  ;;  %v667_v53 = vshrl.u32 %v635_v45, 16  ;;  %2806 = vmatprep.mubr.msk.bf16.mxu1 %vm775_vm3, %v732_v46 }
  0x4d   : >> { %2865 = vmatpush3.bf16.msra.mxu0 %v3089_v28  ;;  %2802 = vmatprep.subr.bf16.mxu1 %v3090_v29  ;;  %v670_v54 = vshll.u32 %v635_v45, 16  ;;  %v733_v55 = vrot.slane %v718_v50, 4  ;;  %v734_v57 = vrot.slane %v635_v45, 4  ;;  %v977_v58 = vshrl.u32 %v718_v50, 16  ;;  %v2571_v63 = vld [vmem:[%s3400_s13 + $0x28] sm:$0xf] }
  0x4e   : >> { %2866 = vmatprep.subr.bf16.mxu0 %v3091_v30  ;;  %v1357_v56 = vsel %vm729_vm2, %v1355_v47, %v1356_v48  ;;  %v980_v59 = vshll.u32 %v718_v50, 16  ;;  %v3434_v61 = vrot.slane %v667_v53, 3  ;;  %v2593_v0 = vld [vmem:[%s3400_s13 + $0x20] sm:$0xf0]  ;;  %v1183_v4 = vshrl.u32 %v2571_v63, 16  ;;  %v3096_v5 = vld [vmem:[%s3307_s20 + $0x8] sm:$0xff]  }
  0x4f   : >> { %2870 = vmatprep.mubr.msk.bf16.mxu0 %vm775_vm3, %v1357_v56  ;;  %v3436_v62 = vrot.slane %v670_v54, 4  ;;  %v735_v1 = vsel %vm729_vm2, %v733_v55, %v734_v57  ;;  %v3441_v2 = vrot.slane %v977_v58, 4  ;;  %v1186_v6 = vshll.u32 %v2571_v63, 16  ;;  %v3097_v16 = vld [vmem:[%s3307_s20 + $0xa8] sm:$0xff]   ;;  %v3462_v18 = vld [vmem:[%s3400_s13 + $0x20] sm:$0xf0] }
  0x50   : >> { %2803 = vmatpush3.bf16.msra.mxu1 %v3090_v29  ;;  %v3443_v3 = vrot.slane %v980_v59, 5  ;;  %v1358_v7 = vrot.slane %v2593_v0, 4  ;;  %v1359_v8 = vrot.slane %v2571_v63, 4  ;;  %v1507_v9 = vshrl.u32 %v2593_v0, 16  ;;  %v3459_v17 = vld [vmem:[%s3400_s13 + $0x28] sm:$0xf] }
  0x51   : >> { %2867 = vmatpush3.bf16.msra.mxu0 %v3091_v30  ;;  %2804 = vmatprep.subr.bf16.mxu1 %v3092_v31  ;;  %v3446_v10 = vrot.slane %v1183_v4, 3  ;;  %v1510_v11 = vshll.u32 %v2593_v0, 16  ;;  %v3449_v12 = vrot.slane %v1186_v6, 4  ;;  %v736_v19 = vrot.slane %v3462_v18, 4  ;;  %v3467_v21 = vld [vmem:[%s3400_s13 + $0x38] sm:$0xf] }
  0x52   : >> { %2868 = vmatprep.subr.bf16.mxu0 %v3093_v32  ;;  %v1360_v13 = vsel %vm729_vm2, %v1358_v7, %v1359_v8  ;;  %v3452_v14 = vrot.slane %v1507_v9, 4  ;;  %v737_v20 = vrot.slane %v3459_v17, 4  ;;  %v3470_v22 = vld [vmem:[%s3400_s13 + $0x30] sm:$0xf0]  ;;  %v1362_v26 = vrot.slane %v3467_v21, 4  ;;  %v3100_v54 = vld [vmem:[%s3307_s20 + $0x18] sm:$0xff]  }
  0x53   : >> { %v3455_v15 = vrot.slane %v1510_v11, 5  ;;  %v1361_v25 = vrot.slane %v3470_v22, 4  ;;  %v3475_v27 = vld [vmem:[%s3400_s13 + $0x38] sm:$0xf]  ;;  %v3478_v28 = vld [vmem:[%s3400_s13 + $0x30] sm:$0xf0]  ;;  %v673_v8 = vor.u32 %v3436_v62, %v3434_v61 }
  0x54   : >> { %2805 = vmatpush3.bf16.msra.mxu1 %v3092_v31  ;;  %v738_v29 = vsel %vm729_vm2, %v736_v19, %v737_v20  ;;  %v739_v30 = vrot.slane %v3478_v28, 4  ;;  %v740_v31 = vrot.slane %v3475_v27, 4  ;;  %v3098_v38 = vld [vmem:[%s3307_s20 + $0x10] sm:$0xff]   ;;  %v3487_v39 = vld [vmem:[%s3400_s13 + $0x48] sm:$0xf]  ;;  %v652_v46 = vrot.slane %v650_v36, 3 }
  0x55   : >> { %2869 = vmatpush3.bf16.msra.mxu0 %v3093_v32  ;;  %2814 = vmatprep.subr.bf16.mxu1 %v3094_v51  ;;  %v1363_v32 = vsel %vm729_vm2, %v1361_v25, %v1362_v26  ;;  %v3490_v45 = vld [vmem:[%s3400_s13 + $0x40] sm:$0xf0]  ;;  %v1365_v50 = vrot.slane %v3487_v39, 4  ;;  %v655_v53 = vrot.slane %v653_v37, 4  ;;  %v1492_v55 = vrot.slane %v1490_v49, 4  ;;  %v3101_v56 = vld [vmem:[%s3307_s20 + $0xb8] sm:$0xff]  }
  0x56   : >> { %2878 = vmatprep.subr.bf16.mxu0 %v3095_v60  ;;  %v741_v47 = vsel %vm729_vm2, %v739_v30, %v740_v31  ;;  %v1364_v48 = vrot.slane %v3490_v45, 4  ;;  %v632_v57 = vld [vmem:[%s3400_s13] sm:$0xf8]  ;;  %v1495_v33 = vrot.slane %v1493_v52, 5  ;;  %vm958_vm5 = vsmask.f32 3328 }
  0x57   : >> { %2807 = vmatmul.mubr.msk.bf16.vlgmr.msra.gmra.mrb[0].mxu1 %vm775_vm3, %v735_v1  ;;  %v642_v37 = vshrl.u32 %v632_v57, 16  ;;  %v645_v58 = vshll.u32 %v632_v57, 16  ;;  %v2612_v59 = vld [vmem:[%s3400_s13 + $0x18] sm:$0x1f]  ;;  %v656_v49 = vor.u32 %v655_v53, %v652_v46  ;;  %v634_v0 = vld [vmem:[%s3400_s13 + $0x10] sm:$0xf8]  ;;  %v983_v31 = vor.u32 %v3443_v3, %v3441_v2 }
  0x58   : >> { %2871 = vmatmul.mubr.msk.bf16.vlgmr.msra.gmra.mrb[0].mxu0 %vm775_vm3, %v1360_v13  ;;  %2815 = vmatpush3.bf16.msra.mxu1 %v3094_v51  ;;  %v3099_v51 = vld [vmem:[%s3307_s20 + $0xb0] sm:$0xff]   ;;  %v1366_v36 = vsel %vm729_vm2, %v1364_v48, %v1365_v50  ;;  %v1501_v63 = vshll.u32 %v2612_v59, 16  ;;  %v662_v40 = vshll.u32 %v634_v0, 16  ;;  %v1496_v52 = vor.u32 %v1495_v33, %v1492_v55  ;;  %v3102_v9 = vld [vmem:[%s3307_s20 + $0x40] sm:$0xff]   ;;  %v2613_v11 = vld [vmem:[%s3400_s13 + $0x28] sm:$0x1f] }
  0x59   : >> { %2879 = vmatpush3.bf16.msra.mxu0 %v3095_v60  ;;  %2816 = vmatprep.subr.bf16.mxu1 %v3096_v5  ;;  %v1498_v60 = vshrl.u32 %v2612_v59, 16  ;;  %v644_v1 = vrot.slane %v642_v37, 3  ;;  %v647_v4 = vrot.slane %v645_v58, 4  ;;  %v3103_v13 = vld [vmem:[%s3307_s20 + $0xc0] sm:$0xff]   ;;  %v1515_v25 = vshrl.u32 %v2613_v11, 16  ;;  %v3104_v30 = vld [vmem:[%s3307_s20 + $0x48] sm:$0xff]  }
  0x5a   : >> { %2880 = vmatprep.subr.bf16.mxu0 %v3097_v16  ;;  %2810 = vmatprep.mubr.msk.bf16.mxu1 %vm775_vm3, %v738_v29  ;;  %v1503_v7 = vrot.slane %v1501_v63, 5  ;;  %v664_v20 = vrot.slane %v662_v40, 4  ;;  %v1518_v29 = vshll.u32 %v2613_v11, 16  ;;  %v636_v50 = vld [vmem:[%s3400_s13 + $0x20] sm:$0xf8]  ;;  %v1527_v37 = vshll.u32 %v3470_v22, 16 }
  0x5b   : >> { %2874 = vmatprep.mubr.msk.bf16.mxu0 %vm775_vm3, %v1363_v32  ;;  %v1500_v6 = vrot.slane %v1498_v60, 4  ;;  %v1517_v32 = vrot.slane %v1515_v25, 4  ;;  %v679_v55 = vshll.u32 %v636_v50, 16  ;;  %v2614_v57 = vld [vmem:[%s3400_s13 + $0x38] sm:$0x1f]  ;;  %v3113_v2 = vld [vmem:[%s3307_s20 + $0xe8] sm:$0xff]  }
  0x5c   : >> { %2817 = vmatpush3.bf16.msra.mxu1 %v3096_v5  ;;  %v659_v5 = vshrl.u32 %v634_v0, 16  ;;  %v1520_v48 = vrot.slane %v1518_v29, 5  ;;  %v638_v58 = vld [vmem:[%s3400_s13 + $0x30] sm:$0xf8]  ;;  %v1532_v60 = vshrl.u32 %v2614_v57, 16  ;;  %v1535_v63 = vshll.u32 %v2614_v57, 16 }
  0x5d   : >> { %2881 = vmatpush3.bf16.msra.mxu0 %v3097_v16  ;;  %2818 = vmatprep.subr.bf16.mxu1 %v3098_v38  ;;  %v648_v16 = vor.u32 %v647_v4, %v644_v1  ;;  %v1504_v26 = vor.u32 %v1503_v7, %v1500_v6  ;;  %v2615_v40 = vld [vmem:[%s3400_s13 + $0x48] sm:$0x1f]  ;;  %v693_v7 = vshrl.u32 %v638_v58, 16  ;;  %v696_v11 = vshll.u32 %v638_v58, 16  ;;  %v2636_v34 = vld [vmem:[%s3400_s13 + $0x30] sm:$0xf8] }
  0x5e   : >> { %2882 = vmatprep.subr.bf16.mxu0 %v3099_v51  ;;  %v661_v19 = vrot.slane %v659_v5, 3  ;;  %v1521_v33 = vor.u32 %v1520_v48, %v1517_v32  ;;  %v1529_v5 = vrot.slane %v1527_v37, 5  ;;  %v1537_v6 = vrot.slane %v1535_v63, 5  ;;  %v3109_v48 = vld [vmem:[%s3307_s20 + $0xd8] sm:$0xff]   ;;  %s627_s21 = sadd.s32 1, %s3168_s21  }
  0x5f   : >> { %2811 = vmatmul.mubr.msk.bf16.gmra.mrb[4].mxu1 %vm775_vm3, %v741_v47  ;;  %v657_v61 = vsel %vm640_vm4, %v648_v16, %v656_v49  ;;  %v1505_v46 = vsel %vm958_vm5, %v1496_v52, %v1504_v26  ;;  %v1513_v47 = vor.u32 %v3455_v15, %v3452_v14  ;;  %v1524_v15 = vshrl.u32 %v3470_v22, 16  ;;  %p624_p0 = scmp.ge.s32.totalorder %s627_s21, 2  }
  0x60   : >> { %2875 = vmatmul.mubr.msk.bf16.gmra.mrb[4].mxu0 %vm775_vm3, %v1366_v36  ;;  %2819 = vmatpush3.bf16.msra.mxu1 %v3098_v38  ;;  %v665_v62 = vor.u32 %v664_v20, %v661_v19  ;;  %v684_v38 = vshrl.u32 %v3459_v17, 16  ;;  %v3105_v36 = vld [vmem:[%s3307_s20 + $0xc8] sm:$0xff]   ;;  %v681_v49 = vrot.slane %v679_v55, 4  ;;  %v1534_v22 = vrot.slane %v1532_v60, 4  ;;  %v3108_v20 = vld [vmem:[%s3307_s20 + $0x58] sm:$0xff]  }
  0x61   : >> { %2883 = vmatpush3.bf16.msra.mxu0 %v3099_v51  ;;  %2820 = vmatprep.subr.bf16.mxu1 %v3100_v54  ;;  %v687_v51 = vshll.u32 %v3459_v17, 16  ;;  %v3106_v17 = vld [vmem:[%s3307_s20 + $0x50] sm:$0xff]   ;;  %v1522_v0 = vsel %vm958_vm5, %v1513_v47, %v1521_v33  ;;  %v1526_v4 = vrot.slane %v1524_v15, 4  ;;  %v701_v16 = vshrl.u32 %v3475_v27, 16  ;;  %v3562_v15 = vld [vmem:[%s3400_s13 + $0x28] sm:$0xf] }
  0x62   : >> { %2884 = vmatprep.subr.bf16.mxu0 %v3101_v56  ;;  %2822 = vmatprep.mubr.msk.bf16.mxu1 %vm775_vm3, %v657_v61  ;;  %v674_v53 = vsel %vm640_vm4, %v665_v62, %v673_v8  ;;  %v3107_v8 = vld [vmem:[%s3307_s20 + $0xd0] sm:$0xff]   ;;  %v704_v19 = vshll.u32 %v3475_v27, 16  ;;  %v1538_v26 = vor.u32 %v1537_v6, %v1534_v22  ;;  %v695_v29 = vrot.slane %v693_v7, 3 }
  0x63   : >> { %2886 = vmatprep.mubr.msk.bf16.mxu0 %vm775_vm3, %v1505_v46  ;;  %v689_v14 = vrot.slane %v687_v51, 4  ;;  %v1541_v61 = vshrl.u32 %v3490_v45, 16  ;;  %v703_v62 = vrot.slane %v701_v16, 3  ;;  %v1544_v27 = vshll.u32 %v3490_v45, 16  ;;  %v3557_v45 = vld [vmem:[%s3307_s20 + $0x60] sm:$0xff]  }
  0x64   : >> { %2821 = vmatpush3.bf16.msra.mxu1 %v3100_v54  ;;  %v676_v54 = vshrl.u32 %v636_v50, 16  ;;  %v706_v32 = vrot.slane %v704_v19, 4  ;;  %v1549_v46 = vshrl.u32 %v2615_v40, 16  ;;  %v1552_v47 = vshll.u32 %v2615_v40, 16  ;;  %v3571_v40 = vld [vmem:[%s3400_s13 + $0x38] sm:$0xf] }
  0x65   : >> { %2885 = vmatpush3.bf16.msra.mxu0 %v3101_v56  ;;  %2830 = vmatprep.subr.bf16.mxu1 %v3102_v9  ;;  %v686_v56 = vrot.slane %v684_v38, 3  ;;  %v962_v55 = vrot.slane %v960_v41, 4  ;;  %v1705_v19 = vshrl.u32 %v2636_v34, 16 }
  0x66   : >> { %2894 = vmatprep.subr.bf16.mxu0 %v3103_v13  ;;  %v678_v59 = vrot.slane %v676_v54, 3  ;;  %v707_v51 = vor.u32 %v706_v32, %v703_v62  ;;  %v954_v54 = vld [vmem:[%s3400_s13 + $0x8] sm:$0x1f]  ;;  %v1551_v57 = vrot.slane %v1549_v46, 4  ;;  %v1554_v33 = vrot.slane %v1552_v47, 5 }
  0x67   : >> { %2823 = vmatmul.mubr.msk.bf16.vlgmr.msra.gmra.mrb[0].mxu1 %vm775_vm3, %v674_v53  ;;  %v690_v1 = vor.u32 %v689_v14, %v686_v56  ;;  %v1546_v53 = vrot.slane %v1544_v27, 5  ;;  %v2634_v56 = vld [vmem:[%s3400_s13 + $0x20] sm:$0xf8]  ;;  %v968_v14 = vshrl.u32 %v954_v54, 16  ;;  %v971_v41 = vshll.u32 %v954_v54, 16 }
  0x68   : >> { %2831 = vmatpush3.bf16.msra.mxu1 %v3102_v9  ;;  %2887 = vmatmul.mubr.msk.bf16.vlgmr.msra.gmra.mrb[0].mxu0 %vm775_vm3, %v1522_v0  ;;  %v682_v52 = vor.u32 %v681_v49, %v678_v59  ;;  %v1530_v9 = vor.u32 %v1529_v5, %v1526_v4  ;;  %v1688_v59 = vshrl.u32 %v2634_v56, 16  ;;  %v955_v49 = vld [vmem:[%s3400_s13 + $0x18] sm:$0x1f]  ;;  %v1555_v60 = vor.u32 %v1554_v33, %v1551_v57  ;;  %v956_v46 = vld [vmem:[%s3400_s13 + $0x28] sm:$0x1f] }
  0x69   : >> { %2832 = vmatprep.subr.bf16.mxu1 %v3104_v30  ;;  %2895 = vmatpush3.bf16.msra.mxu0 %v3103_v13  ;;  %v698_v13 = vrot.slane %v696_v11, 4  ;;  %v1691_v0 = vshll.u32 %v2634_v56, 16  ;;  %v1696_v4 = vshrl.u32 %v3562_v15, 16  ;;  %v1699_v5 = vshll.u32 %v3562_v15, 16 }
  0x6a   : >> { %2896 = vmatprep.subr.bf16.mxu0 %v3105_v36  ;;  %v691_v25 = vsel %vm640_vm4, %v682_v52, %v690_v1  ;;  %v1539_v38 = vsel %vm958_vm5, %v1530_v9, %v1538_v26  ;;  %v1690_v1 = vrot.slane %v1688_v59, 3  ;;  %v985_v6 = vshrl.u32 %v955_v49, 16  ;;  %v3575_v9 = vld [vmem:[%s3307_s20 + $0xe0] sm:$0xff]  }
  0x6b   : >> { %2826 = vmatprep.mubr.msk.bf16.mxu1 %vm775_vm3, %v691_v25  ;;  %2890 = vmatprep.mubr.msk.bf16.mxu0 %vm775_vm3, %v1539_v38  ;;  %v699_v50 = vor.u32 %v698_v13, %v695_v29  ;;  %v1693_v22 = vrot.slane %v1691_v0, 4  ;;  %v988_v7 = vshll.u32 %v955_v49, 16  ;;  %v1698_v11 = vrot.slane %v1696_v4, 3 }
  0x6c   : >> { %2833 = vmatpush3.bf16.msra.mxu1 %v3104_v30  ;;  %v1543_v30 = vrot.slane %v1541_v61, 4  ;;  %v1701_v16 = vrot.slane %v1699_v5, 4  ;;  %v987_v26 = vrot.slane %v985_v6, 4  ;;  %v1708_v61 = vshll.u32 %v2636_v34, 16 }
  0x6d   : >> { %2834 = vmatprep.subr.bf16.mxu1 %v3106_v17  ;;  %2897 = vmatpush3.bf16.msra.mxu0 %v3105_v36  ;;  %v965_v36 = vrot.slane %v963_v42, 5  ;;  %v708_v37 = vsel %vm640_vm4, %v699_v50, %v707_v51  ;;  %v973_v42 = vrot.slane %v971_v41, 5  ;;  %v1694_v25 = vor.u32 %v1693_v22, %v1690_v1  ;;  %v3112_v51 = vld [vmem:[%s3307_s20 + $0x68] sm:$0xff]   ;;  %v2640_v1 = vld [vmem:[%s3400_s13 + $0x50] sm:$0xf8] }
  0x6e   : >> { %2898 = vmatprep.subr.bf16.mxu0 %v3107_v8  ;;  %v1547_v58 = vor.u32 %v1546_v53, %v1543_v30  ;;  %v990_v29 = vrot.slane %v988_v7, 5  ;;  %v1702_v13 = vor.u32 %v1701_v16, %v1698_v11  ;;  %v1707_v62 = vrot.slane %v1705_v19, 3  ;;  %v3611_v22 = vld [vmem:[%s3400_s13 + $0x58] sm:$0xf]  ;;  %v3115_v16 = vld [vmem:[%s3307_s20 + $0xf0] sm:$0xff]  }
  0x6f   : >> { %2827 = vmatmul.mubr.msk.bf16.gmra.mrb[4].mxu1 %vm775_vm3, %v708_v37  ;;  %v966_v63 = vor.u32 %v965_v36, %v962_v55  ;;  %v1713_v32 = vshrl.u32 %v3571_v40, 16  ;;  %v1710_v38 = vrot.slane %v1708_v61, 4  ;;  %v1716_v30 = vshll.u32 %v3571_v40, 16  ;;  %v2638_v55 = vld [vmem:[%s3400_s13 + $0x40] sm:$0xf8]  ;;  %v3116_v61 = vld [vmem:[%s3307_s20 + $0x78] sm:$0xff]  }
  0x70   : >> { %2835 = vmatpush3.bf16.msra.mxu1 %v3106_v17  ;;  %v970_v17 = vrot.slane %v968_v14, 4  ;;  %v1556_v52 = vsel %vm958_vm5, %v1547_v58, %v1555_v60  ;;  %v991_v27 = vor.u32 %v990_v29, %v987_v26  ;;  %v1189_v47 = vor.u32 %v3449_v12, %v3446_v10  ;;  %v3598_v14 = vld [vmem:[%s3400_s13 + $0x48] sm:$0xf]  ;;  %v957_v37 = vld [vmem:[%s3400_s13 + $0x38] sm:$0x1f] }
  0x71   : >> { %2836 = vmatprep.subr.bf16.mxu1 %v3108_v20  ;;  %2899 = vmatpush3.bf16.msra.mxu0 %v3107_v8  ;;  %v1715_v50 = vrot.slane %v1713_v32, 3  ;;  %v994_v53 = vshrl.u32 %v3462_v18, 16  ;;  %v997_v54 = vshll.u32 %v3462_v18, 16  ;;  %v1711_v57 = vor.u32 %v1710_v38, %v1707_v62 }
  0x72   : >> { %2900 = vmatprep.subr.bf16.mxu0 %v3109_v48  ;;  %2891 = vmatmul.mubr.msk.bf16.gmra.mrb[4].mxu0 %vm775_vm3, %v1556_v52  ;;  %v974_v8 = vor.u32 %v973_v42, %v970_v17  ;;  %v992_v56 = vsel %vm958_vm5, %v983_v31, %v991_v27  ;;  %v1718_v33 = vrot.slane %v1716_v30, 4  ;;  %v1002_v36 = vshrl.u32 %v956_v46, 16  ;;  %v3114_v42 = vld [vmem:[%s3307_s20 + $0x70] sm:$0xff]  }
  0x73   : >> { %v996_v58 = vrot.slane %v994_v53, 4  ;;  %v999_v18 = vrot.slane %v997_v54, 5  ;;  %v1005_v41 = vshll.u32 %v956_v46, 16  ;;  %v1722_v59 = vshrl.u32 %v2638_v55, 16 }
  0x74   : >> { %2837 = vmatpush3.bf16.msra.mxu1 %v3108_v20  ;;  %v975_v20 = vsel %vm958_vm5, %v966_v63, %v974_v8  ;;  %v1719_v49 = vor.u32 %v1718_v33, %v1715_v50  ;;  %v1004_v3 = vrot.slane %v1002_v36, 4  ;;  %v1725_v31 = vshll.u32 %v2638_v55, 16  ;;  %v3117_v50 = vld [vmem:[%s3307_s20 + $0xf8] sm:$0xff]   ;;  %v3629_v33 = vld [vmem:[%s3400_s13 + $0x20] sm:$0xf0] }
  0x75   : >> { %2846 = vmatprep.subr.bf16.mxu1 %v3557_v45  ;;  %2901 = vmatpush3.bf16.msra.mxu0 %v3109_v48  ;;  %v1703_v48 = vsel %vm640_vm4, %v1694_v25, %v1702_v13  ;;  %v1730_v60 = vshrl.u32 %v3598_v14, 16  ;;  %v1000_v63 = vor.u32 %v999_v18, %v996_v58  ;;  %v1007_v17 = vrot.slane %v1005_v41, 5  ;;  %v3632_v36 = vld [vmem:[%s3307_s20 + $0x100] sm:$0xff]  }
  0x76   : >> { %2838 = vmatprep.mubr.msk.bf16.mxu1 %vm775_vm3, %v975_v20  ;;  %2910 = vmatprep.subr.bf16.mxu0 %v3575_v9  ;;  %v1724_v0 = vrot.slane %v1722_v59, 3  ;;  %v1733_v34 = vshll.u32 %v3598_v14, 16  ;;  %v1720_v4 = vsel %vm640_vm4, %v1711_v57, %v1719_v49  ;;  %v1727_v5 = vrot.slane %v1725_v31, 4  ;;  %v2570_v41 = vld [vmem:[%s3400_s13 + $0x20] sm:$0xf8] }
  0x77   : >> { %2902 = vmatprep.mubr.msk.bf16.mxu0 %vm775_vm3, %v1703_v48  ;;  %2839 = vmatmul.mubr.msk.bf16.vlgmr.msra.gmra.mrb[0].mxu1 %vm775_vm3, %v992_v56  ;;  %v1011_v52 = vshrl.u32 %v3478_v28, 16  ;;  %v1008_v6 = vor.u32 %v1007_v17, %v1004_v3  ;;  %v1014_v8 = vshll.u32 %v3478_v28, 16  ;;  %v1019_v11 = vshrl.u32 %v957_v37, 16  ;;  %v3641_v31 = vld [vmem:[%s3400_s13 + $0x30] sm:$0xf0] }
  0x78   : >> { %2847 = vmatpush3.bf16.msra.mxu1 %v3557_v45  ;;  %v1732_v45 = vrot.slane %v1730_v60, 3  ;;  %v1735_v7 = vrot.slane %v1733_v34, 4  ;;  %v1728_v19 = vor.u32 %v1727_v5, %v1724_v0  ;;  %v1022_v26 = vshll.u32 %v957_v37, 16  ;;  %v2572_v5 = vld [vmem:[%s3400_s13 + $0x30] sm:$0xf8] }
  0x79   : >> { %2848 = vmatprep.subr.bf16.mxu1 %v3112_v51  ;;  %v1013_v25 = vrot.slane %v1011_v52, 4  ;;  %v1739_v29 = vshrl.u32 %v2640_v1, 16  ;;  %v1009_v20 = vsel %vm958_vm5, %v1000_v63, %v1008_v6  ;;  %v1016_v62 = vrot.slane %v1014_v8, 5  ;;  %v3651_v52 = vld [vmem:[%s3400_s13 + $0x40] sm:$0xf0] }
  0x7a   : >> { %2903 = vmatmul.mubr.msk.bf16.vlgmr.msra.gmra.mrb[0].mxu0 %vm775_vm3, %v1720_v4  ;;  %v1736_v13 = vor.u32 %v1735_v7, %v1732_v45  ;;  %v1021_v32 = vrot.slane %v1019_v11, 4  ;;  %2842 = vmatprep.mubr.msk.bf16.mxu1 %vm775_vm3, %v1009_v20  ;;  %v1024_v28 = vrot.slane %v1022_v26, 5  ;;  %v1742_v27 = vshll.u32 %v2640_v1, 16  ;;  %v2574_v11 = vld [vmem:[%s3400_s13 + $0x40] sm:$0xf8]  ;;  %v3119_v20 = vld [vmem:[%s3307_s20 + $0x108] sm:$0xff]  }
  0x7b   : >> { %2911 = vmatpush3.bf16.msra.mxu0 %v3575_v9  ;;  %v1741_v9 = vrot.slane %v1739_v29, 3  ;;  %v1747_v38 = vshrl.u32 %v3611_v22, 16  ;;  %v1017_v46 = vor.u32 %v1016_v62, %v1013_v25  ;;  %v1750_v48 = vshll.u32 %v3611_v22, 16  ;;  %v2661_v29 = vld [vmem:[%s3400_s13 + $0x50] sm:$0xf0] }
  0x7c   : >> { %2849 = vmatpush3.bf16.msra.mxu1 %v3112_v51  ;;  %2912 = vmatprep.subr.bf16.mxu0 %v3113_v2  ;;  %v1737_v30 = vsel %vm640_vm4, %v1728_v19, %v1736_v13  ;;  %v2568_v51 = vld [vmem:[%s3400_s13 + $0x10] sm:$0xf8]  ;;  %v1168_v53 = vrot.slane %v1166_v43, 3  ;;  %v1025_v54 = vor.u32 %v1024_v28, %v1021_v32  ;;  %v1744_v55 = vrot.slane %v1742_v27, 4 }
  0x7d   : >> { %2850 = vmatprep.subr.bf16.mxu1 %v3114_v42  ;;  %2906 = vmatprep.mubr.msk.bf16.mxu0 %vm775_vm3, %v1737_v30  ;;  %v1749_v56 = vrot.slane %v1747_v38, 3  ;;  %v1158_v57 = vshrl.u32 %v2568_v51, 16  ;;  %v1752_v37 = vrot.slane %v1750_v48, 4  ;;  %v1161_v58 = vshll.u32 %v2568_v51, 16 }
  0x7e   : >> { %v1171_v18 = vrot.slane %v1169_v44, 4  ;;  %v1885_v43 = vrot.slane %v3629_v33, 4  ;;  %v1026_v59 = vsel %vm958_vm5, %v1017_v46, %v1025_v54  ;;  %v1745_v49 = vor.u32 %v1744_v55, %v1741_v9 }
  0x7f   : >> { %2913 = vmatpush3.bf16.msra.mxu0 %v3113_v2  ;;  %v1160_v2 = vrot.slane %v1158_v57, 3  ;;  %v1886_v3 = vrot.slane %v3562_v15, 4  ;;  %2843 = vmatmul.mubr.msk.bf16.gmra.mrb[4].mxu1 %vm775_vm3, %v1026_v59  ;;  %v1753_v60 = vor.u32 %v1752_v37, %v1749_v56  ;;  %v1163_v63 = vrot.slane %v1161_v58, 4  ;;  %v3120_v37 = vld [vmem:[%s3307_s20 + $0x110] sm:$0xff]   ;;  %v2680_v59 = vld [vmem:[%s3400_s13 + $0x48] sm:$0x1f] }
  0x80   : >> { %2914 = vmatprep.subr.bf16.mxu0 %v3115_v16  ;;  %2851 = vmatpush3.bf16.msra.mxu1 %v3114_v42  ;;  %v1172_v35 = vor.u32 %v1171_v18, %v1168_v53  ;;  %v1175_v44 = vshrl.u32 %v2570_v41, 16  ;;  %v1178_v0 = vshll.u32 %v2570_v41, 16  ;;  %v1888_v34 = vrot.slane %v3641_v31, 4 }
  0x81   : >> { %2852 = vmatprep.subr.bf16.mxu1 %v3116_v61  ;;  %v1887_v17 = vsel %vm729_vm2, %v1885_v43, %v1886_v3  ;;  %v1889_v42 = vrot.slane %v3571_v40, 4  ;;  %v1754_v15 = vsel %vm640_vm4, %v1745_v49, %v1753_v60  ;;  %v1164_v1 = vor.u32 %v1163_v63, %v1160_v2 }
  0x82   : >> { %v1177_v4 = vrot.slane %v1175_v44, 3  ;;  %v1200_v45 = vshrl.u32 %v3467_v21, 16  ;;  %2907 = vmatmul.mubr.msk.bf16.gmra.mrb[4].mxu0 %vm775_vm3, %v1754_v15  ;;  %v1180_v6 = vrot.slane %v1178_v0, 4  ;;  %v1192_v40 = vshrl.u32 %v2572_v5, 16  ;;  %v2679_v15 = vld [vmem:[%s3400_s13 + $0x38] sm:$0x1f] }
  0x83   : >> { %2915 = vmatpush3.bf16.msra.mxu0 %v3115_v16  ;;  %v1890_v7 = vsel %vm729_vm2, %v1888_v34, %v1889_v42  ;;  %v1195_v8 = vshll.u32 %v2572_v5, 16  ;;  %v1173_v16 = vsel %vm640_vm4, %v1164_v1, %v1172_v35  ;;  %2918 = vmatprep.mubr.msk.bf16.mxu0 %vm775_vm3, %v1887_v17  ;;  %v1203_v25 = vshll.u32 %v3467_v21, 16  ;;  %v3121_v35 = vld [vmem:[%s3307_s20 + $0x118] sm:$0xff]  }
  0x84   : >> { %2916 = vmatprep.subr.bf16.mxu0 %v3117_v50  ;;  %2853 = vmatpush3.bf16.msra.mxu1 %v3116_v61  ;;  %v1202_v19 = vrot.slane %v1200_v45, 3  ;;  %v1891_v26 = vrot.slane %v3651_v52, 4  ;;  %v1181_v61 = vor.u32 %v1180_v6, %v1177_v4  ;;  %v1194_v13 = vrot.slane %v1192_v40, 3 }
  0x85   : >> { %2942 = vmatprep.subr.bf16.mxu1 %v3632_v36  ;;  %2854 = vmatprep.mubr.msk.bf16.mxu1 %vm775_vm3, %v1173_v16  ;;  %v1197_v62 = vrot.slane %v1195_v8, 4  ;;  %v1892_v32 = vrot.slane %v3598_v14, 4  ;;  %v1205_v28 = vrot.slane %v1203_v25, 4  ;;  %v1209_v9 = vshrl.u32 %v2574_v11, 16  ;;  %v2681_v8 = vld [vmem:[%s3400_s13 + $0x58] sm:$0x1f] }
  0x86   : >> { %v1212_v27 = vshll.u32 %v2574_v11, 16  ;;  %v1217_v21 = vshrl.u32 %v3487_v39, 16  ;;  %v1190_v38 = vsel %vm640_vm4, %v1181_v61, %v1189_v47  ;;  %v1220_v48 = vshll.u32 %v3487_v39, 16  ;;  %v2678_v47 = vld [vmem:[%s3400_s13 + $0x28] sm:$0x1f] }
  0x87   : >> { %2917 = vmatpush3.bf16.msra.mxu0 %v3117_v50  ;;  %v1198_v30 = vor.u32 %v1197_v62, %v1194_v13  ;;  %v1893_v46 = vsel %vm729_vm2, %v1891_v26, %v1892_v32  ;;  %2855 = vmatmul.mubr.msk.bf16.vlgmr.msra.gmra.mrb[0].mxu1 %vm775_vm3, %v1190_v38  ;;  %v1206_v14 = vor.u32 %v1205_v28, %v1202_v19  ;;  %v1211_v50 = vrot.slane %v1209_v9, 3 }
  0x88   : >> { %2926 = vmatprep.subr.bf16.mxu0 %v3632_v36  ;;  %v1214_v51 = vrot.slane %v1212_v27, 4  ;;  %v1219_v53 = vrot.slane %v1217_v21, 3  ;;  %2946 = vmatpush3.bf16.msra.mxu1 %v3632_v36  ;;  %v1222_v54 = vrot.slane %v1220_v48, 4  ;;  %v1894_v55 = vrot.slane %v2661_v29, 4 }
  0x89   : >> { %v1895_v10 = vrot.slane %v3611_v22, 4  ;;  %v2071_v12 = vshrl.u32 %v2661_v29, 16  ;;  %2943 = vmatprep.subr.bf16.mxu1 %v3119_v20  ;;  %v1207_v56 = vsel %vm640_vm4, %v1198_v30, %v1206_v14  ;;  %v2074_v57 = vshll.u32 %v2661_v29, 16 }
  0x8a   : >> { %v1215_v39 = vor.u32 %v1214_v51, %v1211_v50  ;;  %v2020_v58 = vshrl.u32 %v3629_v33, 16  ;;  %2919 = vmatmul.mubr.msk.bf16.vlgmr.msra.gmra.mrb[0].mxu0 %vm775_vm3, %v1890_v7  ;;  %2858 = vmatprep.mubr.msk.bf16.mxu1 %vm775_vm3, %v1207_v56  ;;  %v1223_v18 = vor.u32 %v1222_v54, %v1219_v53  ;;  %v2023_v22 = vshll.u32 %v3629_v33, 16 }
  0x8b   : >> { %v1896_v43 = vsel %vm729_vm2, %v1894_v55, %v1895_v10  ;;  %v3683_v41 = vrot.slane %v2071_v12, 4  ;;  %2927 = vmatpush3.bf16.msra.mxu0 %v3632_v36  ;;  %2922 = vmatprep.mubr.msk.bf16.mxu0 %vm775_vm3, %v1893_v46  ;;  %v2076_v49 = vrot.slane %v2074_v57, 5  ;;  %v2028_v3 = vshrl.u32 %v2678_v47, 16 }
  0x8c   : >> { %v2022_v2 = vrot.slane %v2020_v58, 4  ;;  %v2031_v60 = vshll.u32 %v2678_v47, 16  ;;  %2928 = vmatprep.subr.bf16.mxu0 %v3119_v20  ;;  %2947 = vmatpush3.bf16.msra.mxu1 %v3119_v20  ;;  %v1224_v63 = vsel %vm640_vm4, %v1215_v39, %v1223_v18  ;;  %v2025_v44 = vrot.slane %v2023_v22, 5 }
  0x8d   : >> { %v2054_v17 = vshrl.u32 %v3651_v52, 16  ;;  %v2057_v33 = vshll.u32 %v3651_v52, 16  ;;  %2944 = vmatprep.subr.bf16.mxu1 %v3120_v37  ;;  %v2030_v36 = vrot.slane %v2028_v3, 4  ;;  %v2062_v34 = vshrl.u32 %v2680_v59, 16 }
  0x8e   : >> { %v2033_v0 = vrot.slane %v2031_v60, 5  ;;  %v2065_v42 = vshll.u32 %v2680_v59, 16  ;;  %v2026_v1 = vor.u32 %v2025_v44, %v2022_v2  ;;  %v2037_v45 = vshrl.u32 %v3641_v31, 16 }
  0x8f   : >> { %v2056_v4 = vrot.slane %v2054_v17, 4  ;;  %v2059_v5 = vrot.slane %v2057_v33, 5  ;;  %2929 = vmatpush3.bf16.msra.mxu0 %v3119_v20  ;;  %2859 = vmatmul.mubr.msk.bf16.gmra.mrb[4].mxu1 %vm775_vm3, %v1224_v63  ;;  %v2064_v7 = vrot.slane %v2062_v34, 4  ;;  %v2040_v52 = vshll.u32 %v3641_v31, 16 }
  0x90   : >> { %v2034_v6 = vor.u32 %v2033_v0, %v2030_v36  ;;  %v2067_v40 = vrot.slane %v2065_v42, 5  ;;  %2930 = vmatprep.subr.bf16.mxu0 %v3120_v37  ;;  %2948 = vmatpush3.bf16.msra.mxu1 %v3120_v37  ;;  %v2039_v16 = vrot.slane %v2037_v45, 4  ;;  %v2045_v19 = vshrl.u32 %v2679_v15, 16 }
  0x91   : >> { %v2060_v11 = vor.u32 %v2059_v5, %v2056_v4  ;;  %v2048_v25 = vshll.u32 %v2679_v15, 16  ;;  %2945 = vmatprep.subr.bf16.mxu1 %v3121_v35  ;;  %v2042_v61 = vrot.slane %v2040_v52, 5  ;;  %v2079_v62 = vshrl.u32 %v2681_v8, 16 }
  0x92   : >> { %v2035_v26 = vsel %vm958_vm5, %v2026_v1, %v2034_v6  ;;  %v2068_v29 = vor.u32 %v2067_v40, %v2064_v7  ;;  %2923 = vmatmul.mubr.msk.bf16.gmra.mrb[4].mxu0 %vm775_vm3, %v1896_v43  ;;  %v2047_v20 = vrot.slane %v2045_v19, 4  ;;  %v2082_v32 = vshll.u32 %v2681_v8, 16 }
  0x93   : >> { %v2050_v13 = vrot.slane %v2048_v25, 5  ;;  %2931 = vmatpush3.bf16.msra.mxu0 %v3120_v37  ;;  %2934 = vmatprep.mubr.msk.bf16.mxu0 %vm775_vm3, %v2035_v26  ;;  %v2043_v28 = vor.u32 %v2042_v61, %v2039_v16  ;;  %v2077_v27 = vor.u32 %v2076_v49, %v3683_v41  ;;  %v2081_v21 = vrot.slane %v2079_v62, 4 }
  0x94   : >> { %v2069_v31 = vsel %vm958_vm5, %v2060_v11, %v2068_v29  ;;  %2932 = vmatprep.subr.bf16.mxu0 %v3121_v35  ;;  %2949 = vmatpush3.bf16.msra.mxu1 %v3121_v35  ;;  %v2084_v38 = vrot.slane %v2082_v32, 5 }
  0x95   : >> { %v2051_v9 = vor.u32 %v2050_v13, %v2047_v20  ;;  %2938 = vmatprep.mubr.msk.bf16.mxu1 %vm775_vm3, %v2069_v31 }
  0x96   : >> { %v2085_v30 = vor.u32 %v2084_v38, %v2081_v21 }
  0x97   : >> { %2933 = vmatpush3.bf16.msra.mxu0 %v3121_v35  ;;  %v2052_v46 = vsel %vm958_vm5, %v2043_v28, %v2051_v9 }
  0x98   : >> { %v2086_v48 = vsel %vm958_vm5, %v2077_v27, %v2085_v30 }
  0x99   : >> { %2939 = vmatmul.mubr.msk.bf16.vlgmr.msra.gmra.mrb[8].mxu1 %vm775_vm3, %v2086_v48 }
  0x9a   : >> { %2935 = vmatmul.mubr.msk.bf16.vlgmr.msra.gmra.mrb[0].mxu0 %vm775_vm3, %v2052_v46 }
 0x15a   : >> { %v2856_v14 = vpop.f32.mrb[0].mxu1 }
 0x15b   : >> { %v1304_v50 = vpop.f32.mrb[1].mxu1 }
 0x15c   : >> { %v2857_v51 = vpop.f32.mrb[2].mxu1 }
 0x15d   : >> { %v1307_v53 = vpop.f32.mrb[3].mxu1 }
 0x162   : >> { %v2860_v54 = vpop.f32.mrb[4].mxu1 }
 0x163   : >> { %v1320_v55 = vpop.f32.mrb[5].mxu1 }
 0x164   : >> { %v2861_v10 = vpop.f32.mrb[6].mxu1 }
 0x165   : >> { %v2924_v12 = vpop.f32.mrb[4].mxu0  ;;  %v1323_v47 = vpop.f32.mrb[7].mxu1 }
 0x166   : >> { %v2954_v56 = vadd.f32 %v2924_v12, %v2860_v54  ;;  %v1992_v39 = vpop.f32.mrb[5].mxu0 }
 0x167   : >> { %v2956_v57 = vadd.f32 %v1992_v39, %v1320_v55  ;;  %v2925_v37 = vpop.f32.mrb[6].mxu0 }
 0x168   : >> { %v2958_v58 = vadd.f32 %v2925_v37, %v2861_v10  ;;  %v1995_v18 = vpop.f32.mrb[7].mxu0 }
 0x169   : >> { %v2960_v43 = vadd.f32 %v1995_v18, %v1323_v47 }
 0x16c   : >> { %v2940_v41 = vpop.f32.mrb[8].mxu1 }
 0x16d   : >> { %v2936_v22 = vpop.f32.mrb[0].mxu0  ;;  %v2955_v59 = vadd.f32 %v2954_v56, %v2940_v41  ;;  %v2182_v49 = vpop.f32.mrb[9].mxu1 }
 0x16e   : >> { %v2950_v2 = vadd.f32 %v2936_v22, %v2856_v14  ;;  %v2166_v3 = vpop.f32.mrb[1].mxu0  ;;  %v2957_v60 = vadd.f32 %v2956_v57, %v2182_v49  ;;  %v2941_v63 = vpop.f32.mrb[10].mxu1 }
 0x16f   : >> { %v2217_v35 = vmul.f32 %v2955_v59, %v3377_v23  ;;  %v2951_v44 = vadd.f32 %v2166_v3, %v1304_v50  ;;  %v2937_v17 = vpop.f32.mrb[2].mxu0  ;;  %v2959_v33 = vadd.f32 %v2958_v58, %v2941_v63  ;;  %v2185_v36 = vpop.f32.mrb[11].mxu1 }
 0x170   : >> { %v2213_v0 = vmul.f32 %v2950_v2, %v3377_v23  ;;  %v2215_v34 = vmul.f32 %v2957_v60, %v3377_v23  ;;  %v2952_v42 = vadd.f32 %v2937_v17, %v2857_v51  ;;  %v2169_v15 = vpop.f32.mrb[3].mxu0  ;;  %v2961_v1 = vadd.f32 %v2960_v43, %v2185_v36 }
 0x171   : >> { %v2231_v4 = vadd.f32 %v3384_v24, %v2217_v35  ;;  %v2211_v5 = vmul.f32 %v2951_v44, %v3377_v23  ;;  %v2218_v45 = vmul.f32 %v2959_v33, %v3377_v23  ;;  %v2953_v6 = vadd.f32 %v2169_v15, %v1307_v53 }
 0x172   : >> { %v2227_v7 = vadd.f32 %v3384_v24, %v2213_v0  ;;  %v2229_v40 = vadd.f32 %v3384_v24, %v2215_v34  ;;  %v2214_v52 = vmul.f32 %v2952_v42, %v3377_v23  ;;  %v2216_v8 = vmul.f32 %v2961_v1, %v3377_v23 }
 0x173   : >> { %v2239_v11 = vmax.f32 %v2231_v4, 0.0  ;;  %v2225_v16 = vadd.f32 %v3384_v24, %v2211_v5  ;;  %v2232_v19 = vadd.f32 %v3384_v24, %v2218_v45  ;;  %v2212_v25 = vmul.f32 %v2953_v6, %v3377_v23 }
 0x174   : >> { %v2235_v26 = vmax.f32 %v2227_v7, 0.0  ;;  %v2237_v29 = vmax.f32 %v2229_v40, 0.0  ;;  %v2228_v61 = vadd.f32 %v3384_v24, %v2214_v52  ;;  %v2230_v20 = vadd.f32 %v3384_v24, %v2216_v8 }
 0x175   : >> { %v2723_v13 = vpack.c.bf16 %v2239_v11, %v2239_v11  ;;  %v2233_v62 = vmax.f32 %v2225_v16, 0.0  ;;  %v2240_v32 = vmax.f32 %v2232_v19, 0.0  ;;  %v2226_v31 = vadd.f32 %v3384_v24, %v2212_v25  ;;  %626 = sbr.rel (!%p624_p0) target bundleno = 70 (0x46), region = 124 }
 0x176   : >> { %v2719_v28 = vpack.c.bf16 %v2235_v26, %v2235_v26  ;;  %v2721_v9 = vpack.c.bf16 %v2237_v29, %v2237_v29  ;;  %v2236_v27 = vmax.f32 %v2228_v61, 0.0  ;;  %v2238_v21 = vmax.f32 %v2230_v20, 0.0 }
 0x177   : >> { %2281 = vst.msk [vmem:[%s2274_s16 + $0x18] sm:$0xf] %vm455_vm0, %v2723_v13  ;;  %v2717_v38 = vpack.c.bf16 %v2233_v62, %v2233_v62  ;;  %v2724_v30 = vpack.c.bf16 %v2240_v32, %v2240_v32  ;;  %v2234_v46 = vmax.f32 %v2226_v31, 0.0 }
 0x178   : >> { %2277 = vst.msk [vmem:[%s2274_s16 + $0x8] sm:$0xf] %vm455_vm0, %v2719_v28  ;;  %2279 = vst.msk [vmem:[%s2274_s16 + $0x10] sm:$0xf] %vm455_vm0, %v2721_v9  ;;  %v2720_v48 = vpack.c.bf16 %v2236_v27, %v2236_v27  ;;  %v2722_v14 = vpack.c.bf16 %v2238_v21, %v2238_v21 }
 0x179   : >> { %2275 = vst.msk [vmem:[%s2274_s16] sm:$0xf] %vm455_vm0, %v2717_v38  ;;  %2282 = vst.msk [vmem:[%s2274_s16 + $0x1c] sm:$0xf] %vm455_vm0, %v2724_v30  ;;  %v2718_v50 = vpack.c.bf16 %v2234_v46, %v2234_v46 }
 0x17a   : >> { %2278 = vst.msk [vmem:[%s2274_s16 + $0xc] sm:$0xf] %vm455_vm0, %v2720_v48  ;;  %2280 = vst.msk [vmem:[%s2274_s16 + $0x14] sm:$0xf] %vm455_vm0, %v2722_v14 }
 0x17b   : >> { %2276 = vst.msk [vmem:[%s2274_s16 + $0x4] sm:$0xf] %vm455_vm0, %v2718_v50 }
 0x17c PF: > { %s16_s25 = sadd.s32 1, %s3164_s25   ;;  %s3760_s21 = smov %s3156_s23 }
 0x17d   : > { %p13_p1 = scmp.ge.s32.totalorder %s16_s25, 6   ;;  %s3761_s22 = smov %s3160_s24 }
 0x17e   : > { %s3762_s23 = smov %s3765_s26  ;;  %s3763_s24 = smov %s3769_s27 }
 0x17f   :  { %15 = sbr.rel (!%p13_p1) target bundleno = 3 (0x3), region = 135 }

// kernel: forward.9
= control target key start
LH: loop header
LB: loop body
LE: loop exit
PB: predicated region body
PF: predicated region fallthrough
CT: control target
= control target key end

     0   :  { %s3120_s21 = smov 0   ;;  %s3122_s22 = smov 0   ;;  %s3717_s0 = inlined_call_operand.vmem [shape: bf16[2,16,16,64], index: 0, kind: input, shape index: {}, may-alias: {0,1,2}]   ;;  %s3718_s1 = inlined_call_operand.vmem [shape: bf16[2,16,16,64], index: 1, kind: input, shape index: {}, may-alias: {0,1,2}]   ;;  %s3719_s2 = inlined_call_operand.vmem [shape: bf16[2,16,16,64], index: 2, kind: input, shape index: {}, may-alias: {0,1,2}]   ;;  %s3720_s3 = inlined_call_operand.vmem [shape: bf16[1,9,64,4], index: 3, kind: input, shape index: {}]   ;;  %s3721_s4 = inlined_call_operand.vmem [shape: f32[1,1,4], index: 4, kind: input, shape index: {}]   ;;  %s3722_s5 = inlined_call_operand.vmem [shape: f32[1,1,4], index: 5, kind: input, shape index: {}]   ;;  %s3723_s6 = inlined_call_operand.vmem [shape: f32[2,16,16,4], index: 6, kind: output, shape index: {}]  }
   0x1   :  { %s3124_s23 = smov 0   ;;  %s3126_s24 = smov 0  }
   0x2   :  { %s3128_s25 = smov 0  }
   0x3 LB: > { %s25_s26 = sadd.s32 1, %s3068_s23  ;;  %s28_s27 = sadd.s32 1, %s3072_s24  ;;  %s3076_s25 = sphi %s3128_s25, %s16_s25   ;;  %s3072_s24 = sphi %s3126_s24, %s3728_s24   ;;  %s3068_s23 = sphi %s3124_s23, %s3727_s23   ;;  %s3064_s22 = sphi %s3122_s22, %s3726_s22   ;;  %s3060_s21 = sphi %s3120_s21, %s3725_s21  }
   0x4   : > { %p26_p0 = scmp.ge.s32.totalorder %s25_s26, 2  ;;  %p2386_p1 = scmp.ge.s32.totalorder %s3076_s25, 1 }
   0x5   : > { %p298_p2 = scmp.lt.s32.totalorder %s3076_s25, 5 }
   0x6   : > { %s3730_s26 = smov (%p26_p0, %s25_s26), 0  ;;  %s3732_s27 = smov (!%p26_p0, %s28_s27), %s3072_s24 }
   0x7   : > { %p299_p3 = pnand %p2386_p1, %p298_p2  ;;  %p30_p4 = scmp.ge.s32.totalorder %s3732_s27, 2 }
   0x8   : > { %vm421_vm0 = vcmask (!%p299_p3), 519168   ;;  %vm432_vm1 = vcmask (!%p299_p3), 523268   ;;  %s3155_s28 = sshll.u32 (!%p299_p3), %s3060_s21, 3  ;;  %p365_p5 = scmp.lt.s32.totalorder (!%p299_p3), %s3064_s22, 1  ;;  %v3082_v0 = vmov (!%p299_p3), 0  }
   0x9   : > { %s3734_s27 = smov (%p30_p4, %s3732_s27), 0  ;;  %302 = sbr.rel (%p299_p3) target bundleno = 391 (0x187), region = 44 }
   0xa   : > { %422 = vst.msk [vmem:[#allocation2] sm:$0xf] (!%p299_p3), %vm421_vm0, %v3082_v0  ;;  %423 = vst.msk [vmem:[#allocation2 + $0x10] sm:$0xf] (!%p299_p3), %vm421_vm0, %v3082_v0  ;;  %p367_p6 = scmp.lt.s32.totalorder (!%p299_p3), %s3155_s28, 15  ;;  %s2392_s29 = sadd.s32 (!%p299_p3), 4294967295, %s3155_s28 }
   0xb   : > { %424 = vst.msk [vmem:[#allocation2 + $0x20] sm:$0xf] (!%p299_p3), %vm421_vm0, %v3082_v0  ;;  %425 = vst.msk [vmem:[#allocation2 + $0x30] sm:$0xf] (!%p299_p3), %vm421_vm0, %v3082_v0  ;;  %p377_p7 = scmp.gt.s32.totalorder (!%p299_p3), %s2392_s29, 0  ;;  %p2393_p8 = scmp.lt.s32.totalorder (!%p299_p3), %s2392_s29, 15 }
   0xc   : > { %426 = vst.msk [vmem:[#allocation2 + $0x40] sm:$0xf] (!%p299_p3), %vm421_vm0, %v3082_v0  ;;  %427 = vst.msk [vmem:[#allocation2 + $0x50] sm:$0xf] (!%p299_p3), %vm421_vm0, %v3082_v0  ;;  %s393_s10 = sadd.s32 (!%p299_p3), 8, %s3155_s28  ;;  %p2428_p10 = scmp.ne.s32.totalorder (!%p299_p3), %s3060_s21, 0 }
   0xd   : > { %428 = vst.msk [vmem:[#allocation2 + $0x60] sm:$0xf] (!%p299_p3), %vm421_vm0, %v3082_v0  ;;  %429 = vst.msk [vmem:[#allocation2 + $0x70] sm:$0xf] (!%p299_p3), %vm421_vm0, %v3082_v0  ;;  %p3188_p9 = scmp.lt.s32.totalorder (!%p299_p3), %s393_s10, 15 }
   0xe   : > { %430 = vst.msk [vmem:[#allocation2 + $0x80] sm:$0xf] (!%p299_p3), %vm421_vm0, %v3082_v0  ;;  %431 = vst.msk [vmem:[#allocation2 + $0x90] sm:$0xf] (!%p299_p3), %vm421_vm0, %v3082_v0 }
   0xf   : > { %433 = vst.msk [vmem:[#allocation2 + $0x8] sm:$0xf0] (!%p299_p3), %vm432_vm1, %v3082_v0  ;;  %434 = vst.msk [vmem:[#allocation2 + $0x18] sm:$0xf0] (!%p299_p3), %vm432_vm1, %v3082_v0 }
  0x10   : > { %435 = vst.msk [vmem:[#allocation2 + $0x28] sm:$0xf0] %vm432_vm1, %v3082_v0  ;;  %436 = vst.msk [vmem:[#allocation2 + $0x38] sm:$0xf0] %vm432_vm1, %v3082_v0  ;;  %s3736_s22 = smov (!%p365_p5, %s3064_s22), 1  ;;  %s3738_s29 = smov (!%p377_p7, %s2392_s29), 0 }
  0x11   : > { %437 = vst.msk [vmem:[#allocation2 + $0x48] sm:$0xf0] %vm432_vm1, %v3082_v0  ;;  %438 = vst.msk [vmem:[#allocation2 + $0x58] sm:$0xf0] %vm432_vm1, %v3082_v0  ;;  %s368_s30 = scalar_select %p367_p6, %s3155_s28, 15 }
  0x12   : > { %439 = vst.msk [vmem:[#allocation2 + $0x68] sm:$0xf0] %vm432_vm1, %v3082_v0  ;;  %440 = vst.msk [vmem:[#allocation2 + $0x78] sm:$0xf0] %vm432_vm1, %v3082_v0  ;;  %s3184_s7 = sshll.u32 %s3736_s22, 5  ;;  %s3740_s10 = smov (!%p3188_p9, %s393_s10), 15 }
  0x13   : > { %441 = vst.msk [vmem:[#allocation2 + $0x88] sm:$0xf0] %vm432_vm1, %v3082_v0  ;;  %442 = vst.msk [vmem:[#allocation2 + $0x98] sm:$0xf0] %vm432_vm1, %v3082_v0  ;;  %s2388_s8 = sshll.u32 %s368_s30, 1  ;;  %s3742_s29 = smov (!%p2393_p8, %s3738_s29), 15 }
  0x14   : > { %s371_s9 = sadd.s32 %s3184_s7, %s2388_s8  ;;  %s3744_s10 = smov (!%p3188_p9, %s3740_s10), 15  ;;  %v3083_v17 = vmov (!%p2428_p10), 0  }
  0x15   : > { %s2390_s11 = sshll.u32 %s371_s9, 2  ;;  %s2411_s16 = sshll.u32 %s371_s9, 3  ;;  %544 = vst.msk [vmem:[#allocation2] sm:$0xf0] (!%p2428_p10), %vm432_vm1, %v3083_v17 }
  0x16   : > { %s3195_s15 = scalar_lea.vmem %s3717_s0, %s2390_s11  ;;  %s2398_s17 = sshll.u32 %s3742_s29, 1  ;;  %545 = vst.msk [vmem:[#allocation2 + $0x8] sm:$0xf] (!%p2428_p10), %vm421_vm0, %v3083_v17 }
  0x17   : > { %v2962_v1 = vld [vmem:[%s3195_s15] ss:$0 sps:$4 sm:$0xff]   ;;  %v2963_v2 = vld [vmem:[%s3195_s15 + $0x4] ss:$0 sps:$4 sm:$0xff]   ;;  %v2964_v3 = vld [vmem:[%s3195_s15 + $0x8] ss:$0 sps:$4 sm:$0xff]   ;;  %s3210_s20 = scalar_lea.vmem %s3723_s6, %s2411_s16  ;;  %s385_s22 = sadd.s32 %s2398_s17, %s3184_s7 }
  0x18   : > { %524 = vst.msk [vmem:[#allocation2 + $0x10] sm:$0xf0] %vm432_vm1, %v2962_v1  ;;  %v2965_v4 = vld [vmem:[%s3195_s15 + $0xc] ss:$0 sps:$4 sm:$0xff]   ;;  %526 = vst.msk [vmem:[#allocation2 + $0x20] sm:$0xf0] %vm432_vm1, %v2964_v3 }
  0x19   : > { %525 = vst.msk [vmem:[#allocation2 + $0x18] sm:$0xf] %vm421_vm0, %v2963_v2  ;;  %v2966_v5 = vld [vmem:[%s3195_s15 + $0x10] ss:$0 sps:$4 sm:$0xff]   ;;  %s2405_s28 = sshll.u32 %s3744_s10, 1  ;;  %s2400_s30 = sshll.u32 %s385_s22, 2 }
  0x1a   : > { %527 = vst.msk [vmem:[#allocation2 + $0x28] sm:$0xf] %vm421_vm0, %v2965_v4  ;;  %v2967_v6 = vld [vmem:[%s3195_s15 + $0x14] ss:$0 sps:$4 sm:$0xff]   ;;  %s402_s8 = sadd.s32 %s2405_s28, %s3184_s7  ;;  %v2968_v7 = vld [vmem:[%s3195_s15 + $0x18] ss:$0 sps:$4 sm:$0xff]   ;;  %s3223_s11 = scalar_lea.vmem %s3718_s1, %s2400_s30 }
  0x1b   : > { %528 = vst.msk [vmem:[#allocation2 + $0x30] sm:$0xf0] %vm432_vm1, %v2966_v5  ;;  %s2407_s12 = sshll.u32 %s402_s8, 2  ;;  %v2969_v8 = vld [vmem:[%s3195_s15 + $0x1c] ss:$0 sps:$4 sm:$0xff]  }
  0x1c   : > { %529 = vst.msk [vmem:[#allocation2 + $0x38] sm:$0xf] %vm421_vm0, %v2967_v6  ;;  %s3230_s14 = scalar_lea.vmem %s3719_s2, %s2407_s12  ;;  %v2970_v9 = vld [vmem:[%s3195_s15 + $0x20] ss:$0 sps:$4 sm:$0xff]   ;;  %531 = vst.msk [vmem:[#allocation2 + $0x48] sm:$0xf] %vm421_vm0, %v2969_v8 }
  0x1d   : > { %530 = vst.msk [vmem:[#allocation2 + $0x40] sm:$0xf0] %vm432_vm1, %v2968_v7  ;;  %v2971_v10 = vld [vmem:[%s3195_s15 + $0x24] ss:$0 sps:$4 sm:$0xff]   ;;  %v2972_v11 = vld [vmem:[%s3195_s15 + $0x28] ss:$0 sps:$4 sm:$0xff]  }
  0x1e   : > { %532 = vst.msk [vmem:[#allocation2 + $0x50] sm:$0xf0] %vm432_vm1, %v2970_v9  ;;  %v2973_v12 = vld [vmem:[%s3195_s15 + $0x2c] ss:$0 sps:$4 sm:$0xff]   ;;  %534 = vst.msk [vmem:[#allocation2 + $0x60] sm:$0xf0] %vm432_vm1, %v2972_v11 }
  0x1f   : > { %533 = vst.msk [vmem:[#allocation2 + $0x58] sm:$0xf] %vm421_vm0, %v2971_v10  ;;  %v2974_v13 = vld [vmem:[%s3195_s15 + $0x30] ss:$0 sps:$4 sm:$0xff]   ;;  %v2975_v14 = vld [vmem:[%s3195_s15 + $0x34] ss:$0 sps:$4 sm:$0xff]  }
  0x20   : > { %535 = vst.msk [vmem:[#allocation2 + $0x68] sm:$0xf] %vm421_vm0, %v2973_v12  ;;  %v2976_v15 = vld [vmem:[%s3195_s15 + $0x38] ss:$0 sps:$4 sm:$0xff]   ;;  %537 = vst.msk [vmem:[#allocation2 + $0x78] sm:$0xf] %vm421_vm0, %v2975_v14 }
  0x21   : > { %536 = vst.msk [vmem:[#allocation2 + $0x70] sm:$0xf0] %vm432_vm1, %v2974_v13  ;;  %v2977_v16 = vld [vmem:[%s3195_s15 + $0x3c] ss:$0 sps:$4 sm:$0xff]   ;;  %538 = vst.msk [vmem:[#allocation2 + $0x80] sm:$0xf0] %vm432_vm1, %v2976_v15 }
  0x22   : > { %539 = vst.msk [vmem:[#allocation2 + $0x88] sm:$0xf] %vm421_vm0, %v2977_v16  ;;  %543 = sbr.rel (%p2428_p10) target bundleno = 41 (0x29), region = 48 }
  0x29 PF: > { %p2429_p11 = scmp.le.s32.totalorder %s3060_s21, 0 }
  0x2a   : > { %v2978_v18 = vld [vmem:[%s3223_s11] ss:$0 sps:$4 sm:$0xff] (!%p2429_p11)   ;;  %v2979_v19 = vld [vmem:[%s3223_s11 + $0x4] ss:$0 sps:$4 sm:$0xff] (!%p2429_p11)  }
  0x2b   : > { %549 = sbr.rel (%p2429_p11) target bundleno = 50 (0x32), region = 52  ;;  %560 = vst.msk [vmem:[#allocation2] sm:$0xf0] (!%p2429_p11), %vm432_vm1, %v2978_v18 }
  0x2c   : > { %561 = vst.msk [vmem:[#allocation2 + $0x8] sm:$0xf] (!%p2429_p11), %vm421_vm0, %v2979_v19 }
  0x32 PF: > { %p2432_p12 = scmp.ne.s32.totalorder %s3060_s21, 1 }
  0x33   : > { %v3084_v20 = vmov (!%p2432_p12), 0  }
  0x34   : > { %565 = sbr.rel (%p2432_p12) target bundleno = 59 (0x3b), region = 56  ;;  %567 = vst.msk [vmem:[#allocation2 + $0x90] sm:$0xf0] (!%p2432_p12), %vm432_vm1, %v3084_v20 }
  0x35   : > { %568 = vst.msk [vmem:[#allocation2 + $0x98] sm:$0xf] (!%p2432_p12), %vm421_vm0, %v3084_v20 }
  0x3b PF: > { %p2433_p13 = scmp.ge.s32.totalorder %s3060_s21, 1 }
  0x3c   : > { %v2980_v21 = vld [vmem:[%s3230_s14] ss:$0 sps:$4 sm:$0xff] (!%p2433_p13)   ;;  %v2981_v22 = vld [vmem:[%s3230_s14 + $0x4] ss:$0 sps:$4 sm:$0xff] (!%p2433_p13)  }
  0x3d   : > { %572 = sbr.rel (%p2433_p13) target bundleno = 68 (0x44), region = 60  ;;  %584 = vst.msk [vmem:[#allocation2 + $0x90] sm:$0xf0] (!%p2433_p13), %vm432_vm1, %v2980_v21 }
  0x3e   : > { %585 = vst.msk [vmem:[#allocation2 + $0x98] sm:$0xf] (!%p2433_p13), %vm421_vm0, %v2981_v22 }
  0x44 PF: > { %v3269_v23 = vld [vmem:[%s3721_s4] ss:$0 sm:$0xff]  ;;  %s3276_s21 = smov 0  }
  0x45   : > { %v3274_v24 = vld [vmem:[%s3722_s5] ss:$0 sm:$0xff] }
  0x46 LB: >> { %v2982_v25 = vld [vmem:[%s3720_s3 + $0x20] sm:$0xff]   ;;  %v2984_v27 = vld [vmem:[%s3720_s3 + $0x28] sm:$0xff]   ;;  %s2619_s29 = sshll.u32 %s3080_s21, 6  ;;  %v2986_v29 = vld [vmem:[%s3720_s3 + $0x30] sm:$0xff]   ;;  %vm695_vm2 = vcmask 1043456   ;;  %vm741_vm3 = vcmask 523264   ;;  %s3080_s21 = sphi %s3276_s21, %s593_s21  }
  0x47   : >> { %v2983_v26 = vld [vmem:[%s3720_s3 + $0x80] sm:$0xff]   ;;  %2695 = vmatprep.subr.bf16.mxu1 %v2982_v25  ;;  %v2985_v28 = vld [vmem:[%s3720_s3 + $0x88] sm:$0xff]   ;;  %v2987_v30 = vld [vmem:[%s3720_s3 + $0x90] sm:$0xff]   ;;  %s3308_s18 = scalar_lea.vmem [#allocation2], %s2619_s29  ;;  %vm606_vm4 = vsmask.f32 4352 }
  0x48   : >> { %2759 = vmatprep.subr.bf16.mxu0 %v2983_v26  ;;  %2696 = vmatpush3.bf16.msra.mxu1 %v2982_v25  ;;  %v2988_v31 = vld [vmem:[%s3720_s3 + $0x38] sm:$0xff]   ;;  %v3311_v33 = vld [vmem:[%s3308_s18 + $0x8] sm:$0xf]  ;;  %v3314_v34 = vld [vmem:[%s3308_s18] sm:$0xf0]  ;;  %vm2209_vm6 = vcmask 31744  }
  0x49   : >> { %2760 = vmatpush3.bf16.msra.mxu0 %v2983_v26  ;;  %2697 = vmatprep.subr.bf16.mxu1 %v2984_v27  ;;  %v2989_v32 = vld [vmem:[%s3720_s3 + $0x98] sm:$0xff]   ;;  %v616_v36 = vshrl.u32 %v3311_v33, 16  ;;  %v619_v37 = vshll.u32 %v3311_v33, 16  ;;  %v696_v38 = vrot.slane %v3314_v34, 4  ;;  %v697_v39 = vrot.slane %v3311_v33, 4  ;;  %v2990_v51 = vld [vmem:[%s3720_s3] sm:$0xff]  }
  0x4a   : >> { %2761 = vmatprep.subr.bf16.mxu0 %v2985_v28  ;;  %v3317_v35 = vld [vmem:[%s3308_s18 + $0x18] sm:$0xf]  ;;  %v3324_v40 = vld [vmem:[%s3308_s18 + $0x10] sm:$0xf0]  ;;  %v926_v41 = vshrl.u32 %v3314_v34, 16  ;;  %v929_v42 = vshll.u32 %v3314_v34, 16 }
  0x4b   : >> { %v1132_v43 = vshrl.u32 %v3317_v35, 16  ;;  %v1135_v44 = vshll.u32 %v3317_v35, 16  ;;  %v601_v45 = vld [vmem:[%s3308_s18 + $0x18] sm:$0xf]  ;;  %v698_v46 = vsel %vm695_vm2, %v696_v38, %v697_v39  ;;  %v1321_v47 = vrot.slane %v3324_v40, 4  ;;  %v2991_v60 = vld [vmem:[%s3720_s3 + $0xa0] sm:$0xff]  }
  0x4c   : >> { %2698 = vmatpush3.bf16.msra.mxu1 %v2984_v27  ;;  %v1322_v48 = vrot.slane %v3317_v35, 4  ;;  %v1456_v49 = vshrl.u32 %v3324_v40, 16  ;;  %v684_v50 = vld [vmem:[%s3308_s18 + $0x10] sm:$0xf0]  ;;  %v1459_v52 = vshll.u32 %v3324_v40, 16  ;;  %v633_v53 = vshrl.u32 %v601_v45, 16  ;;  %2703 = vmatprep.mubr.msk.bf16.mxu1 %vm741_vm3, %v698_v46 }
  0x4d   : >> { %2762 = vmatpush3.bf16.msra.mxu0 %v2985_v28  ;;  %2699 = vmatprep.subr.bf16.mxu1 %v2986_v29  ;;  %v636_v54 = vshll.u32 %v601_v45, 16  ;;  %v699_v55 = vrot.slane %v684_v50, 4  ;;  %v700_v57 = vrot.slane %v601_v45, 4  ;;  %v943_v58 = vshrl.u32 %v684_v50, 16  ;;  %v2484_v63 = vld [vmem:[%s3308_s18 + $0x28] sm:$0xf] }
  0x4e   : >> { %2763 = vmatprep.subr.bf16.mxu0 %v2987_v30  ;;  %v1323_v56 = vsel %vm695_vm2, %v1321_v47, %v1322_v48  ;;  %v946_v59 = vshll.u32 %v684_v50, 16  ;;  %v3346_v61 = vrot.slane %v633_v53, 3  ;;  %v2506_v0 = vld [vmem:[%s3308_s18 + $0x20] sm:$0xf0]  ;;  %v1149_v4 = vshrl.u32 %v2484_v63, 16  ;;  %v2992_v5 = vld [vmem:[%s3720_s3 + $0x8] sm:$0xff]  }
  0x4f   : >> { %2767 = vmatprep.mubr.msk.bf16.mxu0 %vm741_vm3, %v1323_v56  ;;  %v3348_v62 = vrot.slane %v636_v54, 4  ;;  %v701_v1 = vsel %vm695_vm2, %v699_v55, %v700_v57  ;;  %v3353_v2 = vrot.slane %v943_v58, 4  ;;  %v1152_v6 = vshll.u32 %v2484_v63, 16  ;;  %v2993_v16 = vld [vmem:[%s3720_s3 + $0xa8] sm:$0xff]   ;;  %v3378_v18 = vld [vmem:[%s3308_s18 + $0x20] sm:$0xf0] }
  0x50   : >> { %2700 = vmatpush3.bf16.msra.mxu1 %v2986_v29  ;;  %v3355_v3 = vrot.slane %v946_v59, 5  ;;  %v1324_v7 = vrot.slane %v2506_v0, 4  ;;  %v1325_v8 = vrot.slane %v2484_v63, 4  ;;  %v1473_v9 = vshrl.u32 %v2506_v0, 16  ;;  %v3375_v17 = vld [vmem:[%s3308_s18 + $0x28] sm:$0xf] }
  0x51   : >> { %2764 = vmatpush3.bf16.msra.mxu0 %v2987_v30  ;;  %2701 = vmatprep.subr.bf16.mxu1 %v2988_v31  ;;  %v3360_v10 = vrot.slane %v1149_v4, 3  ;;  %v1476_v11 = vshll.u32 %v2506_v0, 16  ;;  %v3363_v12 = vrot.slane %v1152_v6, 4  ;;  %v702_v19 = vrot.slane %v3378_v18, 4  ;;  %v3383_v21 = vld [vmem:[%s3308_s18 + $0x38] sm:$0xf] }
  0x52   : >> { %2765 = vmatprep.subr.bf16.mxu0 %v2989_v32  ;;  %v1326_v13 = vsel %vm695_vm2, %v1324_v7, %v1325_v8  ;;  %v3366_v14 = vrot.slane %v1473_v9, 4  ;;  %v703_v20 = vrot.slane %v3375_v17, 4  ;;  %v3386_v22 = vld [vmem:[%s3308_s18 + $0x30] sm:$0xf0]  ;;  %v1328_v26 = vrot.slane %v3383_v21, 4  ;;  %v2996_v54 = vld [vmem:[%s3720_s3 + $0x18] sm:$0xff]  }
  0x53   : >> { %v3369_v15 = vrot.slane %v1476_v11, 5  ;;  %v1327_v25 = vrot.slane %v3386_v22, 4  ;;  %v3391_v27 = vld [vmem:[%s3308_s18 + $0x38] sm:$0xf]  ;;  %v3394_v28 = vld [vmem:[%s3308_s18 + $0x30] sm:$0xf0]  ;;  %v639_v8 = vor.u32 %v3348_v62, %v3346_v61  ;;  %v949_v62 = vor.u32 %v3355_v3, %v3353_v2 }
  0x54   : >> { %2702 = vmatpush3.bf16.msra.mxu1 %v2988_v31  ;;  %v704_v29 = vsel %vm695_vm2, %v702_v19, %v703_v20  ;;  %v705_v30 = vrot.slane %v3394_v28, 4  ;;  %v706_v31 = vrot.slane %v3391_v27, 4  ;;  %v2994_v38 = vld [vmem:[%s3720_s3 + $0x10] sm:$0xff]   ;;  %v3405_v39 = vld [vmem:[%s3308_s18 + $0x48] sm:$0xf]  ;;  %v618_v46 = vrot.slane %v616_v36, 3 }
  0x55   : >> { %2766 = vmatpush3.bf16.msra.mxu0 %v2989_v32  ;;  %2711 = vmatprep.subr.bf16.mxu1 %v2990_v51  ;;  %v1329_v32 = vsel %vm695_vm2, %v1327_v25, %v1328_v26  ;;  %v3408_v45 = vld [vmem:[%s3308_s18 + $0x40] sm:$0xf0]  ;;  %v1331_v50 = vrot.slane %v3405_v39, 4  ;;  %v621_v53 = vrot.slane %v619_v37, 4  ;;  %v1458_v55 = vrot.slane %v1456_v49, 4  ;;  %v2997_v33 = vld [vmem:[%s3720_s3 + $0xb8] sm:$0xff]  }
  0x56   : >> { %2775 = vmatprep.subr.bf16.mxu0 %v2991_v60  ;;  %v707_v47 = vsel %vm695_vm2, %v705_v30, %v706_v31  ;;  %v1330_v48 = vrot.slane %v3408_v45, 4  ;;  %v598_v37 = vld [vmem:[%s3308_s18] sm:$0xf8]  ;;  %v1461_v56 = vrot.slane %v1459_v52, 5  ;;  %vm924_vm5 = vsmask.f32 3328 }
  0x57   : >> { %2704 = vmatmul.mubr.msk.bf16.vlgmr.msra.gmra.mrb[0].mxu1 %vm741_vm3, %v701_v1  ;;  %v608_v57 = vshrl.u32 %v598_v37, 16  ;;  %v611_v58 = vshll.u32 %v598_v37, 16  ;;  %v2525_v59 = vld [vmem:[%s3308_s18 + $0x18] sm:$0x1f]  ;;  %v622_v49 = vor.u32 %v621_v53, %v618_v46  ;;  %v600_v0 = vld [vmem:[%s3308_s18 + $0x10] sm:$0xf8] }
  0x58   : >> { %2768 = vmatmul.mubr.msk.bf16.vlgmr.msra.gmra.mrb[0].mxu0 %vm741_vm3, %v1326_v13  ;;  %2712 = vmatpush3.bf16.msra.mxu1 %v2990_v51  ;;  %v2995_v51 = vld [vmem:[%s3720_s3 + $0xb0] sm:$0xff]   ;;  %v1332_v36 = vsel %vm695_vm2, %v1330_v48, %v1331_v50  ;;  %v1467_v63 = vshll.u32 %v2525_v59, 16  ;;  %v628_v6 = vshll.u32 %v600_v0, 16  ;;  %v1462_v7 = vor.u32 %v1461_v56, %v1458_v55  ;;  %v2998_v9 = vld [vmem:[%s3720_s3 + $0x40] sm:$0xff]   ;;  %v2526_v11 = vld [vmem:[%s3308_s18 + $0x28] sm:$0x1f] }
  0x59   : >> { %2776 = vmatpush3.bf16.msra.mxu0 %v2991_v60  ;;  %2713 = vmatprep.subr.bf16.mxu1 %v2992_v5  ;;  %v1464_v60 = vshrl.u32 %v2525_v59, 16  ;;  %v610_v1 = vrot.slane %v608_v57, 3  ;;  %v613_v4 = vrot.slane %v611_v58, 4  ;;  %v2999_v13 = vld [vmem:[%s3720_s3 + $0xc0] sm:$0xff]   ;;  %v1481_v25 = vshrl.u32 %v2526_v11, 16  ;;  %v3000_v61 = vld [vmem:[%s3720_s3 + $0x48] sm:$0xff]  }
  0x5a   : >> { %2777 = vmatprep.subr.bf16.mxu0 %v2993_v16  ;;  %2707 = vmatprep.mubr.msk.bf16.mxu1 %vm741_vm3, %v704_v29  ;;  %v1469_v52 = vrot.slane %v1467_v63, 5  ;;  %v630_v20 = vrot.slane %v628_v6, 4  ;;  %v1484_v29 = vshll.u32 %v2526_v11, 16  ;;  %v602_v50 = vld [vmem:[%s3308_s18 + $0x20] sm:$0xf8]  ;;  %v1490_v56 = vshrl.u32 %v3386_v22, 16 }
  0x5b   : >> { %2771 = vmatprep.mubr.msk.bf16.mxu0 %vm741_vm3, %v1329_v32  ;;  %v1466_v40 = vrot.slane %v1464_v60, 4  ;;  %v1483_v32 = vrot.slane %v1481_v25, 4  ;;  %v645_v55 = vshll.u32 %v602_v50, 16  ;;  %v2527_v37 = vld [vmem:[%s3308_s18 + $0x38] sm:$0x1f]  ;;  %v3002_v58 = vld [vmem:[%s3720_s3 + $0x50] sm:$0xff]  }
  0x5c   : >> { %2714 = vmatpush3.bf16.msra.mxu1 %v2992_v5  ;;  %v625_v5 = vshrl.u32 %v600_v0, 16  ;;  %v1486_v48 = vrot.slane %v1484_v29, 5  ;;  %v604_v57 = vld [vmem:[%s3308_s18 + $0x30] sm:$0xf8]  ;;  %v1498_v60 = vshrl.u32 %v2527_v37, 16  ;;  %v1501_v63 = vshll.u32 %v2527_v37, 16 }
  0x5d   : >> { %2778 = vmatpush3.bf16.msra.mxu0 %v2993_v16  ;;  %2715 = vmatprep.subr.bf16.mxu1 %v2994_v38  ;;  %v614_v16 = vor.u32 %v613_v4, %v610_v1  ;;  %v1470_v26 = vor.u32 %v1469_v52, %v1466_v40  ;;  %v1492_v4 = vrot.slane %v1490_v56, 4  ;;  %v2528_v6 = vld [vmem:[%s3308_s18 + $0x48] sm:$0x1f]  ;;  %v659_v52 = vshrl.u32 %v604_v57, 16  ;;  %s593_s21 = sadd.s32 1, %s3080_s21  }
  0x5e   : >> { %2779 = vmatprep.subr.bf16.mxu0 %v2995_v51  ;;  %v627_v19 = vrot.slane %v625_v5, 3  ;;  %v1503_v40 = vrot.slane %v1501_v63, 5  ;;  %v662_v11 = vshll.u32 %v604_v57, 16  ;;  %v3504_v56 = vld [vmem:[%s3308_s18 + $0x28] sm:$0xf]  ;;  %p590_p0 = scmp.ge.s32.totalorder %s593_s21, 2  }
  0x5f   : >> { %2708 = vmatmul.mubr.msk.bf16.gmra.mrb[4].mxu1 %vm741_vm3, %v707_v47  ;;  %v623_v30 = vsel %vm606_vm4, %v614_v16, %v622_v49  ;;  %v1471_v46 = vsel %vm924_vm5, %v1462_v7, %v1470_v26  ;;  %v1479_v47 = vor.u32 %v3369_v15, %v3366_v14  ;;  %v1487_v14 = vor.u32 %v1486_v48, %v1483_v32  ;;  %v3005_v48 = vld [vmem:[%s3720_s3 + $0xd8] sm:$0xff]   ;;  %v3009_v2 = vld [vmem:[%s3720_s3 + $0xe8] sm:$0xff]  }
  0x60   : >> { %2772 = vmatmul.mubr.msk.bf16.gmra.mrb[4].mxu0 %vm741_vm3, %v1332_v36  ;;  %2716 = vmatpush3.bf16.msra.mxu1 %v2994_v38  ;;  %v631_v31 = vor.u32 %v630_v20, %v627_v19  ;;  %v650_v38 = vshrl.u32 %v3375_v17, 16  ;;  %v3001_v36 = vld [vmem:[%s3720_s3 + $0xc8] sm:$0xff]   ;;  %v647_v49 = vrot.slane %v645_v55, 4  ;;  %v1500_v7 = vrot.slane %v1498_v60, 4  ;;  %v3004_v20 = vld [vmem:[%s3720_s3 + $0x58] sm:$0xff]  }
  0x61   : >> { %2780 = vmatpush3.bf16.msra.mxu0 %v2995_v51  ;;  %2717 = vmatprep.subr.bf16.mxu1 %v2996_v54  ;;  %v653_v51 = vshll.u32 %v3375_v17, 16  ;;  %v1493_v17 = vshll.u32 %v3386_v22, 16  ;;  %v1488_v0 = vsel %vm924_vm5, %v1479_v47, %v1487_v14  ;;  %v667_v16 = vshrl.u32 %v3391_v27, 16  ;;  %v2547_v55 = vld [vmem:[%s3308_s18 + $0x20] sm:$0xf8] }
  0x62   : >> { %2781 = vmatprep.subr.bf16.mxu0 %v2997_v33  ;;  %2719 = vmatprep.mubr.msk.bf16.mxu1 %vm741_vm3, %v623_v30  ;;  %v640_v53 = vsel %vm606_vm4, %v631_v31, %v639_v8  ;;  %v3003_v8 = vld [vmem:[%s3720_s3 + $0xd0] sm:$0xff]   ;;  %v670_v19 = vshll.u32 %v3391_v27, 16  ;;  %v1504_v26 = vor.u32 %v1503_v40, %v1500_v7  ;;  %v661_v29 = vrot.slane %v659_v52, 3 }
  0x63   : >> { %2783 = vmatprep.mubr.msk.bf16.mxu0 %vm741_vm3, %v1471_v46  ;;  %v655_v15 = vrot.slane %v653_v51, 4  ;;  %v1495_v5 = vrot.slane %v1493_v17, 5  ;;  %v1507_v30 = vshrl.u32 %v3408_v45, 16  ;;  %v669_v31 = vrot.slane %v667_v16, 3 }
  0x64   : >> { %2718 = vmatpush3.bf16.msra.mxu1 %v2996_v54  ;;  %v642_v54 = vshrl.u32 %v602_v50, 16  ;;  %v672_v32 = vrot.slane %v670_v19, 4  ;;  %v1510_v27 = vshll.u32 %v3408_v45, 16  ;;  %v1518_v47 = vshll.u32 %v2528_v6, 16 }
  0x65   : >> { %2782 = vmatpush3.bf16.msra.mxu0 %v2997_v33  ;;  %2727 = vmatprep.subr.bf16.mxu1 %v2998_v9  ;;  %v652_v33 = vrot.slane %v650_v38, 3  ;;  %v1509_v46 = vrot.slane %v1507_v30, 4  ;;  %v928_v45 = vrot.slane %v926_v41, 4 }
  0x66   : >> { %2791 = vmatprep.subr.bf16.mxu0 %v2999_v13  ;;  %v644_v59 = vrot.slane %v642_v54, 3  ;;  %v673_v51 = vor.u32 %v672_v32, %v669_v31  ;;  %v920_v54 = vld [vmem:[%s3308_s18 + $0x8] sm:$0x1f]  ;;  %v1520_v14 = vrot.slane %v1518_v47, 5  ;;  %v1155_v47 = vor.u32 %v3363_v12, %v3360_v10 }
  0x67   : >> { %2720 = vmatmul.mubr.msk.bf16.vlgmr.msra.gmra.mrb[0].mxu1 %vm741_vm3, %v640_v53  ;;  %v656_v1 = vor.u32 %v655_v15, %v652_v33  ;;  %v1512_v53 = vrot.slane %v1510_v27, 5  ;;  %v3499_v33 = vld [vmem:[%s3720_s3 + $0x60] sm:$0xff]   ;;  %v934_v15 = vshrl.u32 %v920_v54, 16  ;;  %v937_v57 = vshll.u32 %v920_v54, 16 }
  0x68   : >> { %2728 = vmatpush3.bf16.msra.mxu1 %v2998_v9  ;;  %2784 = vmatmul.mubr.msk.bf16.vlgmr.msra.gmra.mrb[0].mxu0 %vm741_vm3, %v1488_v0  ;;  %v648_v22 = vor.u32 %v647_v49, %v644_v59  ;;  %v1496_v9 = vor.u32 %v1495_v5, %v1492_v4  ;;  %v1654_v59 = vshrl.u32 %v2547_v55, 16  ;;  %v921_v49 = vld [vmem:[%s3308_s18 + $0x18] sm:$0x1f]  ;;  %v1662_v4 = vshrl.u32 %v3504_v56, 16 }
  0x69   : >> { %2729 = vmatprep.subr.bf16.mxu1 %v3000_v61  ;;  %2792 = vmatpush3.bf16.msra.mxu0 %v2999_v13  ;;  %v664_v13 = vrot.slane %v662_v11, 4  ;;  %v1513_v41 = vor.u32 %v1512_v53, %v1509_v46  ;;  %v936_v0 = vrot.slane %v934_v15, 4  ;;  %v939_v34 = vrot.slane %v937_v57, 5  ;;  %v3544_v15 = vld [vmem:[%s3308_s18 + $0x48] sm:$0xf] }
  0x6a   : >> { %2793 = vmatprep.subr.bf16.mxu0 %v3001_v36  ;;  %v657_v25 = vsel %vm606_vm4, %v648_v22, %v656_v1  ;;  %v1505_v38 = vsel %vm924_vm5, %v1496_v9, %v1504_v26  ;;  %v2549_v1 = vld [vmem:[%s3308_s18 + $0x30] sm:$0xf8]  ;;  %v1665_v5 = vshll.u32 %v3504_v56, 16  ;;  %v951_v40 = vshrl.u32 %v921_v49, 16  ;;  %v3519_v9 = vld [vmem:[%s3720_s3 + $0xe0] sm:$0xff]  }
  0x6b   : >> { %2723 = vmatprep.mubr.msk.bf16.mxu1 %vm741_vm3, %v657_v25  ;;  %2787 = vmatprep.mubr.msk.bf16.mxu0 %vm741_vm3, %v1505_v38  ;;  %v665_v50 = vor.u32 %v664_v13, %v661_v29  ;;  %v954_v52 = vshll.u32 %v921_v49, 16  ;;  %v1664_v11 = vrot.slane %v1662_v4, 3  ;;  %v1671_v19 = vshrl.u32 %v2549_v1, 16 }
  0x6c   : >> { %2730 = vmatpush3.bf16.msra.mxu1 %v3000_v61  ;;  %v1515_v61 = vshrl.u32 %v2528_v6, 16  ;;  %v3513_v6 = vld [vmem:[%s3308_s18 + $0x38] sm:$0xf]  ;;  %v1667_v16 = vrot.slane %v1665_v5, 4  ;;  %v953_v26 = vrot.slane %v951_v40, 4  ;;  %v1674_v29 = vshll.u32 %v2549_v1, 16 }
  0x6d   : >> { %2731 = vmatprep.subr.bf16.mxu1 %v3002_v58  ;;  %2794 = vmatpush3.bf16.msra.mxu0 %v3001_v36  ;;  %v931_v36 = vrot.slane %v929_v42, 5  ;;  %v674_v17 = vsel %vm606_vm4, %v665_v50, %v673_v51  ;;  %v1656_v42 = vrot.slane %v1654_v59, 3  ;;  %v1673_v31 = vrot.slane %v1671_v19, 3  ;;  %v3008_v51 = vld [vmem:[%s3720_s3 + $0x68] sm:$0xff]  }
  0x6e   : >> { %v1517_v37 = vrot.slane %v1515_v61, 4  ;;  %2795 = vmatprep.subr.bf16.mxu0 %v3003_v8  ;;  %v1668_v13 = vor.u32 %v1667_v16, %v1664_v11  ;;  %v1679_v32 = vshrl.u32 %v3513_v6, 16  ;;  %v1676_v38 = vrot.slane %v1674_v29, 4  ;;  %v922_v61 = vld [vmem:[%s3308_s18 + $0x28] sm:$0x1f]  ;;  %v3011_v16 = vld [vmem:[%s3720_s3 + $0xf0] sm:$0xff]  }
  0x6f   : >> { %2724 = vmatmul.mubr.msk.bf16.gmra.mrb[4].mxu1 %vm741_vm3, %v674_v17  ;;  %v932_v63 = vor.u32 %v931_v36, %v928_v45  ;;  %v1682_v46 = vshll.u32 %v3513_v6, 16  ;;  %v960_v53 = vshrl.u32 %v3378_v18, 16  ;;  %v963_v54 = vshll.u32 %v3378_v18, 16  ;;  %v2551_v45 = vld [vmem:[%s3308_s18 + $0x40] sm:$0xf8]  ;;  %v3012_v29 = vld [vmem:[%s3720_s3 + $0x78] sm:$0xff]  }
  0x70   : >> { %2732 = vmatpush3.bf16.msra.mxu1 %v3002_v58  ;;  %v1521_v60 = vor.u32 %v1520_v14, %v1517_v37  ;;  %v1657_v58 = vshll.u32 %v2547_v55, 16  ;;  %v1681_v50 = vrot.slane %v1679_v32, 3  ;;  %v1677_v37 = vor.u32 %v1676_v38, %v1673_v31  ;;  %v923_v17 = vld [vmem:[%s3308_s18 + $0x38] sm:$0x1f] }
  0x71   : >> { %2733 = vmatprep.subr.bf16.mxu1 %v3004_v20  ;;  %2796 = vmatpush3.bf16.msra.mxu0 %v3003_v8  ;;  %v940_v8 = vor.u32 %v939_v34, %v936_v0  ;;  %v1684_v14 = vrot.slane %v1682_v46, 4  ;;  %v968_v36 = vshrl.u32 %v922_v61, 16  ;;  %v965_v57 = vrot.slane %v963_v54, 5  ;;  %v3010_v34 = vld [vmem:[%s3720_s3 + $0x70] sm:$0xff]  }
  0x72   : >> { %v1522_v22 = vsel %vm924_vm5, %v1513_v41, %v1521_v60  ;;  %2797 = vmatprep.subr.bf16.mxu0 %v3005_v48  ;;  %v1659_v7 = vrot.slane %v1657_v58, 4  ;;  %v962_v41 = vrot.slane %v960_v53, 4  ;;  %v971_v18 = vshll.u32 %v922_v61, 16 }
  0x73   : >> { %2788 = vmatmul.mubr.msk.bf16.gmra.mrb[4].mxu0 %vm741_vm3, %v1522_v22  ;;  %v941_v30 = vsel %vm924_vm5, %v932_v63, %v940_v8  ;;  %v1688_v59 = vshrl.u32 %v2551_v45, 16  ;;  %v1685_v49 = vor.u32 %v1684_v14, %v1681_v50  ;;  %v970_v3 = vrot.slane %v968_v36, 4  ;;  %v3013_v50 = vld [vmem:[%s3720_s3 + $0xf8] sm:$0xff]   ;;  %v3585_v14 = vld [vmem:[%s3308_s18 + $0x20] sm:$0xf0] }
  0x74   : >> { %2734 = vmatpush3.bf16.msra.mxu1 %v3004_v20  ;;  %v1660_v25 = vor.u32 %v1659_v7, %v1656_v42  ;;  %v956_v20 = vrot.slane %v954_v52, 5  ;;  %2735 = vmatprep.mubr.msk.bf16.mxu1 %vm741_vm3, %v941_v30  ;;  %v1696_v60 = vshrl.u32 %v3544_v15, 16  ;;  %v966_v63 = vor.u32 %v965_v57, %v962_v41  ;;  %v3561_v7 = vld [vmem:[%s3308_s18 + $0x58] sm:$0xf]  ;;  %v3590_v36 = vld [vmem:[%s3720_s3 + $0x100] sm:$0xff]  }
  0x75   : >> { %2743 = vmatprep.subr.bf16.mxu1 %v3499_v33  ;;  %2798 = vmatpush3.bf16.msra.mxu0 %v3005_v48  ;;  %v973_v0 = vrot.slane %v971_v18, 5  ;;  %v1690_v58 = vrot.slane %v1688_v59, 3  ;;  %v1699_v1 = vshll.u32 %v3544_v15, 16  ;;  %v1686_v42 = vsel %vm606_vm4, %v1677_v37, %v1685_v49  ;;  %v2483_v18 = vld [vmem:[%s3308_s18 + $0x20] sm:$0xf8] }
  0x76   : >> { %v957_v27 = vor.u32 %v956_v20, %v953_v26  ;;  %2807 = vmatprep.subr.bf16.mxu0 %v3519_v9  ;;  %v1669_v48 = vsel %vm606_vm4, %v1660_v25, %v1668_v13  ;;  %v1698_v5 = vrot.slane %v1696_v60, 3  ;;  %v977_v22 = vshrl.u32 %v3394_v28, 16 }
  0x77   : >> { %2799 = vmatprep.mubr.msk.bf16.mxu0 %vm741_vm3, %v1669_v48  ;;  %v974_v40 = vor.u32 %v973_v0, %v970_v3  ;;  %v1701_v52 = vrot.slane %v1699_v1, 4  ;;  %v980_v8 = vshll.u32 %v3394_v28, 16  ;;  %v985_v11 = vshrl.u32 %v923_v17, 16 }
  0x78   : >> { %v958_v55 = vsel %vm924_vm5, %v949_v62, %v957_v27  ;;  %v1691_v62 = vshll.u32 %v2551_v45, 16  ;;  %v979_v25 = vrot.slane %v977_v22, 4  ;;  %v988_v26 = vshll.u32 %v923_v17, 16  ;;  %v3609_v22 = vld [vmem:[%s3308_s18 + $0x40] sm:$0xf0] }
  0x79   : >> { %2736 = vmatmul.mubr.msk.bf16.vlgmr.msra.gmra.mrb[0].mxu1 %vm741_vm3, %v958_v55  ;;  %v975_v28 = vsel %vm924_vm5, %v966_v63, %v974_v40  ;;  %v1702_v30 = vor.u32 %v1701_v52, %v1698_v5  ;;  %v982_v13 = vrot.slane %v980_v8, 5  ;;  %v987_v31 = vrot.slane %v985_v11, 4  ;;  %v2487_v11 = vld [vmem:[%s3308_s18 + $0x40] sm:$0xf8] }
  0x7a   : >> { %2744 = vmatpush3.bf16.msra.mxu1 %v3499_v33  ;;  %v2553_v33 = vld [vmem:[%s3308_s18 + $0x50] sm:$0xf8]  ;;  %v1693_v4 = vrot.slane %v1691_v62, 4  ;;  %2739 = vmatprep.mubr.msk.bf16.mxu1 %vm741_vm3, %v975_v28  ;;  %v1713_v38 = vshrl.u32 %v3561_v7, 16  ;;  %v1716_v48 = vshll.u32 %v3561_v7, 16  ;;  %v1134_v53 = vrot.slane %v1132_v43, 3 }
  0x7b   : >> { %2745 = vmatprep.subr.bf16.mxu1 %v3008_v51  ;;  %2800 = vmatmul.mubr.msk.bf16.vlgmr.msra.gmra.mrb[0].mxu0 %vm741_vm3, %v1686_v42  ;;  %v1705_v20 = vshrl.u32 %v2553_v33, 16  ;;  %v1708_v27 = vshll.u32 %v2553_v33, 16  ;;  %v983_v61 = vor.u32 %v982_v13, %v979_v25  ;;  %v1137_v43 = vrot.slane %v1135_v44, 4  ;;  %v3599_v62 = vld [vmem:[%s3308_s18 + $0x30] sm:$0xf0]  ;;  %v3015_v28 = vld [vmem:[%s3720_s3 + $0x108] sm:$0xff]  }
  0x7c   : >> { %2808 = vmatpush3.bf16.msra.mxu0 %v3519_v9  ;;  %v1694_v19 = vor.u32 %v1693_v4, %v1690_v58  ;;  %v990_v9 = vrot.slane %v988_v26, 5  ;;  %v1715_v55 = vrot.slane %v1713_v38, 3  ;;  %v1718_v17 = vrot.slane %v1716_v48, 4  ;;  %v2485_v4 = vld [vmem:[%s3308_s18 + $0x30] sm:$0xf8] }
  0x7d   : >> { %2809 = vmatprep.subr.bf16.mxu0 %v3009_v2  ;;  %v1707_v32 = vrot.slane %v1705_v20, 3  ;;  %v1710_v45 = vrot.slane %v1708_v27, 4  ;;  %v1851_v57 = vrot.slane %v3585_v14, 4  ;;  %v1852_v3 = vrot.slane %v3504_v56, 4  ;;  %v2574_v20 = vld [vmem:[%s3308_s18 + $0x50] sm:$0xf0] }
  0x7e   : >> { %2746 = vmatpush3.bf16.msra.mxu1 %v3008_v51  ;;  %v1703_v46 = vsel %vm606_vm4, %v1694_v19, %v1702_v30  ;;  %v2481_v51 = vld [vmem:[%s3308_s18 + $0x10] sm:$0xf8]  ;;  %v991_v54 = vor.u32 %v990_v9, %v987_v31  ;;  %v1719_v60 = vor.u32 %v1718_v17, %v1715_v55  ;;  %v1138_v35 = vor.u32 %v1137_v43, %v1134_v53 }
  0x7f   : >> { %2747 = vmatprep.subr.bf16.mxu1 %v3010_v34  ;;  %2803 = vmatprep.mubr.msk.bf16.mxu0 %vm741_vm3, %v1703_v46  ;;  %v1124_v37 = vshrl.u32 %v2481_v51, 16  ;;  %v1127_v41 = vshll.u32 %v2481_v51, 16  ;;  %v1711_v49 = vor.u32 %v1710_v45, %v1707_v32  ;;  %v1141_v44 = vshrl.u32 %v2483_v18, 16  ;;  %v3016_v17 = vld [vmem:[%s3720_s3 + $0x110] sm:$0xff]  }
  0x80   : >> { %2810 = vmatpush3.bf16.msra.mxu0 %v3009_v2  ;;  %v992_v59 = vsel %vm924_vm5, %v983_v61, %v991_v54  ;;  %v1853_v0 = vsel %vm695_vm2, %v1851_v57, %v1852_v3  ;;  %v1144_v58 = vshll.u32 %v2483_v18, 16  ;;  %v1854_v1 = vrot.slane %v3599_v62, 4 }
  0x81   : >> { %2811 = vmatprep.subr.bf16.mxu0 %v3011_v16  ;;  %v1126_v2 = vrot.slane %v1124_v37, 3  ;;  %2740 = vmatmul.mubr.msk.bf16.gmra.mrb[4].mxu1 %vm741_vm3, %v992_v59  ;;  %v1129_v63 = vrot.slane %v1127_v41, 4  ;;  %v1720_v56 = vsel %vm606_vm4, %v1711_v49, %v1719_v60  ;;  %v1143_v42 = vrot.slane %v1141_v44, 3  ;;  %v2593_v59 = vld [vmem:[%s3308_s18 + $0x48] sm:$0x1f] }
  0x82   : >> { %2748 = vmatpush3.bf16.msra.mxu1 %v3010_v34  ;;  %v1855_v34 = vrot.slane %v3513_v6, 4  ;;  %v1166_v5 = vshrl.u32 %v3383_v21, 16  ;;  %v1146_v40 = vrot.slane %v1144_v58, 4  ;;  %v1158_v6 = vshrl.u32 %v2485_v4, 16 }
  0x83   : >> { %2749 = vmatprep.subr.bf16.mxu1 %v3012_v29  ;;  %v1130_v33 = vor.u32 %v1129_v63, %v1126_v2  ;;  %2804 = vmatmul.mubr.msk.bf16.gmra.mrb[4].mxu0 %vm741_vm3, %v1720_v56  ;;  %v1161_v8 = vshll.u32 %v2485_v4, 16  ;;  %v1169_v25 = vshll.u32 %v3383_v21, 16  ;;  %v1857_v26 = vrot.slane %v3609_v22, 4  ;;  %v2592_v56 = vld [vmem:[%s3308_s18 + $0x38] sm:$0x1f] }
  0x84   : >> { %2812 = vmatpush3.bf16.msra.mxu0 %v3011_v16  ;;  %v1856_v52 = vsel %vm695_vm2, %v1854_v1, %v1855_v34  ;;  %2815 = vmatprep.mubr.msk.bf16.mxu0 %vm741_vm3, %v1853_v0  ;;  %v1168_v19 = vrot.slane %v1166_v5, 3  ;;  %v1160_v30 = vrot.slane %v1158_v6, 3  ;;  %v1858_v31 = vrot.slane %v3544_v15, 4 }
  0x85   : >> { %2813 = vmatprep.subr.bf16.mxu0 %v3013_v50  ;;  %v1139_v16 = vsel %vm606_vm4, %v1130_v33, %v1138_v35  ;;  %v1163_v13 = vrot.slane %v1161_v8, 4  ;;  %v1171_v9 = vrot.slane %v1169_v25, 4  ;;  %v1175_v32 = vshrl.u32 %v2487_v11, 16  ;;  %v3017_v35 = vld [vmem:[%s3720_s3 + $0x118] sm:$0xff]  }
  0x86   : >> { %2750 = vmatpush3.bf16.msra.mxu1 %v3012_v29  ;;  %2751 = vmatprep.mubr.msk.bf16.mxu1 %vm741_vm3, %v1139_v16  ;;  %v1147_v29 = vor.u32 %v1146_v40, %v1143_v42  ;;  %v1178_v21 = vshll.u32 %v2487_v11, 16  ;;  %v1183_v27 = vshrl.u32 %v3405_v39, 16  ;;  %v1859_v61 = vsel %vm695_vm2, %v1857_v26, %v1858_v31  ;;  %v2594_v8 = vld [vmem:[%s3308_s18 + $0x58] sm:$0x1f] }
  0x87   : >> { %2839 = vmatprep.subr.bf16.mxu1 %v3590_v36  ;;  %v1164_v46 = vor.u32 %v1163_v13, %v1160_v30  ;;  %v1186_v48 = vshll.u32 %v3405_v39, 16  ;;  %v1172_v15 = vor.u32 %v1171_v9, %v1168_v19  ;;  %v1860_v45 = vrot.slane %v2574_v20, 4 }
  0x88   : >> { %2814 = vmatpush3.bf16.msra.mxu0 %v3013_v50  ;;  %v1156_v38 = vsel %vm606_vm4, %v1147_v29, %v1155_v47  ;;  %v1177_v50 = vrot.slane %v1175_v32, 3  ;;  %v1180_v51 = vrot.slane %v1178_v21, 4  ;;  %v1185_v53 = vrot.slane %v1183_v27, 3  ;;  %v2591_v47 = vld [vmem:[%s3308_s18 + $0x28] sm:$0x1f]  ;;  %s2208_s18 = scalar_lea.vmem %s3210_s20, %s2619_s29 }
  0x89   : >> { %2823 = vmatprep.subr.bf16.mxu0 %v3590_v36  ;;  %2752 = vmatmul.mubr.msk.bf16.vlgmr.msra.gmra.mrb[0].mxu1 %vm741_vm3, %v1156_v38  ;;  %v1188_v54 = vrot.slane %v1186_v48, 4  ;;  %v1861_v10 = vrot.slane %v3561_v7, 4  ;;  %v2037_v12 = vshrl.u32 %v2574_v20, 16  ;;  %v1173_v55 = vsel %vm606_vm4, %v1164_v46, %v1172_v15 }
  0x8a   : >> { %2843 = vmatpush3.bf16.msra.mxu1 %v3590_v36  ;;  %v1181_v37 = vor.u32 %v1180_v51, %v1177_v50  ;;  %v2040_v39 = vshll.u32 %v2574_v20, 16  ;;  %v1986_v41 = vshrl.u32 %v3585_v14, 16  ;;  %2755 = vmatprep.mubr.msk.bf16.mxu1 %vm741_vm3, %v1173_v55  ;;  %v1989_v18 = vshll.u32 %v3585_v14, 16 }
  0x8b   : >> { %2840 = vmatprep.subr.bf16.mxu1 %v3015_v28  ;;  %2816 = vmatmul.mubr.msk.bf16.vlgmr.msra.gmra.mrb[0].mxu0 %vm741_vm3, %v1856_v52  ;;  %v1189_v43 = vor.u32 %v1188_v54, %v1185_v53  ;;  %v1862_v7 = vsel %vm695_vm2, %v1860_v45, %v1861_v10  ;;  %v3645_v57 = vrot.slane %v2037_v12, 4  ;;  %v1994_v3 = vshrl.u32 %v2591_v47, 16 }
  0x8c   : >> { %2824 = vmatpush3.bf16.msra.mxu0 %v3590_v36  ;;  %2819 = vmatprep.mubr.msk.bf16.mxu0 %vm741_vm3, %v1859_v61  ;;  %v2042_v49 = vrot.slane %v2040_v39, 5  ;;  %v1988_v2 = vrot.slane %v1986_v41, 4  ;;  %v1997_v60 = vshll.u32 %v2591_v47, 16  ;;  %v1991_v44 = vrot.slane %v1989_v18, 5 }
  0x8d   : >> { %2825 = vmatprep.subr.bf16.mxu0 %v3015_v28  ;;  %v1190_v63 = vsel %vm606_vm4, %v1181_v37, %v1189_v43  ;;  %v2020_v14 = vshrl.u32 %v3609_v22, 16  ;;  %v2023_v36 = vshll.u32 %v3609_v22, 16  ;;  %v1996_v0 = vrot.slane %v1994_v3, 4 }
  0x8e   : >> { %2844 = vmatpush3.bf16.msra.mxu1 %v3015_v28  ;;  %v1999_v58 = vrot.slane %v1997_v60, 5  ;;  %v2028_v1 = vshrl.u32 %v2593_v59, 16  ;;  %v2031_v34 = vshll.u32 %v2593_v59, 16  ;;  %v1992_v33 = vor.u32 %v1991_v44, %v1988_v2 }
  0x8f   : >> { %2841 = vmatprep.subr.bf16.mxu1 %v3016_v17  ;;  %v2022_v42 = vrot.slane %v2020_v14, 4  ;;  %v2025_v4 = vrot.slane %v2023_v36, 5  ;;  %v2003_v5 = vshrl.u32 %v3599_v62, 16  ;;  %v2006_v22 = vshll.u32 %v3599_v62, 16 }
  0x90   : >> { %2826 = vmatpush3.bf16.msra.mxu0 %v3015_v28  ;;  %v2000_v40 = vor.u32 %v1999_v58, %v1996_v0  ;;  %v2030_v52 = vrot.slane %v2028_v1, 4  ;;  %v2033_v6 = vrot.slane %v2031_v34, 5  ;;  %v2011_v19 = vshrl.u32 %v2592_v56, 16 }
  0x91   : >> { %2756 = vmatmul.mubr.msk.bf16.gmra.mrb[4].mxu1 %vm741_vm3, %v1190_v63  ;;  %2827 = vmatprep.subr.bf16.mxu0 %v3016_v17  ;;  %v2026_v11 = vor.u32 %v2025_v4, %v2022_v42  ;;  %v2005_v16 = vrot.slane %v2003_v5, 4  ;;  %v2014_v25 = vshll.u32 %v2592_v56, 16  ;;  %v2008_v29 = vrot.slane %v2006_v22, 5 }
  0x92   : >> { %2845 = vmatpush3.bf16.msra.mxu1 %v3016_v17  ;;  %v2001_v26 = vsel %vm924_vm5, %v1992_v33, %v2000_v40  ;;  %v2034_v20 = vor.u32 %v2033_v6, %v2030_v52  ;;  %v2013_v28 = vrot.slane %v2011_v19, 4  ;;  %v2045_v13 = vshrl.u32 %v2594_v8, 16 }
  0x93   : >> { %2842 = vmatprep.subr.bf16.mxu1 %v3017_v35  ;;  %2820 = vmatmul.mubr.msk.bf16.gmra.mrb[4].mxu0 %vm741_vm3, %v1862_v7  ;;  %v2016_v30 = vrot.slane %v2014_v25, 5  ;;  %v2048_v31 = vshll.u32 %v2594_v8, 16  ;;  %v2009_v9 = vor.u32 %v2008_v29, %v2005_v16  ;;  %v2043_v21 = vor.u32 %v2042_v49, %v3645_v57 }
  0x94   : >> { %2828 = vmatpush3.bf16.msra.mxu0 %v3016_v17  ;;  %2831 = vmatprep.mubr.msk.bf16.mxu0 %vm741_vm3, %v2001_v26  ;;  %v2035_v62 = vsel %vm924_vm5, %v2026_v11, %v2034_v20  ;;  %v2047_v27 = vrot.slane %v2045_v13, 4 }
  0x95   : >> { %2829 = vmatprep.subr.bf16.mxu0 %v3017_v35  ;;  %v2017_v32 = vor.u32 %v2016_v30, %v2013_v28  ;;  %v2050_v38 = vrot.slane %v2048_v31, 5  ;;  %2835 = vmatprep.mubr.msk.bf16.mxu1 %vm741_vm3, %v2035_v62 }
  0x96   : >> { %2846 = vmatpush3.bf16.msra.mxu1 %v3017_v35 }
  0x97   : >> { %v2051_v46 = vor.u32 %v2050_v38, %v2047_v27  ;;  %v2018_v61 = vsel %vm924_vm5, %v2009_v9, %v2017_v32 }
  0x98   : >> { %2830 = vmatpush3.bf16.msra.mxu0 %v3017_v35 }
  0x99   : >> { %v2052_v48 = vsel %vm924_vm5, %v2043_v21, %v2051_v46 }
  0x9a   : >> { %2836 = vmatmul.mubr.msk.bf16.vlgmr.msra.gmra.mrb[8].mxu1 %vm741_vm3, %v2052_v48 }
  0x9b   : >> { %2832 = vmatmul.mubr.msk.bf16.vlgmr.msra.gmra.mrb[0].mxu0 %vm741_vm3, %v2018_v61 }
 0x15c   : >> { %v2753_v15 = vpop.f32.mrb[0].mxu1 }
 0x15d   : >> { %v1270_v50 = vpop.f32.mrb[1].mxu1 }
 0x15e   : >> { %v2754_v51 = vpop.f32.mrb[2].mxu1 }
 0x15f   : >> { %v1273_v53 = vpop.f32.mrb[3].mxu1 }
 0x164   : >> { %v2757_v54 = vpop.f32.mrb[4].mxu1 }
 0x165   : >> { %v1286_v45 = vpop.f32.mrb[5].mxu1 }
 0x166   : >> { %v2758_v10 = vpop.f32.mrb[6].mxu1  ;;  %v2821_v12 = vpop.f32.mrb[4].mxu0 }
 0x167   : >> { %v1289_v47 = vpop.f32.mrb[7].mxu1  ;;  %v2851_v55 = vadd.f32 %v2821_v12, %v2757_v54  ;;  %v1958_v37 = vpop.f32.mrb[5].mxu0 }
 0x168   : >> { %v2853_v39 = vadd.f32 %v1958_v37, %v1286_v45  ;;  %v2822_v17 = vpop.f32.mrb[6].mxu0 }
 0x169   : >> { %v2855_v41 = vadd.f32 %v2822_v17, %v2758_v10  ;;  %v1961_v43 = vpop.f32.mrb[7].mxu0 }
 0x16a   : >> { %v2857_v7 = vadd.f32 %v1961_v43, %v1289_v47 }
 0x16d   : >> { %v2837_v57 = vpop.f32.mrb[8].mxu1 }
 0x16e   : >> { %v2833_v18 = vpop.f32.mrb[0].mxu0  ;;  %v2852_v59 = vadd.f32 %v2851_v55, %v2837_v57  ;;  %v2148_v49 = vpop.f32.mrb[9].mxu1 }
 0x16f   : >> { %v2847_v2 = vadd.f32 %v2833_v18, %v2753_v15  ;;  %v2132_v3 = vpop.f32.mrb[1].mxu0  ;;  %v2854_v60 = vadd.f32 %v2853_v39, %v2148_v49  ;;  %v2838_v63 = vpop.f32.mrb[10].mxu1 }
 0x170   : >> { %v2183_v35 = vmul.f32 %v2852_v59, %v3269_v23  ;;  %v2848_v44 = vadd.f32 %v2132_v3, %v1270_v50  ;;  %v2834_v14 = vpop.f32.mrb[2].mxu0  ;;  %v2856_v36 = vadd.f32 %v2855_v41, %v2838_v63  ;;  %v2151_v0 = vpop.f32.mrb[11].mxu1 }
 0x171   : >> { %v2179_v58 = vmul.f32 %v2847_v2, %v3269_v23  ;;  %v2181_v1 = vmul.f32 %v2854_v60, %v3269_v23  ;;  %v2849_v34 = vadd.f32 %v2834_v14, %v2754_v51  ;;  %v2135_v56 = vpop.f32.mrb[3].mxu0  ;;  %v2858_v33 = vadd.f32 %v2857_v7, %v2151_v0 }
 0x172   : >> { %v2197_v42 = vadd.f32 %v3274_v24, %v2183_v35  ;;  %v2177_v4 = vmul.f32 %v2848_v44, %v3269_v23  ;;  %v2184_v5 = vmul.f32 %v2856_v36, %v3269_v23  ;;  %v2850_v40 = vadd.f32 %v2135_v56, %v1273_v53 }
 0x173   : >> { %v2193_v52 = vadd.f32 %v3274_v24, %v2179_v58  ;;  %v2195_v6 = vadd.f32 %v3274_v24, %v2181_v1  ;;  %v2180_v22 = vmul.f32 %v2849_v34, %v3269_v23  ;;  %v2182_v8 = vmul.f32 %v2858_v33, %v3269_v23 }
 0x174   : >> { %3018 = vtanh.f32 %v2197_v42  ;;  %v2191_v11 = vadd.f32 %v3274_v24, %v2177_v4  ;;  %v2178_v16 = vmul.f32 %v2850_v40, %v3269_v23  ;;  %v2198_v25 = vadd.f32 %v3274_v24, %v2184_v5 }
 0x175   : >> { %3020 = vtanh.f32 %v2193_v52  ;;  %v2194_v19 = vadd.f32 %v3274_v24, %v2180_v22  ;;  %v2196_v20 = vadd.f32 %v3274_v24, %v2182_v8 }
 0x176   : >> { %3022 = vtanh.f32 %v2191_v11  ;;  %v2192_v26 = vadd.f32 %v3274_v24, %v2178_v16 }
 0x177   : >> { %3024 = vtanh.f32 %v2195_v6 }
 0x178   : >> { %3026 = vtanh.f32 %v2194_v19 }
 0x179   : >> { %3028 = vtanh.f32 %v2198_v25 }
 0x17a   : >> { %3030 = vtanh.f32 %v2192_v26 }
 0x17b   : >> { %3032 = vtanh.f32 %v2196_v20 }
 0x17e   : >> { %v3019_v29 = vpop.eup %3018 }
 0x17f   : >> { %v3021_v28 = vpop.eup %3020  ;;  %2216 = vst.msk [vmem:[%s2208_s18 + $0x30] sm:$0xff] %vm2209_vm6, %v3019_v29 }
 0x180   : >> { %v3023_v30 = vpop.eup %3022  ;;  %2212 = vst.msk [vmem:[%s2208_s18 + $0x10] sm:$0xff] %vm2209_vm6, %v3021_v28  ;;  %592 = sbr.rel (!%p590_p0) target bundleno = 70 (0x46), region = 118 }
 0x181   : >> { %v3025_v13 = vpop.eup %3024  ;;  %2210 = vst.msk [vmem:[%s2208_s18] sm:$0xff] %vm2209_vm6, %v3023_v30 }
 0x182   : >> { %v3027_v31 = vpop.eup %3026  ;;  %2214 = vst.msk [vmem:[%s2208_s18 + $0x20] sm:$0xff] %vm2209_vm6, %v3025_v13 }
 0x183   : >> { %v3029_v62 = vpop.eup %3028  ;;  %2213 = vst.msk [vmem:[%s2208_s18 + $0x18] sm:$0xff] %vm2209_vm6, %v3027_v31 }
 0x184   : >> { %v3031_v9 = vpop.eup %3030  ;;  %2217 = vst.msk [vmem:[%s2208_s18 + $0x38] sm:$0xff] %vm2209_vm6, %v3029_v62 }
 0x185   : >> { %v3033_v32 = vpop.eup %3032  ;;  %2211 = vst.msk [vmem:[%s2208_s18 + $0x8] sm:$0xff] %vm2209_vm6, %v3031_v9 }
 0x186   : >> { %2215 = vst.msk [vmem:[%s2208_s18 + $0x28] sm:$0xff] %vm2209_vm6, %v3033_v32 }
 0x187 PF: > { %s16_s25 = sadd.s32 1, %s3076_s25   ;;  %s3725_s21 = smov %s3068_s23 }
 0x188   : > { %p13_p1 = scmp.ge.s32.totalorder %s16_s25, 6   ;;  %s3726_s22 = smov %s3072_s24 }
 0x189   : > { %s3727_s23 = smov %s3730_s26  ;;  %s3728_s24 = smov %s3734_s27 }
 0x18a   :  { %15 = sbr.rel (!%p13_p1) target bundleno = 3 (0x3), region = 129 }

</bundles_post_ra>
